<compile_context>
chip_gen: v5e
topology: v5e:2x2
jax: 0.10.0
libtpu: 0.0.40
codegen_flags: <defaults>
</compile_context>

<pallas_src>
import jax
import jax.numpy as jnp
from jax.experimental import pallas as pl
from jax.experimental.pallas import tpu as pltpu

GLOBAL_DIM = 512
LOCAL_DIM = 2048
HIDDEN_DIM = 512  # weight_net hidden


def fusion_kernel(g_ref, l_ref, wp_ref, bp_ref, w1g_ref, w1l_ref, b1_ref,
                  w2_ref, b2_ref, out_ref):
    # Local projection: bf16 MXU inputs, f32 accumulation.  Wp is VMEM-resident,
    # so this is a single full-K dot per batch tile (no chunked accumulator).
    # (astype is a no-op if the caller already supplies bf16 local features.)
    lp = (jnp.dot(l_ref[...].astype(jnp.bfloat16), wp_ref[...],
                  preferred_element_type=jnp.float32)
          + bp_ref[...])                                  # (TB, 512) f32
    g = g_ref[...].astype(jnp.float32)                    # (TB, 512) f32

    # weight_net layer 1 on concat([g, lp]) without building the concat.
    h = (jnp.dot(g.astype(jnp.bfloat16), w1g_ref[...],
                 preferred_element_type=jnp.float32)
         + jnp.dot(lp.astype(jnp.bfloat16), w1l_ref[...],
                   preferred_element_type=jnp.float32)
         + b1_ref[...])
    h = jnp.maximum(h, 0.0)                               # ReLU

    # weight_net layer 2: Linear(512 -> 1) as a lane reduction (VPU + XLU);
    # an MXU matvec to N=1 would just waste a padded 128-column pass.
    logit = jnp.sum(h * w2_ref[...], axis=-1, keepdims=True) + b2_ref[0, 0]
    alpha = jax.nn.sigmoid(logit)                         # (TB, 1)

    # alpha*g + (1-alpha)*lp == lp + alpha*(g - lp): one fewer broadcast mul.
    out_ref[...] = (lp + alpha * (g - lp)).astype(out_ref.dtype)


def _pick_tb(B):
    """Batch tile: >=2 tiles for v7x megacore when B>16, multiple of 8,
    preferring a divisor of B (no ragged last tile), capped at 256."""
    if B <= 16:
        return B
    cap = min(256, ((B + 1) // 2 + 7) // 8 * 8)
    for t in range(cap, 7, -8):
        if B % t == 0:
            return t
    return cap


def adaptive_weight_fusion(global_features, local_features, params, *, tb=None):
    """grid = (batch tiles,); all weights are VMEM-resident."""
    B = global_features.shape[0]
    wp, bp, w1g, w1l, b1, w2, b2 = params
    if tb is None:
        tb = _pick_tb(B)
    n_b = pl.cdiv(B, tb)

    resident = lambda shape: pl.BlockSpec(shape, lambda i: (0, 0))

    grid_spec = pltpu.PrefetchScalarGridSpec(
        num_scalar_prefetch=0,
        grid=(n_b,),
        in_specs=[
            pl.BlockSpec((tb, GLOBAL_DIM), lambda i: (i, 0)),   # global feats
            pl.BlockSpec((tb, LOCAL_DIM), lambda i: (i, 0)),    # local feats
            resident((LOCAL_DIM, GLOBAL_DIM)),                  # Wp (bf16, resident)
            resident((1, GLOBAL_DIM)),                          # bp
            resident((GLOBAL_DIM, HIDDEN_DIM)),                 # W1g (bf16)
            resident((GLOBAL_DIM, HIDDEN_DIM)),                 # W1l (bf16)
            resident((1, HIDDEN_DIM)),                          # b1
            resident((1, HIDDEN_DIM)),                          # w2 row
            pl.BlockSpec(memory_space=pltpu.SMEM),              # b2 scalar
        ],
        out_specs=pl.BlockSpec((tb, GLOBAL_DIM), lambda i: (i, 0)),
    )

    return pl.pallas_call(
        fusion_kernel,
        out_shape=jax.ShapeDtypeStruct((B, GLOBAL_DIM), global_features.dtype),
        grid_spec=grid_spec,
        compiler_params=pltpu.CompilerParams(
            dimension_semantics=("parallel",),
            vmem_limit_bytes=32 << 20),
    )(global_features, local_features, wp, bp, w1g, w1l, b1, w2, b2)


def init_params(key):
    """PyTorch Linear default init: U(-1/sqrt(fan_in), 1/sqrt(fan_in)).

    Weights are pre-transposed to (in, out); the large matmul weights
    (Wp, W1g, W1l) are stored in bf16 to halve HBM traffic / VMEM residency.
    Biases and the tiny layer-2 row stay f32.
    """
    # TODO(synk): on v7x, Wp could be stored as fp8 (native MXU input) with a
    # per-tensor scale folded into the f32 accumulation for another ~2x on the
    # resident weight bytes; kept bf16 here pending an accuracy gate (and fp8
    # is not applicable on v5e/v6e).
    ks = jax.random.split(key, 6)

    def lin(kw, kb, fan_in, fan_out):
        bound = float(fan_in) ** -0.5
        w = jax.random.uniform(kw, (fan_in, fan_out), jnp.float32, -bound, bound)
        b = jax.random.uniform(kb, (1, fan_out), jnp.float32, -bound, bound)
        return w, b

    wp, bp = lin(ks[0], ks[1], LOCAL_DIM, GLOBAL_DIM)        # Linear(2048 -> 512)
    w1, b1 = lin(ks[2], ks[3], 2 * GLOBAL_DIM, HIDDEN_DIM)   # Linear(1024 -> 512)
    w2_full, b2_full = lin(ks[4], ks[5], HIDDEN_DIM, 1)      # Linear(512 -> 1)

    wp = wp.astype(jnp.bfloat16)
    w1g = w1[:GLOBAL_DIM, :].astype(jnp.bfloat16)   # acts on `global`
    w1l = w1[GLOBAL_DIM:, :].astype(jnp.bfloat16)   # acts on `local_proj`
    w2 = w2_full.T                                  # (1, 512) f32 row (lane reduce)
    b2 = b2_full                                    # (1, 1)   f32 scalar (SMEM)
    return wp, bp, w1g, w1l, b1, w2, b2


def reference_forward(global_features, local_features, params):
    """Pure-JAX reference with the same mixed precision (bf16 weights, f32 acc)."""
    wp, bp, w1g, w1l, b1, w2, b2 = params
    g = global_features.astype(jnp.float32)
    lp = jnp.dot(local_features.astype(jnp.bfloat16), wp,
                 preferred_element_type=jnp.float32) + bp
    h = (jnp.dot(g.astype(jnp.bfloat16), w1g, preferred_element_type=jnp.float32)
         + jnp.dot(lp.astype(jnp.bfloat16), w1l, preferred_element_type=jnp.float32)
         + b1)
    h = jnp.maximum(h, 0.0)
    alpha = jax.nn.sigmoid(jnp.sum(h * w2, axis=-1, keepdims=True) + b2[0, 0])
    return (alpha * g + (1.0 - alpha) * lp).astype(global_features.dtype)


if __name__ == "__main__":
    key = jax.random.PRNGKey(0)
    kp, kg, kl = jax.random.split(key, 3)

    B = 8  # small batch; feature dims are fixed by the module definition
    params = init_params(kp)
    global_features = jax.random.normal(kg, (B, GLOBAL_DIM), jnp.float32)
    local_features = jax.random.normal(kl, (B, LOCAL_DIM), jnp.float32)

    out = adaptive_weight_fusion(global_features, local_features, params)
    out = jax.block_until_ready(out)

    ref = reference_forward(global_features, local_features, params)
    assert out.shape == (B, GLOBAL_DIM)
    assert jnp.allclose(out, ref, atol=2e-3, rtol=2e-3), "mismatch vs JAX reference"

    print("KERNEL_OK")
</pallas_src>

<mosaic_0001>
module attributes {stable_mosaic.version = 11 : i64} {
  func.func @fusion_kernel(%arg0: i32, %arg1: memref<8x512xf32, #tpu.memory_space<vmem>>, %arg2: memref<8x2048xf32, #tpu.memory_space<vmem>>, %arg3: memref<2048x512xbf16, #tpu.memory_space<vmem>>, %arg4: memref<1x512xf32, #tpu.memory_space<vmem>>, %arg5: memref<512x512xbf16, #tpu.memory_space<vmem>>, %arg6: memref<512x512xbf16, #tpu.memory_space<vmem>>, %arg7: memref<1x512xf32, #tpu.memory_space<vmem>>, %arg8: memref<1x512xf32, #tpu.memory_space<vmem>>, %arg9: memref<1x1xf32, #tpu.memory_space<smem>>, %arg10: memref<8x512xf32, #tpu.memory_space<vmem>>) attributes {dimension_semantics = [#tpu.dimension_semantics<parallel>], iteration_bounds = array<i64: 1>, scalar_prefetch = 0 : i64, scratch_operands = 0 : i64, tpu.core_type = #tpu.core_type<tc>, window_params = [{transform_indices = @transform_0, window_bounds = array<i64: 8, 512>}, {transform_indices = @transform_1, window_bounds = array<i64: 8, 2048>}, {pipeline_mode = #tpu.pipeline_mode<synchronous>, transform_indices = @transform_2, window_bounds = array<i64: 2048, 512>}, {pipeline_mode = #tpu.pipeline_mode<synchronous>, transform_indices = @transform_3, window_bounds = array<i64: 1, 512>}, {pipeline_mode = #tpu.pipeline_mode<synchronous>, transform_indices = @transform_4, window_bounds = array<i64: 512, 512>}, {pipeline_mode = #tpu.pipeline_mode<synchronous>, transform_indices = @transform_5, window_bounds = array<i64: 512, 512>}, {pipeline_mode = #tpu.pipeline_mode<synchronous>, transform_indices = @transform_6, window_bounds = array<i64: 1, 512>}, {pipeline_mode = #tpu.pipeline_mode<synchronous>, transform_indices = @transform_7, window_bounds = array<i64: 1, 512>}, {transform_indices = @transform_8, window_bounds = array<i64: 1, 1>}, {transform_indices = @transform_9, window_bounds = array<i64: 8, 512>}]} {
    %c0 = arith.constant 0 : index
    %c0_0 = arith.constant 0 : index
    %0 = vector.load %arg2[%c0, %c0_0] : memref<8x2048xf32, #tpu.memory_space<vmem>>, vector<8x2048xf32>
    %1 = arith.truncf %0 : vector<8x2048xf32> to vector<8x2048xbf16>
    %c0_1 = arith.constant 0 : index
    %c0_2 = arith.constant 0 : index
    %2 = vector.load %arg3[%c0_1, %c0_2] : memref<2048x512xbf16, #tpu.memory_space<vmem>>, vector<2048x512xbf16>
    %cst = arith.constant dense<0.000000e+00> : vector<8x512xf32>
    %3 = tpu.matmul %1, %2, %cst {dimension_numbers = #tpu.dot_dimension_numbers<[1], [0], [0], [1], [0, 0, 1, 1], [], []>} : vector<8x2048xbf16>, vector<2048x512xbf16>, vector<8x512xf32> -> vector<8x512xf32>
    %c0_3 = arith.constant 0 : index
    %c0_4 = arith.constant 0 : index
    %4 = vector.load %arg4[%c0_3, %c0_4] : memref<1x512xf32, #tpu.memory_space<vmem>>, vector<1x512xf32>
    %5 = vector.broadcast %4 : vector<1x512xf32> to vector<8x512xf32>
    %6 = arith.addf %3, %5 : vector<8x512xf32>
    %c0_5 = arith.constant 0 : index
    %c0_6 = arith.constant 0 : index
    %7 = vector.load %arg1[%c0_5, %c0_6] : memref<8x512xf32, #tpu.memory_space<vmem>>, vector<8x512xf32>
    %8 = arith.truncf %7 : vector<8x512xf32> to vector<8x512xbf16>
    %c0_7 = arith.constant 0 : index
    %c0_8 = arith.constant 0 : index
    %9 = vector.load %arg5[%c0_7, %c0_8] : memref<512x512xbf16, #tpu.memory_space<vmem>>, vector<512x512xbf16>
    %cst_9 = arith.constant dense<0.000000e+00> : vector<8x512xf32>
    %10 = tpu.matmul %8, %9, %cst_9 {dimension_numbers = #tpu.dot_dimension_numbers<[1], [0], [0], [1], [0, 0, 1, 1], [], []>} : vector<8x512xbf16>, vector<512x512xbf16>, vector<8x512xf32> -> vector<8x512xf32>
    %11 = arith.truncf %6 : vector<8x512xf32> to vector<8x512xbf16>
    %c0_10 = arith.constant 0 : index
    %c0_11 = arith.constant 0 : index
    %12 = vector.load %arg6[%c0_10, %c0_11] : memref<512x512xbf16, #tpu.memory_space<vmem>>, vector<512x512xbf16>
    %cst_12 = arith.constant dense<0.000000e+00> : vector<8x512xf32>
    %13 = tpu.matmul %11, %12, %cst_12 {dimension_numbers = #tpu.dot_dimension_numbers<[1], [0], [0], [1], [0, 0, 1, 1], [], []>} : vector<8x512xbf16>, vector<512x512xbf16>, vector<8x512xf32> -> vector<8x512xf32>
    %14 = arith.addf %10, %13 : vector<8x512xf32>
    %c0_13 = arith.constant 0 : index
    %c0_14 = arith.constant 0 : index
    %15 = vector.load %arg7[%c0_13, %c0_14] : memref<1x512xf32, #tpu.memory_space<vmem>>, vector<1x512xf32>
    %16 = vector.broadcast %15 : vector<1x512xf32> to vector<8x512xf32>
    %17 = arith.addf %14, %16 : vector<8x512xf32>
    %cst_15 = arith.constant 0.000000e+00 : f32
    %18 = vector.broadcast %cst_15 : f32 to vector<8x512xf32>
    %19 = arith.maximumf %17, %18 : vector<8x512xf32>
    %c0_16 = arith.constant 0 : index
    %c0_17 = arith.constant 0 : index
    %20 = vector.load %arg8[%c0_16, %c0_17] : memref<1x512xf32, #tpu.memory_space<vmem>>, vector<1x512xf32>
    %21 = vector.broadcast %20 : vector<1x512xf32> to vector<8x512xf32>
    %22 = arith.mulf %19, %21 : vector<8x512xf32>
    %cst_18 = arith.constant dense<0.000000e+00> : vector<8xf32>
    %23 = vector.multi_reduction <add>, %22, %cst_18 [1] : vector<8x512xf32> to vector<8xf32>
    %24 = vector.shape_cast %23 : vector<8xf32> to vector<8x1xf32>
    %c0_19 = arith.constant 0 : index
    %c0_20 = arith.constant 0 : index
    %25 = memref.load %arg9[%c0_19, %c0_20] : memref<1x1xf32, #tpu.memory_space<smem>>
    %26 = vector.broadcast %25 : f32 to vector<8x1xf32>
    %27 = arith.addf %24, %26 : vector<8x1xf32>
    %28 = arith.negf %27 : vector<8x1xf32>
    %29 = math.exp %28 : vector<8x1xf32>
    %cst_21 = arith.constant 1.000000e+00 : f32
    %30 = vector.broadcast %cst_21 : f32 to vector<8x1xf32>
    %31 = arith.addf %30, %29 : vector<8x1xf32>
    %32 = arith.divf %30, %31 : vector<8x1xf32>
    %33 = arith.subf %7, %6 : vector<8x512xf32>
    %34 = vector.broadcast %32 : vector<8x1xf32> to vector<8x512xf32>
    %35 = arith.mulf %34, %33 : vector<8x512xf32>
    %36 = arith.addf %6, %35 : vector<8x512xf32>
    %c0_22 = arith.constant 0 : index
    %c0_23 = arith.constant 0 : index
    %37 = vector.load %arg10[%c0_22, %c0_23] : memref<8x512xf32, #tpu.memory_space<vmem>>, vector<8x512xf32>
    tpu.vector_store %arg10[%c0_22, %c0_23], %36 {strides = array<i32>} : memref<8x512xf32, #tpu.memory_space<vmem>>, vector<8x512xf32>,
    return
  }
  func.func @transform_0(%arg0: i32) -> (i32, i32) {
    %c0_i32 = arith.constant 0 : i32
    %c0_i32_0 = arith.constant 0 : i32
    return %arg0, %c0_i32 : i32, i32
  }
  func.func @transform_1(%arg0: i32) -> (i32, i32) {
    %c0_i32 = arith.constant 0 : i32
    %c0_i32_0 = arith.constant 0 : i32
    return %arg0, %c0_i32 : i32, i32
  }
  func.func @transform_2(%arg0: i32) -> (i32, i32) {
    %c0_i32 = arith.constant 0 : i32
    %c0_i32_0 = arith.constant 0 : i32
    %c0_i32_1 = arith.constant 0 : i32
    return %c0_i32, %c0_i32_0 : i32, i32
  }
  func.func @transform_3(%arg0: i32) -> (i32, i32) {
    %c0_i32 = arith.constant 0 : i32
    %c0_i32_0 = arith.constant 0 : i32
    %c0_i32_1 = arith.constant 0 : i32
    return %c0_i32, %c0_i32_0 : i32, i32
  }
  func.func @transform_4(%arg0: i32) -> (i32, i32) {
    %c0_i32 = arith.constant 0 : i32
    %c0_i32_0 = arith.constant 0 : i32
    %c0_i32_1 = arith.constant 0 : i32
    return %c0_i32, %c0_i32_0 : i32, i32
  }
  func.func @transform_5(%arg0: i32) -> (i32, i32) {
    %c0_i32 = arith.constant 0 : i32
    %c0_i32_0 = arith.constant 0 : i32
    %c0_i32_1 = arith.constant 0 : i32
    return %c0_i32, %c0_i32_0 : i32, i32
  }
  func.func @transform_6(%arg0: i32) -> (i32, i32) {
    %c0_i32 = arith.constant 0 : i32
    %c0_i32_0 = arith.constant 0 : i32
    %c0_i32_1 = arith.constant 0 : i32
    return %c0_i32, %c0_i32_0 : i32, i32
  }
  func.func @transform_7(%arg0: i32) -> (i32, i32) {
    %c0_i32 = arith.constant 0 : i32
    %c0_i32_0 = arith.constant 0 : i32
    %c0_i32_1 = arith.constant 0 : i32
    return %c0_i32, %c0_i32_0 : i32, i32
  }
  func.func @transform_8(%arg0: i32) -> (i32, i32) {
    %c0_i32 = arith.constant 0 : i32
    %c0_i32_0 = arith.constant 0 : i32
    %c0_i32_1 = arith.constant 0 : i32
    return %c0_i32, %c0_i32_0 : i32, i32
  }
  func.func @transform_9(%arg0: i32) -> (i32, i32) {
    %c0_i32 = arith.constant 0 : i32
    %c0_i32_0 = arith.constant 0 : i32
    return %arg0, %c0_i32 : i32, i32
  }
}

</mosaic_0001>

<bundles_post_ra>
// kernel: tpu_custom_call.1
= control target key start
LH: loop header
LB: loop body
LE: loop exit
PB: predicated region body
PF: predicated region fallthrough
CT: control target
= control target key end

     0   :  { %15 = vsyncpa [#allocation4], 0  ;;  %s10596_s0 = inlined_call_operand.hbm [shape: f32[8,512], index: 0, kind: input, shape index: {}]   ;;  %s10597_s1 = inlined_call_operand.hbm [shape: f32[8,2048], index: 1, kind: input, shape index: {}]   ;;  %s10598_s2 = inlined_call_operand.hbm [shape: bf16[2048,512], index: 2, kind: input, shape index: {}]   ;;  %s10599_s3 = inlined_call_operand.hbm [shape: f32[1,512], index: 3, kind: input, shape index: {}]   ;;  %s10600_s4 = inlined_call_operand.hbm [shape: bf16[512,512], index: 4, kind: input, shape index: {}]   ;;  %s10601_s5 = inlined_call_operand.hbm [shape: bf16[512,512], index: 5, kind: input, shape index: {}]   ;;  %s10602_s6 = inlined_call_operand.hbm [shape: f32[1,512], index: 6, kind: input, shape index: {}]   ;;  %s10603_s7 = inlined_call_operand.hbm [shape: f32[1,512], index: 7, kind: input, shape index: {}]   ;;  %s10604_s8 = inlined_call_operand.<no memory space> [shape: f32[1,1], index: 8, kind: input, shape index: {}]   ;;  %s10605_s9 = inlined_call_operand.hbm [shape: f32[8,512], index: 9, kind: output, shape index: {}]  }
   0x1   :  { %16 = vsyncpa [#allocation7], 0 }
   0x2   :  { %17 = vsyncpa [#allocation10], 0 }
   0x3   :  { %18 = vsyncpa [#allocation13], 0 }
   0x4   :  { %19 = vsyncpa [#allocation16], 0  ;;  %s37_s11 = sshll.u32 %s10597_s1, 4  ;;  %s38_s11 = int_to_ptr.hbm [resolvable:$true] %s37_s11 }
   0x5   :  { %20 = vsyncpa [#allocation5], 0  ;;  %s10245_s12 = smov [#allocation6]   ;;  %s61_s16 = sshll.u32 %s10599_s3, 4  ;;  %s62_s16 = int_to_ptr.hbm [resolvable:$true] %s61_s16 }
   0x6   :  { %s39_s13 = sshll.u32 %s10245_s12, 4  ;;  %s10246_s17 = smov [#allocation9]   ;;  %s40_s13 = int_to_ptr.vmem [resolvable:$true] %s39_s13 }
   0x7   :  { %42 = dma.hbm_to_vmem [thread:$0]  %s38_s11, 2048, %s40_s13, [#allocation7]  }
   0x8   :  { %s63_s18 = sshll.u32 %s10246_s17, 4  ;;  %s84_s21 = sshll.u32 %s10601_s5, 4  ;;  %s64_s18 = int_to_ptr.vmem [resolvable:$true] %s63_s18  ;;  %s85_s21 = int_to_ptr.hbm [resolvable:$true] %s84_s21 }
   0x9   :  { %66 = dma.hbm_to_vmem [thread:$0]  %s62_s16, 64, %s64_s18, [#allocation10]  }
   0xa   :  { %s10247_s1 = smov [#allocation12]   ;;  %s26_s25 = sshll.u32 %s10596_s0, 4  ;;  %s27_s25 = int_to_ptr.hbm [resolvable:$true] %s26_s25 }
   0xb   :  { %s86_s22 = sshll.u32 %s10247_s1, 4  ;;  %s10248_s26 = smov 256   ;;  %s87_s22 = int_to_ptr.vmem [resolvable:$true] %s86_s22 }
   0xc   :  { %s10249_s3 = smov 16   ;;  %s10250_s27 = smov [#allocation3]  }
   0xd   :  { %92 = dma.hbm_to_vmem [thread:$0]  %s85_s21, 16384, %s87_s22, [#allocation13], %s10248_s26, %s10248_s26, %s10249_s3  }
   0xe   :  { %s28_s28 = sshll.u32 %s10250_s27, 4  ;;  %s47_s10 = sshll.u32 %s10598_s2, 4  ;;  %s29_s28 = int_to_ptr.vmem [resolvable:$true] %s28_s28  ;;  %s48_s10 = int_to_ptr.hbm [resolvable:$true] %s47_s10 }
   0xf   :  { %31 = dma.hbm_to_vmem [thread:$0]  %s27_s25, 512, %s29_s28, [#allocation4]  }
  0x10   :  { %s71_s12 = sshll.u32 %s10600_s4, 4  ;;  %s10251_s13 = smov [#allocation8]   ;;  %s72_s12 = int_to_ptr.hbm [resolvable:$true] %s71_s12 }
  0x11   :  { %s49_s14 = sshll.u32 %s10251_s13, 4  ;;  %s10252_s0 = smov [#allocation11]   ;;  %s50_s14 = int_to_ptr.vmem [resolvable:$true] %s49_s14 }
  0x12   :  { %55 = dma.hbm_to_vmem [thread:$0]  %s48_s10, 65536, %s50_s14, [#allocation7], %s10248_s26, %s10248_s26, %s10249_s3  }
  0x13   :  { %s73_s15 = sshll.u32 %s10252_s0, 4  ;;  %s98_s18 = sshll.u32 %s10602_s6, 4  ;;  %s74_s15 = int_to_ptr.vmem [resolvable:$true] %s73_s15  ;;  %s99_s18 = int_to_ptr.hbm [resolvable:$true] %s98_s18 }
  0x14   :  { %79 = dma.hbm_to_vmem [thread:$0]  %s72_s12, 16384, %s74_s15, [#allocation10], %s10248_s26, %s10248_s26, %s10249_s3  }
  0x15   :  { %s109_s20 = sshll.u32 %s10603_s7, 4  ;;  %s10253_s21 = smov [#allocation14]   ;;  %s110_s20 = int_to_ptr.hbm [resolvable:$true] %s109_s20 }
  0x16   :  { %s100_s4 = sshll.u32 %s10253_s21, 4  ;;  %s10254_s1 = smov [#allocation15]   ;;  %s101_s4 = int_to_ptr.vmem [resolvable:$true] %s100_s4 }
  0x17   :  { %103 = dma.hbm_to_vmem [thread:$0]  %s99_s18, 64, %s101_s4, [#allocation13]  }
  0x18   :  { %s111_s22 = sshll.u32 %s10254_s1, 4  ;;  %s112_s22 = int_to_ptr.vmem [resolvable:$true] %s111_s22 }
  0x19   :  { %114 = dma.hbm_to_vmem [thread:$0]  %s110_s20, 64, %s112_s22, [#allocation16]  }
  0x1a   :  { %10233 = dma.done.wait [#allocation4], 512  }
  0x1b   :  { %10234 = vsyncadd [#allocation4], 4294966784 }
  0x1c   :  { %10235 = dma.done.wait [#allocation7], 67584  }
  0x1d   :  { %10236 = vsyncadd [#allocation7], 4294899712 }
  0x1e   :  { %10237 = dma.done.wait [#allocation10], 16448  }
  0x1f   :  { %10238 = vsyncadd [#allocation10], 4294950848 }
  0x20   :  { %10239 = dma.done.wait [#allocation13], 16448  }
  0x21   :  { %10240 = vsyncadd [#allocation13], 4294950848 }
  0x22   :  { %10241 = dma.done.wait [#allocation16], 64  }
  0x23   :  { %10242 = vsyncadd [#allocation16], 4294967232  ;;  %v6269_v0 = vld [vmem:[#allocation8 + $0xe0] sm:$0xf]  ;;  %v9258_v1 = vld [vmem:[#allocation8 + $0xec] sm:$0xf0] }
  0x24   :  { %v6397_v2 = vld [vmem:[#allocation8 + $0x1e0] sm:$0xf]  ;;  %v6270_v3 = vor.u32 %v9258_v1, %v6269_v0  ;;  %v9290_v4 = vld [vmem:[#allocation8 + $0x1ec] sm:$0xf0]  ;;  %s6141_s26 = sshll.u32 %s10605_s9, 4  ;;  %s6142_s26 = int_to_ptr.hbm [resolvable:$true] %s6141_s26 }
  0x25   :  { %v6525_v5 = vld [vmem:[#allocation8 + $0x2e0] sm:$0xf]  ;;  %v9322_v6 = vld [vmem:[#allocation8 + $0x2ec] sm:$0xf0]  ;;  %v6398_v7 = vor.u32 %v9290_v4, %v6397_v2 }
  0x26   :  { %v6526_v8 = vor.u32 %v9322_v6, %v6525_v5  ;;  %v6653_v9 = vld [vmem:[#allocation8 + $0x3e0] sm:$0xf]  ;;  %v9354_v10 = vld [vmem:[#allocation8 + $0x3ec] sm:$0xf0]  ;;  %3263 = vmatpush.bf16.msra.mxu0 %v6270_v3 }
  0x27   :  { %v6253_v11 = vld [vmem:[#allocation8 + $0xc0] sm:$0xf]  ;;  %v6654_v12 = vor.u32 %v9354_v10, %v6653_v9  ;;  %v9254_v13 = vld [vmem:[#allocation8 + $0xcc] sm:$0xf0]  ;;  %3276 = vmatpush.bf16.msra.mxu1 %v6398_v7 }
  0x28   :  { %v6381_v14 = vld [vmem:[#allocation8 + $0x1c0] sm:$0xf]  ;;  %v9286_v15 = vld [vmem:[#allocation8 + $0x1cc] sm:$0xf0]  ;;  %3289 = vmatpush.bf16.msra.mxu2 %v6526_v8  ;;  %v6254_v16 = vor.u32 %v9254_v13, %v6253_v11 }
  0x29   :  { %v6382_v17 = vor.u32 %v9286_v15, %v6381_v14  ;;  %v6509_v18 = vld [vmem:[#allocation8 + $0x2c0] sm:$0xf]  ;;  %v9318_v19 = vld [vmem:[#allocation8 + $0x2cc] sm:$0xf0]  ;;  %3302 = vmatpush.bf16.msra.mxu3 %v6654_v12 }
  0x2a   :  { %v6637_v20 = vld [vmem:[#allocation8 + $0x3c0] sm:$0xf]  ;;  %v6510_v21 = vor.u32 %v9318_v19, %v6509_v18  ;;  %v9350_v22 = vld [vmem:[#allocation8 + $0x3cc] sm:$0xf0]  ;;  %3264 = vmatpush.bf16.msra.mxu0 %v6254_v16 }
  0x2b   :  { %v6237_v23 = vld [vmem:[#allocation8 + $0xa0] sm:$0xf]  ;;  %v9250_v24 = vld [vmem:[#allocation8 + $0xac] sm:$0xf0]  ;;  %v6638_v25 = vor.u32 %v9350_v22, %v6637_v20  ;;  %3277 = vmatpush.bf16.msra.mxu1 %v6382_v17 }
  0x2c   :  { %v6365_v26 = vld [vmem:[#allocation8 + $0x1a0] sm:$0xf]  ;;  %v9282_v27 = vld [vmem:[#allocation8 + $0x1ac] sm:$0xf0]  ;;  %v6238_v29 = vor.u32 %v9250_v24, %v6237_v23  ;;  %3290 = vmatpush.bf16.msra.mxu2 %v6510_v21 }
  0x2d   :  { %v6493_v28 = vld [vmem:[#allocation8 + $0x2a0] sm:$0xf]  ;;  %v9314_v30 = vld [vmem:[#allocation8 + $0x2ac] sm:$0xf0]  ;;  %v6366_v33 = vor.u32 %v9282_v27, %v6365_v26  ;;  %3303 = vmatpush.bf16.msra.mxu3 %v6638_v25 }
  0x2e   :  { %v6621_v31 = vld [vmem:[#allocation8 + $0x3a0] sm:$0xf]  ;;  %v9346_v32 = vld [vmem:[#allocation8 + $0x3ac] sm:$0xf0]  ;;  %v6494_v34 = vor.u32 %v9314_v30, %v6493_v28  ;;  %3265 = vmatpush.bf16.msra.mxu0 %v6238_v29 }
  0x2f   :  { %v6221_v35 = vld [vmem:[#allocation8 + $0x80] sm:$0xf]  ;;  %v9246_v36 = vld [vmem:[#allocation8 + $0x8c] sm:$0xf0]  ;;  %v6622_v38 = vor.u32 %v9346_v32, %v6621_v31  ;;  %3278 = vmatpush.bf16.msra.mxu1 %v6366_v33 }
  0x30   :  { %v6349_v37 = vld [vmem:[#allocation8 + $0x180] sm:$0xf]  ;;  %v9278_v39 = vld [vmem:[#allocation8 + $0x18c] sm:$0xf0]  ;;  %v6222_v44 = vor.u32 %v9246_v36, %v6221_v35  ;;  %3291 = vmatpush.bf16.msra.mxu2 %v6494_v34 }
  0x31   :  { %v6477_v40 = vld [vmem:[#allocation8 + $0x280] sm:$0xf]  ;;  %v9310_v41 = vld [vmem:[#allocation8 + $0x28c] sm:$0xf0]  ;;  %v6350_v45 = vor.u32 %v9278_v39, %v6349_v37  ;;  %3304 = vmatpush.bf16.msra.mxu3 %v6622_v38 }
  0x32   :  { %v6605_v42 = vld [vmem:[#allocation8 + $0x380] sm:$0xf]  ;;  %v9342_v43 = vld [vmem:[#allocation8 + $0x38c] sm:$0xf0]  ;;  %v6478_v46 = vor.u32 %v9310_v41, %v6477_v40  ;;  %3266 = vmatpush.bf16.msra.mxu0 %v6222_v44 }
  0x33   :  { %v6205_v47 = vld [vmem:[#allocation8 + $0x60] sm:$0xf]  ;;  %v9242_v48 = vld [vmem:[#allocation8 + $0x6c] sm:$0xf0]  ;;  %v6606_v50 = vor.u32 %v9342_v43, %v6605_v42  ;;  %3279 = vmatpush.bf16.msra.mxu1 %v6350_v45 }
  0x34   :  { %v6333_v49 = vld [vmem:[#allocation8 + $0x160] sm:$0xf]  ;;  %v9274_v51 = vld [vmem:[#allocation8 + $0x16c] sm:$0xf0]  ;;  %v6206_v56 = vor.u32 %v9242_v48, %v6205_v47  ;;  %3292 = vmatpush.bf16.msra.mxu2 %v6478_v46 }
  0x35   :  { %v6461_v52 = vld [vmem:[#allocation8 + $0x260] sm:$0xf]  ;;  %v9306_v53 = vld [vmem:[#allocation8 + $0x26c] sm:$0xf0]  ;;  %v6334_v57 = vor.u32 %v9274_v51, %v6333_v49  ;;  %3305 = vmatpush.bf16.msra.mxu3 %v6606_v50 }
  0x36   :  { %v6589_v54 = vld [vmem:[#allocation8 + $0x360] sm:$0xf]  ;;  %v9338_v55 = vld [vmem:[#allocation8 + $0x36c] sm:$0xf0]  ;;  %v6462_v58 = vor.u32 %v9306_v53, %v6461_v52  ;;  %3267 = vmatpush.bf16.msra.mxu0 %v6206_v56 }
  0x37   :  { %v6189_v59 = vld [vmem:[#allocation8 + $0x40] sm:$0xf]  ;;  %v9238_v60 = vld [vmem:[#allocation8 + $0x4c] sm:$0xf0]  ;;  %v6590_v62 = vor.u32 %v9338_v55, %v6589_v54  ;;  %3280 = vmatpush.bf16.msra.mxu1 %v6334_v57 }
  0x38   :  { %v6317_v61 = vld [vmem:[#allocation8 + $0x140] sm:$0xf]  ;;  %v9270_v63 = vld [vmem:[#allocation8 + $0x14c] sm:$0xf0]  ;;  %v6190_v4 = vor.u32 %v9238_v60, %v6189_v59  ;;  %3293 = vmatpush.bf16.msra.mxu2 %v6462_v58 }
  0x39   :  { %v6445_v0 = vld [vmem:[#allocation8 + $0x240] sm:$0xf]  ;;  %v9302_v1 = vld [vmem:[#allocation8 + $0x24c] sm:$0xf0]  ;;  %v6318_v5 = vor.u32 %v9270_v63, %v6317_v61  ;;  %3306 = vmatpush.bf16.msra.mxu3 %v6590_v62 }
  0x3a   :  { %v6573_v2 = vld [vmem:[#allocation8 + $0x340] sm:$0xf]  ;;  %v9334_v3 = vld [vmem:[#allocation8 + $0x34c] sm:$0xf0]  ;;  %v6446_v6 = vor.u32 %v9302_v1, %v6445_v0  ;;  %3268 = vmatpush.bf16.msra.mxu0 %v6190_v4 }
  0x3b   :  { %v6173_v7 = vld [vmem:[#allocation8 + $0x20] sm:$0xf]  ;;  %v9234_v8 = vld [vmem:[#allocation8 + $0x2c] sm:$0xf0]  ;;  %v6574_v10 = vor.u32 %v9334_v3, %v6573_v2  ;;  %3281 = vmatpush.bf16.msra.mxu1 %v6318_v5 }
  0x3c   :  { %v6301_v9 = vld [vmem:[#allocation8 + $0x120] sm:$0xf]  ;;  %v9266_v11 = vld [vmem:[#allocation8 + $0x12c] sm:$0xf0]  ;;  %v6174_v16 = vor.u32 %v9234_v8, %v6173_v7  ;;  %3294 = vmatpush.bf16.msra.mxu2 %v6446_v6 }
  0x3d   :  { %v6429_v12 = vld [vmem:[#allocation8 + $0x220] sm:$0xf]  ;;  %v9298_v13 = vld [vmem:[#allocation8 + $0x22c] sm:$0xf0]  ;;  %v6302_v19 = vor.u32 %v9266_v11, %v6301_v9  ;;  %3307 = vmatpush.bf16.msra.mxu3 %v6574_v10  ;;  %v152_v10 = vld [vmem:[#allocation6 + $0x18] sm:$0xff] }
  0x3e   :  { %v6557_v14 = vld [vmem:[#allocation8 + $0x320] sm:$0xf]  ;;  %v9330_v15 = vld [vmem:[#allocation8 + $0x32c] sm:$0xf0]  ;;  %v6430_v20 = vor.u32 %v9298_v13, %v6429_v12  ;;  %3269 = vmatpush.bf16.msra.mxu0 %v6174_v16 }
  0x3f   :  { %v6157_v17 = vld [vmem:[#allocation8] sm:$0xf]  ;;  %v9230_v18 = vld [vmem:[#allocation8 + $0xc] sm:$0xf0]  ;;  %v6558_v24 = vor.u32 %v9330_v15, %v6557_v14  ;;  %3282 = vmatpush.bf16.msra.mxu1 %v6302_v19  ;;  %v10334_v15 = vpack.c.bf16 %v152_v10, %v152_v10  ;;  %v150_v19 = vld [vmem:[#allocation6 + $0x8] sm:$0xff] }
  0x40   :  { %v6285_v21 = vld [vmem:[#allocation8 + $0x100] sm:$0xf]  ;;  %v9262_v22 = vld [vmem:[#allocation8 + $0x10c] sm:$0xf0]  ;;  %v6158_v31 = vor.u32 %v9230_v18, %v6157_v17  ;;  %3295 = vmatpush.bf16.msra.mxu2 %v6430_v20 }
  0x41   :  { %v6413_v23 = vld [vmem:[#allocation8 + $0x200] sm:$0xf]  ;;  %v9294_v25 = vld [vmem:[#allocation8 + $0x20c] sm:$0xf0]  ;;  %v6286_v35 = vor.u32 %v9262_v22, %v6285_v21  ;;  %3308 = vmatpush.bf16.msra.mxu3 %v6558_v24 }
  0x42   :  { %v6541_v26 = vld [vmem:[#allocation8 + $0x300] sm:$0xf]  ;;  %v9326_v27 = vld [vmem:[#allocation8 + $0x30c] sm:$0xf0]  ;;  %v6414_v36 = vor.u32 %v9294_v25, %v6413_v23  ;;  %3270 = vmatpush.bf16.msra.mxu0 %v6158_v31  ;;  %v10339_v25 = vpack.c.bf16 %v150_v19, %v150_v19 }
  0x43   :  { %v6781_v28 = vld [vmem:[#allocation8 + $0x4e0] sm:$0xf]  ;;  %v9386_v29 = vld [vmem:[#allocation8 + $0x4ec] sm:$0xf0]  ;;  %v6542_v39 = vor.u32 %v9326_v27, %v6541_v26  ;;  %3283 = vmatpush.bf16.msra.mxu1 %v6286_v35 }
  0x44   :  { %v6909_v30 = vld [vmem:[#allocation8 + $0x5e0] sm:$0xf]  ;;  %v9418_v32 = vld [vmem:[#allocation8 + $0x5ec] sm:$0xf0]  ;;  %v6782_v40 = vor.u32 %v9386_v29, %v6781_v28  ;;  %3296 = vmatpush.bf16.msra.mxu2 %v6414_v36 }
  0x45   :  { %v7037_v33 = vld [vmem:[#allocation8 + $0x6e0] sm:$0xf]  ;;  %v9450_v34 = vld [vmem:[#allocation8 + $0x6ec] sm:$0xf0]  ;;  %v6910_v41 = vor.u32 %v9418_v32, %v6909_v30  ;;  %3309 = vmatpush.bf16.msra.mxu3 %v6542_v39 }
  0x46   :  { %v7165_v37 = vld [vmem:[#allocation8 + $0x7e0] sm:$0xf]  ;;  %v9482_v38 = vld [vmem:[#allocation8 + $0x7ec] sm:$0xf0]  ;;  %v7038_v42 = vor.u32 %v9450_v34, %v7037_v33  ;;  %3315 = vmatpush.bf16.msrb.mxu0 %v6782_v40  ;;  %3284 = vmatmul.bf16.vlgmr.msra.gmra.mxu1 %v10339_v25 }
  0x47   :  { %v6765_v43 = vld [vmem:[#allocation8 + $0x4c0] sm:$0xf]  ;;  %v9382_v44 = vld [vmem:[#allocation8 + $0x4cc] sm:$0xf0]  ;;  %v7166_v46 = vor.u32 %v9482_v38, %v7165_v37  ;;  %3328 = vmatpush.bf16.msrb.mxu1 %v6910_v41 }
  0x48   :  { %v6893_v45 = vld [vmem:[#allocation8 + $0x5c0] sm:$0xf]  ;;  %v9414_v47 = vld [vmem:[#allocation8 + $0x5cc] sm:$0xf0]  ;;  %v6766_v52 = vor.u32 %v9382_v44, %v6765_v43  ;;  %3341 = vmatpush.bf16.msrb.mxu2 %v7038_v42  ;;  %3310 = vmatmul.bf16.vlgmr.msra.gmra.mxu3 %v10334_v15 }
  0x49   :  { %v7021_v48 = vld [vmem:[#allocation8 + $0x6c0] sm:$0xf]  ;;  %v9446_v49 = vld [vmem:[#allocation8 + $0x6cc] sm:$0xf0]  ;;  %v6894_v54 = vor.u32 %v9414_v47, %v6893_v45  ;;  %3354 = vmatpush.bf16.msrb.mxu3 %v7166_v46 }
  0x4a   :  { %v7149_v50 = vld [vmem:[#allocation8 + $0x7c0] sm:$0xf]  ;;  %v9478_v51 = vld [vmem:[#allocation8 + $0x7cc] sm:$0xf0]  ;;  %v7022_v55 = vor.u32 %v9446_v49, %v7021_v48  ;;  %3316 = vmatpush.bf16.msrb.mxu0 %v6766_v52 }
  0x4b   :  { %v6749_v53 = vld [vmem:[#allocation8 + $0x4a0] sm:$0xf]  ;;  %v9378_v56 = vld [vmem:[#allocation8 + $0x4ac] sm:$0xf0]  ;;  %v7150_v59 = vor.u32 %v9478_v51, %v7149_v50  ;;  %3329 = vmatpush.bf16.msrb.mxu1 %v6894_v54 }
  0x4c   :  { %v6877_v57 = vld [vmem:[#allocation8 + $0x5a0] sm:$0xf]  ;;  %v9410_v58 = vld [vmem:[#allocation8 + $0x5ac] sm:$0xf0]  ;;  %v6750_v0 = vor.u32 %v9378_v56, %v6749_v53  ;;  %3342 = vmatpush.bf16.msrb.mxu2 %v7022_v55 }
  0x4d   :  { %v7005_v60 = vld [vmem:[#allocation8 + $0x6a0] sm:$0xf]  ;;  %v9442_v61 = vld [vmem:[#allocation8 + $0x6ac] sm:$0xf0]  ;;  %v6878_v1 = vor.u32 %v9410_v58, %v6877_v57  ;;  %3355 = vmatpush.bf16.msrb.mxu3 %v7150_v59 }
  0x4e   :  { %v7133_v62 = vld [vmem:[#allocation8 + $0x7a0] sm:$0xf]  ;;  %v9474_v63 = vld [vmem:[#allocation8 + $0x7ac] sm:$0xf0]  ;;  %v7006_v5 = vor.u32 %v9442_v61, %v7005_v60  ;;  %3317 = vmatpush.bf16.msrb.mxu0 %v6750_v0 }
  0x4f   :  { %v6733_v2 = vld [vmem:[#allocation8 + $0x480] sm:$0xf]  ;;  %v151_v3 = vld [vmem:[#allocation6 + $0x10] sm:$0xff]  ;;  %v7134_v11 = vor.u32 %v9474_v63, %v7133_v62  ;;  %3330 = vmatpush.bf16.msrb.mxu1 %v6878_v1 }
  0x50   :  { %v149_v4 = vld [vmem:[#allocation6] sm:$0xff]  ;;  %v9374_v6 = vld [vmem:[#allocation8 + $0x48c] sm:$0xf0]  ;;  %v10330_v8 = vpack.c.bf16 %v151_v3, %v151_v3  ;;  %3343 = vmatpush.bf16.msrb.mxu2 %v7006_v5 }
  0x51   :  { %v6861_v7 = vld [vmem:[#allocation8 + $0x580] sm:$0xf]  ;;  %v10332_v9 = vpack.c.bf16 %v149_v4, %v149_v4  ;;  %v9406_v12 = vld [vmem:[#allocation8 + $0x58c] sm:$0xf0]  ;;  %v6734_v18 = vor.u32 %v9374_v6, %v6733_v2  ;;  %3356 = vmatpush.bf16.msrb.mxu3 %v7134_v11 }
  0x52   :  { %v6989_v13 = vld [vmem:[#allocation8 + $0x680] sm:$0xf]  ;;  %v9438_v14 = vld [vmem:[#allocation8 + $0x68c] sm:$0xf0]  ;;  %3297 = vmatmul.bf16.vlgmr.msra.gmra.mxu2 %v10330_v8  ;;  %v6862_v20 = vor.u32 %v9406_v12, %v6861_v7 }
  0x53   :  { %v7117_v16 = vld [vmem:[#allocation8 + $0x780] sm:$0xf]  ;;  %v9470_v17 = vld [vmem:[#allocation8 + $0x78c] sm:$0xf0]  ;;  %3271 = vmatmul.bf16.vlgmr.msra.gmra.mxu0 %v10332_v9  ;;  %v6990_v21 = vor.u32 %v9438_v14, %v6989_v13 }
  0x54   :  { %v6717_v22 = vld [vmem:[#allocation8 + $0x460] sm:$0xf]  ;;  %v9370_v23 = vld [vmem:[#allocation8 + $0x46c] sm:$0xf0]  ;;  %v7118_v26 = vor.u32 %v9470_v17, %v7117_v16  ;;  %3318 = vmatpush.bf16.msrb.mxu0 %v6734_v18  ;;  %3331 = vmatpush.bf16.msrb.mxu1 %v6862_v20 }
  0x55   :  { %v6845_v24 = vld [vmem:[#allocation8 + $0x560] sm:$0xf]  ;;  %v9402_v27 = vld [vmem:[#allocation8 + $0x56c] sm:$0xf0]  ;;  %v6718_v32 = vor.u32 %v9370_v23, %v6717_v22  ;;  %3344 = vmatpush.bf16.msrb.mxu2 %v6990_v21  ;;  %v156_v23 = vld [vmem:[#allocation6 + $0x38] sm:$0xff] }
  0x56   :  { %v6973_v28 = vld [vmem:[#allocation8 + $0x660] sm:$0xf]  ;;  %v9434_v29 = vld [vmem:[#allocation8 + $0x66c] sm:$0xf0]  ;;  %v6846_v33 = vor.u32 %v9402_v27, %v6845_v24  ;;  %3357 = vmatpush.bf16.msrb.mxu3 %v7118_v26 }
  0x57   :  { %v7101_v30 = vld [vmem:[#allocation8 + $0x760] sm:$0xf]  ;;  %v9466_v31 = vld [vmem:[#allocation8 + $0x76c] sm:$0xf0]  ;;  %v6974_v34 = vor.u32 %v9434_v29, %v6973_v28  ;;  %v154_v29 = vld [vmem:[#allocation6 + $0x28] sm:$0xff] }
  0x58   :  { %v6701_v35 = vld [vmem:[#allocation8 + $0x440] sm:$0xf]  ;;  %v9366_v36 = vld [vmem:[#allocation8 + $0x44c] sm:$0xf0]  ;;  %v7102_v38 = vor.u32 %v9466_v31, %v7101_v30  ;;  %3319 = vmatpush.bf16.msrb.mxu0 %v6718_v32  ;;  %3332 = vmatpush.bf16.msrb.mxu1 %v6846_v33 }
  0x59   :  { %v6829_v37 = vld [vmem:[#allocation8 + $0x540] sm:$0xf]  ;;  %v9398_v39 = vld [vmem:[#allocation8 + $0x54c] sm:$0xf0]  ;;  %v6702_v44 = vor.u32 %v9366_v36, %v6701_v35  ;;  %3345 = vmatpush.bf16.msrb.mxu2 %v6974_v34 }
  0x5a   :  { %v6957_v40 = vld [vmem:[#allocation8 + $0x640] sm:$0xf]  ;;  %v9430_v41 = vld [vmem:[#allocation8 + $0x64c] sm:$0xf0]  ;;  %v6830_v45 = vor.u32 %v9398_v39, %v6829_v37  ;;  %3358 = vmatpush.bf16.msrb.mxu3 %v7102_v38  ;;  %v10346_v38 = vpack.c.bf16 %v156_v23, %v156_v23 }
  0x5b   :  { %v7085_v42 = vld [vmem:[#allocation8 + $0x740] sm:$0xf]  ;;  %v9462_v43 = vld [vmem:[#allocation8 + $0x74c] sm:$0xf0]  ;;  %v6958_v46 = vor.u32 %v9430_v41, %v6957_v40  ;;  %v10348_v40 = vpack.c.bf16 %v154_v29, %v154_v29 }
  0x5c   :  { %v6685_v47 = vld [vmem:[#allocation8 + $0x420] sm:$0xf]  ;;  %v9362_v48 = vld [vmem:[#allocation8 + $0x42c] sm:$0xf0]  ;;  %v7086_v50 = vor.u32 %v9462_v43, %v7085_v42  ;;  %3320 = vmatpush.bf16.msrb.mxu0 %v6702_v44  ;;  %3333 = vmatpush.bf16.msrb.mxu1 %v6830_v45 }
  0x5d   :  { %v6813_v49 = vld [vmem:[#allocation8 + $0x520] sm:$0xf]  ;;  %v9394_v51 = vld [vmem:[#allocation8 + $0x52c] sm:$0xf0]  ;;  %v6686_v56 = vor.u32 %v9362_v48, %v6685_v47  ;;  %3346 = vmatpush.bf16.msrb.mxu2 %v6958_v46 }
  0x5e   :  { %v6941_v52 = vld [vmem:[#allocation8 + $0x620] sm:$0xf]  ;;  %v9426_v53 = vld [vmem:[#allocation8 + $0x62c] sm:$0xf0]  ;;  %v6814_v59 = vor.u32 %v9394_v51, %v6813_v49  ;;  %3359 = vmatpush.bf16.msrb.mxu3 %v7086_v50 }
  0x5f   :  { %v7069_v54 = vld [vmem:[#allocation8 + $0x720] sm:$0xf]  ;;  %v9458_v55 = vld [vmem:[#allocation8 + $0x72c] sm:$0xf0]  ;;  %v6942_v60 = vor.u32 %v9426_v53, %v6941_v52 }
  0x60   :  { %v6669_v57 = vld [vmem:[#allocation8 + $0x400] sm:$0xf]  ;;  %v9358_v58 = vld [vmem:[#allocation8 + $0x40c] sm:$0xf0]  ;;  %v7070_v0 = vor.u32 %v9458_v55, %v7069_v54  ;;  %3321 = vmatpush.bf16.msrb.mxu0 %v6686_v56  ;;  %3334 = vmatpush.bf16.msrb.mxu1 %v6814_v59 }
  0x61   :  { %v6797_v61 = vld [vmem:[#allocation8 + $0x500] sm:$0xf]  ;;  %v9390_v62 = vld [vmem:[#allocation8 + $0x50c] sm:$0xf0]  ;;  %v6670_v7 = vor.u32 %v9358_v58, %v6669_v57  ;;  %3347 = vmatpush.bf16.msrb.mxu2 %v6942_v60 }
  0x62   :  { %v6925_v63 = vld [vmem:[#allocation8 + $0x600] sm:$0xf]  ;;  %v9422_v1 = vld [vmem:[#allocation8 + $0x60c] sm:$0xf0]  ;;  %v6798_v13 = vor.u32 %v9390_v62, %v6797_v61  ;;  %3360 = vmatpush.bf16.msrb.mxu3 %v7070_v0 }
  0x63   :  { %v7053_v2 = vld [vmem:[#allocation8 + $0x700] sm:$0xf]  ;;  %v9454_v3 = vld [vmem:[#allocation8 + $0x70c] sm:$0xf0]  ;;  %v6926_v14 = vor.u32 %v9422_v1, %v6925_v63 }
  0x64   :  { %v7293_v4 = vld [vmem:[#allocation8 + $0x8e0] sm:$0xf]  ;;  %v9514_v5 = vld [vmem:[#allocation8 + $0x8ec] sm:$0xf0]  ;;  %v7054_v19 = vor.u32 %v9454_v3, %v7053_v2  ;;  %3322 = vmatpush.bf16.msrb.mxu0 %v6670_v7  ;;  %3335 = vmatpush.bf16.msrb.mxu1 %v6798_v13 }
  0x65   :  { %v7421_v6 = vld [vmem:[#allocation8 + $0x9e0] sm:$0xf]  ;;  %v9546_v10 = vld [vmem:[#allocation8 + $0x9ec] sm:$0xf0]  ;;  %v7294_v20 = vor.u32 %v9514_v5, %v7293_v4  ;;  %3348 = vmatpush.bf16.msrb.mxu2 %v6926_v14 }
  0x66   :  { %v7549_v11 = vld [vmem:[#allocation8 + $0xae0] sm:$0xf]  ;;  %v9578_v12 = vld [vmem:[#allocation8 + $0xaec] sm:$0xf0]  ;;  %v7422_v24 = vor.u32 %v9546_v10, %v7421_v6  ;;  %3361 = vmatpush.bf16.msrb.mxu3 %v7054_v19 }
  0x67   :  { %v7677_v16 = vld [vmem:[#allocation8 + $0xbe0] sm:$0xf]  ;;  %v9610_v17 = vld [vmem:[#allocation8 + $0xbec] sm:$0xf0]  ;;  %v7550_v26 = vor.u32 %v9578_v12, %v7549_v11  ;;  %3336 = vmatmul.bf16.vlgmr.msrb.gmra.mxu1 %v10348_v40 }
  0x68   :  { %v155_v18 = vld [vmem:[#allocation6 + $0x30] sm:$0xff]  ;;  %v7277_v21 = vld [vmem:[#allocation8 + $0x8c0] sm:$0xf]  ;;  %v7678_v30 = vor.u32 %v9610_v17, %v7677_v16  ;;  %3367 = vmatpush.bf16.msra.mxu0 %v7294_v20  ;;  %3380 = vmatpush.bf16.msra.mxu1 %v7422_v24 }
  0x69   :  { %v153_v22 = vld [vmem:[#allocation6 + $0x20] sm:$0xff]  ;;  %v9510_v27 = vld [vmem:[#allocation8 + $0x8cc] sm:$0xf0]  ;;  %v10342_v34 = vpack.c.bf16 %v155_v18, %v155_v18  ;;  %3393 = vmatpush.bf16.msra.mxu2 %v7550_v26  ;;  %3362 = vmatmul.bf16.vlgmr.msrb.gmra.mxu3 %v10346_v38 }
  0x6a   :  { %v7405_v28 = vld [vmem:[#allocation8 + $0x9c0] sm:$0xf]  ;;  %v9542_v31 = vld [vmem:[#allocation8 + $0x9cc] sm:$0xf0]  ;;  %v10344_v37 = vpack.c.bf16 %v153_v22, %v153_v22  ;;  %v7278_v39 = vor.u32 %v9510_v27, %v7277_v21  ;;  %3406 = vmatpush.bf16.msra.mxu3 %v7678_v30 }
  0x6b   :  { %v7533_v32 = vld [vmem:[#allocation8 + $0xac0] sm:$0xf]  ;;  %v9574_v33 = vld [vmem:[#allocation8 + $0xacc] sm:$0xf0]  ;;  %v7406_v41 = vor.u32 %v9542_v31, %v7405_v28  ;;  %3349 = vmatmul.bf16.vlgmr.msrb.gmra.mxu2 %v10342_v34 }
  0x6c   :  { %v7661_v35 = vld [vmem:[#allocation8 + $0xbc0] sm:$0xf]  ;;  %v9606_v36 = vld [vmem:[#allocation8 + $0xbcc] sm:$0xf0]  ;;  %v7534_v42 = vor.u32 %v9574_v33, %v7533_v32  ;;  %3323 = vmatmul.bf16.vlgmr.msrb.gmra.mxu0 %v10344_v37 }
  0x6d   :  { %v7261_v43 = vld [vmem:[#allocation8 + $0x8a0] sm:$0xf]  ;;  %v9506_v44 = vld [vmem:[#allocation8 + $0x8ac] sm:$0xf0]  ;;  %v7662_v46 = vor.u32 %v9606_v36, %v7661_v35  ;;  %3368 = vmatpush.bf16.msra.mxu0 %v7278_v39  ;;  %3381 = vmatpush.bf16.msra.mxu1 %v7406_v41 }
  0x6e   :  { %v7389_v45 = vld [vmem:[#allocation8 + $0x9a0] sm:$0xf]  ;;  %v9538_v47 = vld [vmem:[#allocation8 + $0x9ac] sm:$0xf0]  ;;  %v7262_v52 = vor.u32 %v9506_v44, %v7261_v43  ;;  %3394 = vmatpush.bf16.msra.mxu2 %v7534_v42 }
  0x6f   :  { %v7517_v48 = vld [vmem:[#allocation8 + $0xaa0] sm:$0xf]  ;;  %v9570_v49 = vld [vmem:[#allocation8 + $0xaac] sm:$0xf0]  ;;  %v7390_v53 = vor.u32 %v9538_v47, %v7389_v45  ;;  %3407 = vmatpush.bf16.msra.mxu3 %v7662_v46 }
  0x70   :  { %v7645_v50 = vld [vmem:[#allocation8 + $0xba0] sm:$0xf]  ;;  %v9602_v51 = vld [vmem:[#allocation8 + $0xbac] sm:$0xf0]  ;;  %v7518_v54 = vor.u32 %v9570_v49, %v7517_v48 }
  0x71   :  { %v7245_v55 = vld [vmem:[#allocation8 + $0x880] sm:$0xf]  ;;  %v9502_v56 = vld [vmem:[#allocation8 + $0x88c] sm:$0xf0]  ;;  %v7646_v58 = vor.u32 %v9602_v51, %v7645_v50  ;;  %3369 = vmatpush.bf16.msra.mxu0 %v7262_v52  ;;  %3382 = vmatpush.bf16.msra.mxu1 %v7390_v53 }
  0x72   :  { %v7373_v57 = vld [vmem:[#allocation8 + $0x980] sm:$0xf]  ;;  %v9534_v59 = vld [vmem:[#allocation8 + $0x98c] sm:$0xf0]  ;;  %v7246_v0 = vor.u32 %v9502_v56, %v7245_v55  ;;  %3395 = vmatpush.bf16.msra.mxu2 %v7518_v54 }
  0x73   :  { %v7501_v60 = vld [vmem:[#allocation8 + $0xa80] sm:$0xf]  ;;  %v9566_v61 = vld [vmem:[#allocation8 + $0xa8c] sm:$0xf0]  ;;  %v7374_v1 = vor.u32 %v9534_v59, %v7373_v57  ;;  %3408 = vmatpush.bf16.msra.mxu3 %v7646_v58 }
  0x74   :  { %v7629_v62 = vld [vmem:[#allocation8 + $0xb80] sm:$0xf]  ;;  %v9598_v63 = vld [vmem:[#allocation8 + $0xb8c] sm:$0xf0]  ;;  %v7502_v2 = vor.u32 %v9566_v61, %v7501_v60 }
  0x75   :  { %v7229_v3 = vld [vmem:[#allocation8 + $0x860] sm:$0xf]  ;;  %v9498_v4 = vld [vmem:[#allocation8 + $0x86c] sm:$0xf0]  ;;  %v7630_v6 = vor.u32 %v9598_v63, %v7629_v62  ;;  %3370 = vmatpush.bf16.msra.mxu0 %v7246_v0  ;;  %3383 = vmatpush.bf16.msra.mxu1 %v7374_v1 }
  0x76   :  { %v7357_v5 = vld [vmem:[#allocation8 + $0x960] sm:$0xf]  ;;  %v9530_v7 = vld [vmem:[#allocation8 + $0x96c] sm:$0xf0]  ;;  %v7230_v14 = vor.u32 %v9498_v4, %v7229_v3  ;;  %3396 = vmatpush.bf16.msra.mxu2 %v7502_v2 }
  0x77   :  { %v7485_v10 = vld [vmem:[#allocation8 + $0xa60] sm:$0xf]  ;;  %v9562_v11 = vld [vmem:[#allocation8 + $0xa6c] sm:$0xf0]  ;;  %v7358_v16 = vor.u32 %v9530_v7, %v7357_v5  ;;  %3409 = vmatpush.bf16.msra.mxu3 %v7630_v6  ;;  %v158_v7 = vld [vmem:[#allocation6 + $0x48] sm:$0xff] }
  0x78   :  { %v7613_v12 = vld [vmem:[#allocation8 + $0xb60] sm:$0xf]  ;;  %v9594_v13 = vld [vmem:[#allocation8 + $0xb6c] sm:$0xf0]  ;;  %v7486_v17 = vor.u32 %v9562_v11, %v7485_v10  ;;  %v160_v10 = vld [vmem:[#allocation6 + $0x58] sm:$0xff] }
  0x79   :  { %v7213_v18 = vld [vmem:[#allocation8 + $0x840] sm:$0xf]  ;;  %v9494_v19 = vld [vmem:[#allocation8 + $0x84c] sm:$0xf0]  ;;  %v7614_v21 = vor.u32 %v9594_v13, %v7613_v12  ;;  %3371 = vmatpush.bf16.msra.mxu0 %v7230_v14  ;;  %3384 = vmatpush.bf16.msra.mxu1 %v7358_v16 }
  0x7a   :  { %v7341_v20 = vld [vmem:[#allocation8 + $0x940] sm:$0xf]  ;;  %v9526_v22 = vld [vmem:[#allocation8 + $0x94c] sm:$0xf0]  ;;  %v7214_v28 = vor.u32 %v9494_v19, %v7213_v18  ;;  %3397 = vmatpush.bf16.msra.mxu2 %v7486_v17 }
  0x7b   :  { %v7469_v23 = vld [vmem:[#allocation8 + $0xa40] sm:$0xf]  ;;  %v9558_v24 = vld [vmem:[#allocation8 + $0xa4c] sm:$0xf0]  ;;  %v7342_v29 = vor.u32 %v9526_v22, %v7341_v20  ;;  %3410 = vmatpush.bf16.msra.mxu3 %v7614_v21 }
  0x7c   :  { %v7597_v26 = vld [vmem:[#allocation8 + $0xb40] sm:$0xf]  ;;  %v9590_v27 = vld [vmem:[#allocation8 + $0xb4c] sm:$0xf0]  ;;  %v7470_v30 = vor.u32 %v9558_v24, %v7469_v23  ;;  %v10358_v23 = vpack.c.bf16 %v158_v7, %v158_v7 }
  0x7d   :  { %v7197_v31 = vld [vmem:[#allocation8 + $0x820] sm:$0xf]  ;;  %v9490_v32 = vld [vmem:[#allocation8 + $0x82c] sm:$0xf0]  ;;  %v7598_v35 = vor.u32 %v9590_v27, %v7597_v26  ;;  %3372 = vmatpush.bf16.msra.mxu0 %v7214_v28  ;;  %3385 = vmatpush.bf16.msra.mxu1 %v7342_v29  ;;  %v10360_v27 = vpack.c.bf16 %v160_v10, %v160_v10 }
  0x7e   :  { %v7325_v33 = vld [vmem:[#allocation8 + $0x920] sm:$0xf]  ;;  %v9522_v36 = vld [vmem:[#allocation8 + $0x92c] sm:$0xf0]  ;;  %v7198_v44 = vor.u32 %v9490_v32, %v7197_v31  ;;  %3398 = vmatpush.bf16.msra.mxu2 %v7470_v30 }
  0x7f   :  { %v7453_v39 = vld [vmem:[#allocation8 + $0xa20] sm:$0xf]  ;;  %v9554_v41 = vld [vmem:[#allocation8 + $0xa2c] sm:$0xf0]  ;;  %v7326_v47 = vor.u32 %v9522_v36, %v7325_v33  ;;  %3411 = vmatpush.bf16.msra.mxu3 %v7598_v35 }
  0x80   :  { %v7581_v42 = vld [vmem:[#allocation8 + $0xb20] sm:$0xf]  ;;  %v9586_v43 = vld [vmem:[#allocation8 + $0xb2c] sm:$0xf0]  ;;  %v7454_v48 = vor.u32 %v9554_v41, %v7453_v39 }
  0x81   :  { %v7181_v45 = vld [vmem:[#allocation8 + $0x800] sm:$0xf]  ;;  %v9486_v46 = vld [vmem:[#allocation8 + $0x80c] sm:$0xf0]  ;;  %v7582_v52 = vor.u32 %v9586_v43, %v7581_v42  ;;  %3373 = vmatpush.bf16.msra.mxu0 %v7198_v44  ;;  %3386 = vmatpush.bf16.msra.mxu1 %v7326_v47 }
  0x82   :  { %v7309_v49 = vld [vmem:[#allocation8 + $0x900] sm:$0xf]  ;;  %v9518_v50 = vld [vmem:[#allocation8 + $0x90c] sm:$0xf0]  ;;  %v7182_v59 = vor.u32 %v9486_v46, %v7181_v45  ;;  %3399 = vmatpush.bf16.msra.mxu2 %v7454_v48 }
  0x83   :  { %v7437_v51 = vld [vmem:[#allocation8 + $0xa00] sm:$0xf]  ;;  %v9550_v53 = vld [vmem:[#allocation8 + $0xa0c] sm:$0xf0]  ;;  %v7310_v63 = vor.u32 %v9518_v50, %v7309_v49  ;;  %3412 = vmatpush.bf16.msra.mxu3 %v7582_v52 }
  0x84   :  { %v7565_v54 = vld [vmem:[#allocation8 + $0xb00] sm:$0xf]  ;;  %v9582_v55 = vld [vmem:[#allocation8 + $0xb0c] sm:$0xf0]  ;;  %v7438_v0 = vor.u32 %v9550_v53, %v7437_v51 }
  0x85   :  { %v7805_v56 = vld [vmem:[#allocation8 + $0xce0] sm:$0xf]  ;;  %v9642_v57 = vld [vmem:[#allocation8 + $0xcec] sm:$0xf0]  ;;  %v7566_v4 = vor.u32 %v9582_v55, %v7565_v54  ;;  %3374 = vmatpush.bf16.msra.mxu0 %v7182_v59  ;;  %3387 = vmatpush.bf16.msra.mxu1 %v7310_v63 }
  0x86   :  { %v7933_v58 = vld [vmem:[#allocation8 + $0xde0] sm:$0xf]  ;;  %v9674_v60 = vld [vmem:[#allocation8 + $0xdec] sm:$0xf0]  ;;  %v7806_v5 = vor.u32 %v9642_v57, %v7805_v56  ;;  %3400 = vmatpush.bf16.msra.mxu2 %v7438_v0 }
  0x87   :  { %v8061_v61 = vld [vmem:[#allocation8 + $0xee0] sm:$0xf]  ;;  %v9706_v62 = vld [vmem:[#allocation8 + $0xeec] sm:$0xf0]  ;;  %v7934_v11 = vor.u32 %v9674_v60, %v7933_v58  ;;  %3413 = vmatpush.bf16.msra.mxu3 %v7566_v4 }
  0x88   :  { %v8189_v1 = vld [vmem:[#allocation8 + $0xfe0] sm:$0xf]  ;;  %v9738_v2 = vld [vmem:[#allocation8 + $0xfec] sm:$0xf0]  ;;  %v8062_v12 = vor.u32 %v9706_v62, %v8061_v61  ;;  %3388 = vmatmul.bf16.vlgmr.msra.gmra.mxu1 %v10358_v23 }
  0x89   :  { %v157_v3 = vld [vmem:[#allocation6 + $0x40] sm:$0xff]  ;;  %v159_v6 = vld [vmem:[#allocation6 + $0x50] sm:$0xff]  ;;  %v8190_v17 = vor.u32 %v9738_v2, %v8189_v1  ;;  %3419 = vmatpush.bf16.msrb.mxu0 %v7806_v5  ;;  %3432 = vmatpush.bf16.msrb.mxu1 %v7934_v11 }
  0x8a   :  { %v7789_v13 = vld [vmem:[#allocation8 + $0xcc0] sm:$0xf]  ;;  %v9638_v14 = vld [vmem:[#allocation8 + $0xccc] sm:$0xf0]  ;;  %v10354_v18 = vpack.c.bf16 %v157_v3, %v157_v3  ;;  %v10356_v22 = vpack.c.bf16 %v159_v6, %v159_v6  ;;  %3445 = vmatpush.bf16.msrb.mxu2 %v8062_v12  ;;  %3414 = vmatmul.bf16.vlgmr.msra.gmra.mxu3 %v10360_v27 }
  0x8b   :  { %v7917_v16 = vld [vmem:[#allocation8 + $0xdc0] sm:$0xf]  ;;  %v9670_v19 = vld [vmem:[#allocation8 + $0xdcc] sm:$0xf0]  ;;  %v7790_v28 = vor.u32 %v9638_v14, %v7789_v13  ;;  %3458 = vmatpush.bf16.msrb.mxu3 %v8190_v17 }
  0x8c   :  { %v8045_v20 = vld [vmem:[#allocation8 + $0xec0] sm:$0xf]  ;;  %v9702_v21 = vld [vmem:[#allocation8 + $0xecc] sm:$0xf0]  ;;  %v7918_v29 = vor.u32 %v9670_v19, %v7917_v16  ;;  %3375 = vmatmul.bf16.vlgmr.msra.gmra.mxu0 %v10354_v18  ;;  %3401 = vmatmul.bf16.vlgmr.msra.gmra.mxu2 %v10356_v22 }
  0x8d   :  { %v8173_v24 = vld [vmem:[#allocation8 + $0xfc0] sm:$0xf]  ;;  %v9734_v26 = vld [vmem:[#allocation8 + $0xfcc] sm:$0xf0]  ;;  %v8046_v30 = vor.u32 %v9702_v21, %v8045_v20  ;;  %3420 = vmatpush.bf16.msrb.mxu0 %v7790_v28 }
  0x8e   :  { %v7773_v31 = vld [vmem:[#allocation8 + $0xca0] sm:$0xf]  ;;  %v9634_v32 = vld [vmem:[#allocation8 + $0xcac] sm:$0xf0]  ;;  %v8174_v35 = vor.u32 %v9734_v26, %v8173_v24  ;;  %3433 = vmatpush.bf16.msrb.mxu1 %v7918_v29 }
  0x8f   :  { %v7901_v33 = vld [vmem:[#allocation8 + $0xda0] sm:$0xf]  ;;  %v9666_v36 = vld [vmem:[#allocation8 + $0xdac] sm:$0xf0]  ;;  %v7774_v44 = vor.u32 %v9634_v32, %v7773_v31  ;;  %3446 = vmatpush.bf16.msrb.mxu2 %v8046_v30 }
  0x90   :  { %v8029_v39 = vld [vmem:[#allocation8 + $0xea0] sm:$0xf]  ;;  %v9698_v41 = vld [vmem:[#allocation8 + $0xeac] sm:$0xf0]  ;;  %v7902_v45 = vor.u32 %v9666_v36, %v7901_v33  ;;  %3459 = vmatpush.bf16.msrb.mxu3 %v8174_v35 }
  0x91   :  { %v8157_v42 = vld [vmem:[#allocation8 + $0xfa0] sm:$0xf]  ;;  %v9730_v43 = vld [vmem:[#allocation8 + $0xfac] sm:$0xf0]  ;;  %v8030_v46 = vor.u32 %v9698_v41, %v8029_v39  ;;  %3421 = vmatpush.bf16.msrb.mxu0 %v7774_v44 }
  0x92   :  { %v7757_v47 = vld [vmem:[#allocation8 + $0xc80] sm:$0xf]  ;;  %v9630_v48 = vld [vmem:[#allocation8 + $0xc8c] sm:$0xf0]  ;;  %v8158_v50 = vor.u32 %v9730_v43, %v8157_v42  ;;  %3434 = vmatpush.bf16.msrb.mxu1 %v7902_v45 }
  0x93   :  { %v7885_v49 = vld [vmem:[#allocation8 + $0xd80] sm:$0xf]  ;;  %v9662_v51 = vld [vmem:[#allocation8 + $0xd8c] sm:$0xf0]  ;;  %v7758_v56 = vor.u32 %v9630_v48, %v7757_v47  ;;  %3447 = vmatpush.bf16.msrb.mxu2 %v8030_v46 }
  0x94   :  { %v8013_v52 = vld [vmem:[#allocation8 + $0xe80] sm:$0xf]  ;;  %v9694_v53 = vld [vmem:[#allocation8 + $0xe8c] sm:$0xf0]  ;;  %v7886_v57 = vor.u32 %v9662_v51, %v7885_v49  ;;  %3460 = vmatpush.bf16.msrb.mxu3 %v8158_v50 }
  0x95   :  { %v8141_v54 = vld [vmem:[#allocation8 + $0xf80] sm:$0xf]  ;;  %v9726_v55 = vld [vmem:[#allocation8 + $0xf8c] sm:$0xf0]  ;;  %v8014_v58 = vor.u32 %v9694_v53, %v8013_v52  ;;  %3422 = vmatpush.bf16.msrb.mxu0 %v7758_v56  ;;  %v9256_v52 = vld [vmem:[#allocation8 + $0xe4] sm:$0xf] }
  0x96   :  { %v7741_v59 = vld [vmem:[#allocation8 + $0xc60] sm:$0xf]  ;;  %v9626_v60 = vld [vmem:[#allocation8 + $0xc6c] sm:$0xf0]  ;;  %v8142_v62 = vor.u32 %v9726_v55, %v8141_v54  ;;  %3435 = vmatpush.bf16.msrb.mxu1 %v7886_v57  ;;  %v6271_v53 = vld [vmem:[#allocation8 + $0xf0] sm:$0xf0] }
  0x97   :  { %v7869_v61 = vld [vmem:[#allocation8 + $0xd60] sm:$0xf]  ;;  %v9658_v63 = vld [vmem:[#allocation8 + $0xd6c] sm:$0xf0]  ;;  %v7742_v4 = vor.u32 %v9626_v60, %v7741_v59  ;;  %3448 = vmatpush.bf16.msrb.mxu2 %v8014_v58  ;;  %v9288_v54 = vld [vmem:[#allocation8 + $0x1e4] sm:$0xf] }
  0x98   :  { %v7997_v0 = vld [vmem:[#allocation8 + $0xe60] sm:$0xf]  ;;  %v9690_v1 = vld [vmem:[#allocation8 + $0xe6c] sm:$0xf0]  ;;  %v7870_v5 = vor.u32 %v9658_v63, %v7869_v61  ;;  %3461 = vmatpush.bf16.msrb.mxu3 %v8142_v62  ;;  %v6399_v56 = vld [vmem:[#allocation8 + $0x1f0] sm:$0xf0] }
  0x99   :  { %v8125_v2 = vld [vmem:[#allocation8 + $0xf60] sm:$0xf]  ;;  %v9722_v3 = vld [vmem:[#allocation8 + $0xf6c] sm:$0xf0]  ;;  %v7998_v6 = vor.u32 %v9690_v1, %v7997_v0  ;;  %3423 = vmatpush.bf16.msrb.mxu0 %v7742_v4  ;;  %v9320_v57 = vld [vmem:[#allocation8 + $0x2e4] sm:$0xf]  ;;  %v6274_v1 = vor.u32 %v9256_v52, %v6271_v53 }
  0x9a   :  { %v7725_v7 = vld [vmem:[#allocation8 + $0xc40] sm:$0xf]  ;;  %v9622_v10 = vld [vmem:[#allocation8 + $0xc4c] sm:$0xf0]  ;;  %v8126_v12 = vor.u32 %v9722_v3, %v8125_v2  ;;  %3436 = vmatpush.bf16.msrb.mxu1 %v7870_v5  ;;  %v6527_v58 = vld [vmem:[#allocation8 + $0x2f0] sm:$0xf0]  ;;  %v6402_v5 = vor.u32 %v9288_v54, %v6399_v56 }
  0x9b   :  { %v7853_v11 = vld [vmem:[#allocation8 + $0xd40] sm:$0xf]  ;;  %v9654_v13 = vld [vmem:[#allocation8 + $0xd4c] sm:$0xf0]  ;;  %v7726_v20 = vor.u32 %v9622_v10, %v7725_v7  ;;  %3449 = vmatpush.bf16.msrb.mxu2 %v7998_v6  ;;  %v9352_v61 = vld [vmem:[#allocation8 + $0x3e4] sm:$0xf]  ;;  %v6530_v6 = vor.u32 %v9320_v57, %v6527_v58 }
  0x9c   :  { %v7981_v14 = vld [vmem:[#allocation8 + $0xe40] sm:$0xf]  ;;  %v9686_v16 = vld [vmem:[#allocation8 + $0xe4c] sm:$0xf0]  ;;  %v7854_v21 = vor.u32 %v9654_v13, %v7853_v11  ;;  %3462 = vmatpush.bf16.msrb.mxu3 %v8126_v12  ;;  %v6655_v62 = vld [vmem:[#allocation8 + $0x3f0] sm:$0xf0] }
  0x9d   :  { %v8109_v17 = vld [vmem:[#allocation8 + $0xf40] sm:$0xf]  ;;  %v9718_v19 = vld [vmem:[#allocation8 + $0xf4c] sm:$0xf0]  ;;  %v7982_v24 = vor.u32 %v9686_v16, %v7981_v14  ;;  %3424 = vmatpush.bf16.msrb.mxu0 %v7726_v20  ;;  %v162_v3 = vld [vmem:[#allocation6 + $0x68] sm:$0xff]  ;;  %v6658_v12 = vor.u32 %v9352_v61, %v6655_v62 }
  0x9e   :  { %v7709_v26 = vld [vmem:[#allocation8 + $0xc20] sm:$0xf]  ;;  %v9618_v28 = vld [vmem:[#allocation8 + $0xc2c] sm:$0xf0]  ;;  %v8110_v30 = vor.u32 %v9718_v19, %v8109_v17  ;;  %3437 = vmatpush.bf16.msrb.mxu1 %v7854_v21  ;;  %v164_v4 = vld [vmem:[#allocation6 + $0x78] sm:$0xff]  ;;  %v10370_v20 = vpack.c.bf16 %v162_v3, %v162_v3 }
  0x9f   :  { %v7837_v29 = vld [vmem:[#allocation8 + $0xd20] sm:$0xf]  ;;  %v9650_v31 = vld [vmem:[#allocation8 + $0xd2c] sm:$0xf0]  ;;  %v7710_v39 = vor.u32 %v9618_v28, %v7709_v26  ;;  %3450 = vmatpush.bf16.msrb.mxu2 %v7982_v24  ;;  %v9252_v7 = vld [vmem:[#allocation8 + $0xc4] sm:$0xf]  ;;  %v10372_v26 = vpack.c.bf16 %v164_v4, %v164_v4 }
  0xa0   :  { %v7965_v32 = vld [vmem:[#allocation8 + $0xe20] sm:$0xf]  ;;  %v9682_v33 = vld [vmem:[#allocation8 + $0xe2c] sm:$0xf0]  ;;  %v7838_v43 = vor.u32 %v9650_v31, %v7837_v29  ;;  %3463 = vmatpush.bf16.msrb.mxu3 %v8110_v30  ;;  %v6255_v10 = vld [vmem:[#allocation8 + $0xd0] sm:$0xf0] }
  0xa1   :  { %v8093_v35 = vld [vmem:[#allocation8 + $0xf20] sm:$0xf]  ;;  %v9714_v36 = vld [vmem:[#allocation8 + $0xf2c] sm:$0xf0]  ;;  %v7966_v44 = vor.u32 %v9682_v33, %v7965_v32  ;;  %3425 = vmatpush.bf16.msrb.mxu0 %v7710_v39  ;;  %v9284_v11 = vld [vmem:[#allocation8 + $0x1c4] sm:$0xf]  ;;  %v6258_v28 = vor.u32 %v9252_v7, %v6255_v10 }
  0xa2   :  { %v7693_v41 = vld [vmem:[#allocation8 + $0xc00] sm:$0xf]  ;;  %v9614_v42 = vld [vmem:[#allocation8 + $0xc0c] sm:$0xf0]  ;;  %v8094_v48 = vor.u32 %v9714_v36, %v8093_v35  ;;  %3438 = vmatpush.bf16.msrb.mxu1 %v7838_v43  ;;  %v6383_v14 = vld [vmem:[#allocation8 + $0x1d0] sm:$0xf0] }
  0xa3   :  { %v7821_v45 = vld [vmem:[#allocation8 + $0xd00] sm:$0xf]  ;;  %v9646_v46 = vld [vmem:[#allocation8 + $0xd0c] sm:$0xf0]  ;;  %v7694_v55 = vor.u32 %v9614_v42, %v7693_v41  ;;  %3451 = vmatpush.bf16.msrb.mxu2 %v7966_v44  ;;  %v9316_v16 = vld [vmem:[#allocation8 + $0x2c4] sm:$0xf]  ;;  %v6386_v29 = vor.u32 %v9284_v11, %v6383_v14 }
  0xa4   :  { %v7949_v47 = vld [vmem:[#allocation8 + $0xe00] sm:$0xf]  ;;  %v9678_v49 = vld [vmem:[#allocation8 + $0xe0c] sm:$0xf0]  ;;  %v7822_v59 = vor.u32 %v9646_v46, %v7821_v45  ;;  %3464 = vmatpush.bf16.msrb.mxu3 %v8094_v48  ;;  %v6511_v17 = vld [vmem:[#allocation8 + $0x2d0] sm:$0xf0] }
  0xa5   :  { %v8077_v50 = vld [vmem:[#allocation8 + $0xf00] sm:$0xf]  ;;  %v9710_v51 = vld [vmem:[#allocation8 + $0xf0c] sm:$0xf0]  ;;  %v7950_v60 = vor.u32 %v9678_v49, %v7949_v47  ;;  %3426 = vmatpush.bf16.msrb.mxu0 %v7694_v55  ;;  %v9348_v21 = vld [vmem:[#allocation8 + $0x3c4] sm:$0xf]  ;;  %v6514_v30 = vor.u32 %v9316_v16, %v6511_v17 }
  0xa6   :  { %v161_v63 = vld [vmem:[#allocation6 + $0x60] sm:$0xff]  ;;  %v8078_v0 = vor.u32 %v9710_v51, %v8077_v50  ;;  %v163_v2 = vld [vmem:[#allocation6 + $0x70] sm:$0xff]  ;;  %3439 = vmatpush.bf16.msrb.mxu1 %v7822_v59 }
  0xa7   :  { %v10366_v13 = vpack.c.bf16 %v161_v63, %v161_v63  ;;  %3452 = vmatpush.bf16.msrb.mxu2 %v7950_v60  ;;  %v10368_v19 = vpack.c.bf16 %v163_v2, %v163_v2  ;;  %v6639_v24 = vld [vmem:[#allocation8 + $0x3d0] sm:$0xf0]  ;;  %v9248_v31 = vld [vmem:[#allocation8 + $0xa4] sm:$0xf] }
  0xa8   :  { %3465 = vmatpush.bf16.msrb.mxu3 %v8078_v0  ;;  %v6239_v32 = vld [vmem:[#allocation8 + $0xb0] sm:$0xf0]  ;;  %v9280_v33 = vld [vmem:[#allocation8 + $0x1a4] sm:$0xf]  ;;  %v6642_v35 = vor.u32 %v9348_v21, %v6639_v24 }
  0xa9   :  { %3471 = vmatpush.bf16.msra.mxu0 %v6274_v1  ;;  %v6367_v36 = vld [vmem:[#allocation8 + $0x1b0] sm:$0xf0]  ;;  %v9312_v39 = vld [vmem:[#allocation8 + $0x2a4] sm:$0xf]  ;;  %3440 = vmatmul.bf16.vlgmr.msrb.gmra.mxu1 %v10370_v20  ;;  %v6242_v44 = vor.u32 %v9248_v31, %v6239_v32 }
  0xaa   :  { %3484 = vmatpush.bf16.msra.mxu1 %v6402_v5  ;;  %3427 = vmatmul.bf16.vlgmr.msrb.gmra.mxu0 %v10366_v13  ;;  %v6495_v41 = vld [vmem:[#allocation8 + $0x2b0] sm:$0xf0]  ;;  %v9344_v42 = vld [vmem:[#allocation8 + $0x3a4] sm:$0xf]  ;;  %v6370_v45 = vor.u32 %v9280_v33, %v6367_v36 }
  0xab   :  { %3497 = vmatpush.bf16.msra.mxu2 %v6530_v6  ;;  %v6623_v43 = vld [vmem:[#allocation8 + $0x3b0] sm:$0xf0]  ;;  %3466 = vmatmul.bf16.vlgmr.msrb.gmra.mxu3 %v10372_v26  ;;  %v6498_v46 = vor.u32 %v9312_v39, %v6495_v41  ;;  %v9244_v47 = vld [vmem:[#allocation8 + $0x84] sm:$0xf] }
  0xac   :  { %3510 = vmatpush.bf16.msra.mxu3 %v6658_v12  ;;  %3453 = vmatmul.bf16.vlgmr.msrb.gmra.mxu2 %v10368_v19  ;;  %v6223_v48 = vld [vmem:[#allocation8 + $0x90] sm:$0xf0]  ;;  %v9276_v49 = vld [vmem:[#allocation8 + $0x184] sm:$0xf]  ;;  %v6626_v50 = vor.u32 %v9344_v42, %v6623_v43 }
  0xad   :  { %3472 = vmatpush.bf16.msra.mxu0 %v6258_v28  ;;  %v6351_v51 = vld [vmem:[#allocation8 + $0x190] sm:$0xf0]  ;;  %v9308_v52 = vld [vmem:[#allocation8 + $0x284] sm:$0xf]  ;;  %v6226_v56 = vor.u32 %v9244_v47, %v6223_v48 }
  0xae   :  { %3485 = vmatpush.bf16.msra.mxu1 %v6386_v29  ;;  %v6479_v53 = vld [vmem:[#allocation8 + $0x290] sm:$0xf0]  ;;  %v9340_v54 = vld [vmem:[#allocation8 + $0x384] sm:$0xf]  ;;  %v6354_v57 = vor.u32 %v9276_v49, %v6351_v51 }
  0xaf   :  { %3498 = vmatpush.bf16.msra.mxu2 %v6514_v30  ;;  %v6607_v55 = vld [vmem:[#allocation8 + $0x390] sm:$0xf0]  ;;  %v6482_v58 = vor.u32 %v9308_v52, %v6479_v53  ;;  %v9240_v59 = vld [vmem:[#allocation8 + $0x64] sm:$0xf] }
  0xb0   :  { %3511 = vmatpush.bf16.msra.mxu3 %v6642_v35  ;;  %v6207_v60 = vld [vmem:[#allocation8 + $0x70] sm:$0xf0]  ;;  %v9272_v61 = vld [vmem:[#allocation8 + $0x164] sm:$0xf]  ;;  %v6610_v62 = vor.u32 %v9340_v54, %v6607_v55 }
  0xb1   :  { %3473 = vmatpush.bf16.msra.mxu0 %v6242_v44  ;;  %v6335_v63 = vld [vmem:[#allocation8 + $0x170] sm:$0xf0]  ;;  %v9304_v0 = vld [vmem:[#allocation8 + $0x264] sm:$0xf]  ;;  %v6210_v4 = vor.u32 %v9240_v59, %v6207_v60 }
  0xb2   :  { %3486 = vmatpush.bf16.msra.mxu1 %v6370_v45  ;;  %v6463_v1 = vld [vmem:[#allocation8 + $0x270] sm:$0xf0]  ;;  %v9336_v2 = vld [vmem:[#allocation8 + $0x364] sm:$0xf]  ;;  %v6338_v5 = vor.u32 %v9272_v61, %v6335_v63 }
  0xb3   :  { %3499 = vmatpush.bf16.msra.mxu2 %v6498_v46  ;;  %v6591_v3 = vld [vmem:[#allocation8 + $0x370] sm:$0xf0]  ;;  %v6466_v6 = vor.u32 %v9304_v0, %v6463_v1  ;;  %v9236_v7 = vld [vmem:[#allocation8 + $0x44] sm:$0xf] }
  0xb4   :  { %3512 = vmatpush.bf16.msra.mxu3 %v6626_v50  ;;  %v6191_v10 = vld [vmem:[#allocation8 + $0x50] sm:$0xf0]  ;;  %v9268_v11 = vld [vmem:[#allocation8 + $0x144] sm:$0xf]  ;;  %v6594_v12 = vor.u32 %v9336_v2, %v6591_v3 }
  0xb5   :  { %3474 = vmatpush.bf16.msra.mxu0 %v6226_v56  ;;  %v6319_v14 = vld [vmem:[#allocation8 + $0x150] sm:$0xf0]  ;;  %v9300_v16 = vld [vmem:[#allocation8 + $0x244] sm:$0xf]  ;;  %v6194_v28 = vor.u32 %v9236_v7, %v6191_v10 }
  0xb6   :  { %3487 = vmatpush.bf16.msra.mxu1 %v6354_v57  ;;  %v6447_v17 = vld [vmem:[#allocation8 + $0x250] sm:$0xf0]  ;;  %v9332_v21 = vld [vmem:[#allocation8 + $0x344] sm:$0xf]  ;;  %v6322_v29 = vor.u32 %v9268_v11, %v6319_v14 }
  0xb7   :  { %3500 = vmatpush.bf16.msra.mxu2 %v6482_v58  ;;  %v6575_v24 = vld [vmem:[#allocation8 + $0x350] sm:$0xf0]  ;;  %v6450_v30 = vor.u32 %v9300_v16, %v6447_v17  ;;  %v9232_v31 = vld [vmem:[#allocation8 + $0x24] sm:$0xf] }
  0xb8   :  { %3513 = vmatpush.bf16.msra.mxu3 %v6610_v62  ;;  %v6175_v32 = vld [vmem:[#allocation8 + $0x30] sm:$0xf0]  ;;  %v9264_v33 = vld [vmem:[#allocation8 + $0x124] sm:$0xf]  ;;  %v6578_v35 = vor.u32 %v9332_v21, %v6575_v24 }
  0xb9   :  { %3475 = vmatpush.bf16.msra.mxu0 %v6210_v4  ;;  %v6303_v36 = vld [vmem:[#allocation8 + $0x130] sm:$0xf0]  ;;  %v9296_v39 = vld [vmem:[#allocation8 + $0x224] sm:$0xf]  ;;  %v6178_v44 = vor.u32 %v9232_v31, %v6175_v32 }
  0xba   :  { %3488 = vmatpush.bf16.msra.mxu1 %v6338_v5  ;;  %v6431_v41 = vld [vmem:[#allocation8 + $0x230] sm:$0xf0]  ;;  %v9328_v42 = vld [vmem:[#allocation8 + $0x324] sm:$0xf]  ;;  %v6306_v47 = vor.u32 %v9264_v33, %v6303_v36 }
  0xbb   :  { %3501 = vmatpush.bf16.msra.mxu2 %v6466_v6  ;;  %v6559_v43 = vld [vmem:[#allocation8 + $0x330] sm:$0xf0]  ;;  %v9228_v45 = vld [vmem:[#allocation8 + $0x4] sm:$0xf]  ;;  %v6434_v48 = vor.u32 %v9296_v39, %v6431_v41 }
  0xbc   :  { %3514 = vmatpush.bf16.msra.mxu3 %v6594_v12  ;;  %v6159_v46 = vld [vmem:[#allocation8 + $0x10] sm:$0xf0]  ;;  %v9260_v49 = vld [vmem:[#allocation8 + $0x104] sm:$0xf]  ;;  %v6562_v52 = vor.u32 %v9328_v42, %v6559_v43 }
  0xbd   :  { %3476 = vmatpush.bf16.msra.mxu0 %v6194_v28  ;;  %v6287_v50 = vld [vmem:[#allocation8 + $0x110] sm:$0xf0]  ;;  %v9292_v51 = vld [vmem:[#allocation8 + $0x204] sm:$0xf]  ;;  %v6162_v59 = vor.u32 %v9228_v45, %v6159_v46 }
  0xbe   :  { %3489 = vmatpush.bf16.msra.mxu1 %v6322_v29  ;;  %v6415_v53 = vld [vmem:[#allocation8 + $0x210] sm:$0xf0]  ;;  %v9324_v54 = vld [vmem:[#allocation8 + $0x304] sm:$0xf]  ;;  %v6290_v63 = vor.u32 %v9260_v49, %v6287_v50 }
  0xbf   :  { %3502 = vmatpush.bf16.msra.mxu2 %v6450_v30  ;;  %v6543_v55 = vld [vmem:[#allocation8 + $0x310] sm:$0xf0]  ;;  %v9384_v56 = vld [vmem:[#allocation8 + $0x4e4] sm:$0xf]  ;;  %v6418_v0 = vor.u32 %v9292_v51, %v6415_v53 }
  0xc0   :  { %3515 = vmatpush.bf16.msra.mxu3 %v6578_v35  ;;  %v6783_v57 = vld [vmem:[#allocation8 + $0x4f0] sm:$0xf0]  ;;  %v9416_v58 = vld [vmem:[#allocation8 + $0x5e4] sm:$0xf]  ;;  %v6546_v3 = vor.u32 %v9324_v54, %v6543_v55  ;;  %v693_v54 = vld [vmem:[#allocation9] sm:$0xf] }
  0xc1   :  { %3477 = vmatpush.bf16.msra.mxu0 %v6178_v44  ;;  %v6911_v60 = vld [vmem:[#allocation8 + $0x5f0] sm:$0xf0]  ;;  %v9448_v61 = vld [vmem:[#allocation8 + $0x6e4] sm:$0xf]  ;;  %v6786_v4 = vor.u32 %v9384_v56, %v6783_v57 }
  0xc2   :  { %v7039_v62 = vld [vmem:[#allocation8 + $0x6f0] sm:$0xf0]  ;;  %3490 = vmatpush.bf16.msra.mxu1 %v6306_v47  ;;  %v9480_v1 = vld [vmem:[#allocation8 + $0x7e4] sm:$0xf]  ;;  %v6914_v5 = vor.u32 %v9416_v58, %v6911_v60 }
  0xc3   :  { %3503 = vmatpush.bf16.msra.mxu2 %v6434_v48  ;;  %v7167_v2 = vld [vmem:[#allocation8 + $0x7f0] sm:$0xf0]  ;;  %v7042_v6 = vor.u32 %v9448_v61, %v7039_v62  ;;  %v9380_v7 = vld [vmem:[#allocation8 + $0x4c4] sm:$0xf] }
  0xc4   :  { %3516 = vmatpush.bf16.msra.mxu3 %v6562_v52  ;;  %v6767_v10 = vld [vmem:[#allocation8 + $0x4d0] sm:$0xf0]  ;;  %v9412_v11 = vld [vmem:[#allocation8 + $0x5c4] sm:$0xf]  ;;  %v7170_v12 = vor.u32 %v9480_v1, %v7167_v2 }
  0xc5   :  { %3478 = vmatpush.bf16.msra.mxu0 %v6162_v59  ;;  %v6895_v14 = vld [vmem:[#allocation8 + $0x5d0] sm:$0xf0]  ;;  %v9444_v16 = vld [vmem:[#allocation8 + $0x6c4] sm:$0xf]  ;;  %v6770_v28 = vor.u32 %v9380_v7, %v6767_v10 }
  0xc6   :  { %v7023_v17 = vld [vmem:[#allocation8 + $0x6d0] sm:$0xf0]  ;;  %3491 = vmatpush.bf16.msra.mxu1 %v6290_v63  ;;  %v9476_v21 = vld [vmem:[#allocation8 + $0x7c4] sm:$0xf]  ;;  %v6898_v29 = vor.u32 %v9412_v11, %v6895_v14  ;;  %v695_v63 = vperm.slane %v693_v54, 0 }
  0xc7   :  { %3504 = vmatpush.bf16.msra.mxu2 %v6418_v0  ;;  %v7151_v24 = vld [vmem:[#allocation8 + $0x7d0] sm:$0xf0]  ;;  %v7026_v30 = vor.u32 %v9444_v16, %v7023_v17  ;;  %v9376_v31 = vld [vmem:[#allocation8 + $0x4a4] sm:$0xf] }
  0xc8   :  { %3517 = vmatpush.bf16.msra.mxu3 %v6546_v3  ;;  %v6751_v32 = vld [vmem:[#allocation8 + $0x4b0] sm:$0xf0]  ;;  %v9408_v33 = vld [vmem:[#allocation8 + $0x5a4] sm:$0xf]  ;;  %v7154_v35 = vor.u32 %v9476_v21, %v7151_v24  ;;  %3479 = vmatmul.bf16.vlgmr.msra.gmra.mxu0 %v10332_v9 }
  0xc9   :  { %3523 = vmatpush.bf16.msrb.mxu0 %v6786_v4  ;;  %v6879_v36 = vld [vmem:[#allocation8 + $0x5b0] sm:$0xf0]  ;;  %v9440_v39 = vld [vmem:[#allocation8 + $0x6a4] sm:$0xf]  ;;  %v6754_v44 = vor.u32 %v9376_v31, %v6751_v32  ;;  %3492 = vmatmul.bf16.vlgmr.msra.gmra.mxu1 %v10339_v25 }
  0xca   :  { %3536 = vmatpush.bf16.msrb.mxu1 %v6914_v5  ;;  %v7007_v41 = vld [vmem:[#allocation8 + $0x6b0] sm:$0xf0]  ;;  %3505 = vmatmul.bf16.vlgmr.msra.gmra.mxu2 %v10330_v8  ;;  %v9472_v42 = vld [vmem:[#allocation8 + $0x7a4] sm:$0xf]  ;;  %v6882_v46 = vor.u32 %v9408_v33, %v6879_v36  ;;  %v3285_v33 = vpop.f32.mrf.mxu1 }
  0xcb   :  { %3549 = vmatpush.bf16.msrb.mxu2 %v7042_v6  ;;  %v7135_v43 = vld [vmem:[#allocation8 + $0x7b0] sm:$0xf0]  ;;  %3518 = vmatmul.bf16.vlgmr.msra.gmra.mxu3 %v10334_v15  ;;  %v9372_v45 = vld [vmem:[#allocation8 + $0x484] sm:$0xf]  ;;  %v7010_v47 = vor.u32 %v9440_v39, %v7007_v41 }
  0xcc   :  { %3562 = vmatpush.bf16.msrb.mxu3 %v7170_v12  ;;  %v6735_v48 = vld [vmem:[#allocation8 + $0x490] sm:$0xf0]  ;;  %v9404_v49 = vld [vmem:[#allocation8 + $0x584] sm:$0xf]  ;;  %v7138_v51 = vor.u32 %v9472_v42, %v7135_v43 }
  0xcd   :  { %3524 = vmatpush.bf16.msrb.mxu0 %v6770_v28  ;;  %v6863_v50 = vld [vmem:[#allocation8 + $0x590] sm:$0xf0]  ;;  %v9436_v52 = vld [vmem:[#allocation8 + $0x684] sm:$0xf]  ;;  %v6738_v57 = vor.u32 %v9372_v45, %v6735_v48 }
  0xce   :  { %3537 = vmatpush.bf16.msrb.mxu1 %v6898_v29  ;;  %v6991_v53 = vld [vmem:[#allocation8 + $0x690] sm:$0xf0]  ;;  %v9468_v55 = vld [vmem:[#allocation8 + $0x784] sm:$0xf]  ;;  %v6866_v59 = vor.u32 %v9404_v49, %v6863_v50 }
  0xcf   :  { %3550 = vmatpush.bf16.msrb.mxu2 %v7026_v30  ;;  %v7119_v56 = vld [vmem:[#allocation8 + $0x790] sm:$0xf0]  ;;  %v9368_v58 = vld [vmem:[#allocation8 + $0x464] sm:$0xf]  ;;  %v6994_v60 = vor.u32 %v9436_v52, %v6991_v53  ;;  %v3311_v52 = vpop.f32.mrf.mxu3 }
  0xd0   :  { %3563 = vmatpush.bf16.msrb.mxu3 %v7154_v35  ;;  %v6719_v61 = vld [vmem:[#allocation8 + $0x470] sm:$0xf0]  ;;  %v9400_v62 = vld [vmem:[#allocation8 + $0x564] sm:$0xf]  ;;  %v7122_v0 = vor.u32 %v9468_v55, %v7119_v56  ;;  %v3272_v7 = vpop.f32.mrf.mxu0 }
  0xd1   :  { %3525 = vmatpush.bf16.msrb.mxu0 %v6754_v44  ;;  %v6847_v1 = vld [vmem:[#allocation8 + $0x570] sm:$0xf0]  ;;  %v9432_v2 = vld [vmem:[#allocation8 + $0x664] sm:$0xf]  ;;  %v6722_v6 = vor.u32 %v9368_v58, %v6719_v61  ;;  %v3273_v17 = vadd.f32 %v3272_v7, %v695_v63 }
  0xd2   :  { %3538 = vmatpush.bf16.msrb.mxu1 %v6882_v46  ;;  %v6975_v3 = vld [vmem:[#allocation8 + $0x670] sm:$0xf0]  ;;  %v9464_v4 = vld [vmem:[#allocation8 + $0x764] sm:$0xf]  ;;  %v6850_v10 = vor.u32 %v9400_v62, %v6847_v1 }
  0xd3   :  { %3551 = vmatpush.bf16.msrb.mxu2 %v7010_v47  ;;  %v7103_v5 = vld [vmem:[#allocation8 + $0x770] sm:$0xf0]  ;;  %v6978_v11 = vor.u32 %v9432_v2, %v6975_v3  ;;  %v9364_v12 = vld [vmem:[#allocation8 + $0x444] sm:$0xf]  ;;  %v3286_v43 = vadd.f32 %v3285_v33, %v3273_v17 }
  0xd4   :  { %3564 = vmatpush.bf16.msrb.mxu3 %v7138_v51  ;;  %v6703_v14 = vld [vmem:[#allocation8 + $0x450] sm:$0xf0]  ;;  %v9396_v16 = vld [vmem:[#allocation8 + $0x544] sm:$0xf]  ;;  %v7106_v21 = vor.u32 %v9464_v4, %v7103_v5 }
  0xd5   :  { %3526 = vmatpush.bf16.msrb.mxu0 %v6738_v57  ;;  %v6831_v24 = vld [vmem:[#allocation8 + $0x550] sm:$0xf0]  ;;  %v9428_v28 = vld [vmem:[#allocation8 + $0x644] sm:$0xf]  ;;  %v6706_v32 = vor.u32 %v9364_v12, %v6703_v14  ;;  %v3298_v48 = vpop.f32.mrf.mxu2  ;;  %v3287_v12 = vpop.f32.mrf.mxu1 }
  0xd6   :  { %3539 = vmatpush.bf16.msrb.mxu1 %v6866_v59  ;;  %v6959_v29 = vld [vmem:[#allocation8 + $0x650] sm:$0xf0]  ;;  %v9460_v30 = vld [vmem:[#allocation8 + $0x744] sm:$0xf]  ;;  %v6834_v35 = vor.u32 %v9396_v16, %v6831_v24  ;;  %v3299_v51 = vadd.f32 %v3298_v48, %v3286_v43 }
  0xd7   :  { %3552 = vmatpush.bf16.msrb.mxu2 %v6994_v60  ;;  %v7087_v31 = vld [vmem:[#allocation8 + $0x750] sm:$0xf0]  ;;  %v6962_v36 = vor.u32 %v9428_v28, %v6959_v29  ;;  %v9360_v39 = vld [vmem:[#allocation8 + $0x424] sm:$0xf] }
  0xd8   :  { %3565 = vmatpush.bf16.msrb.mxu3 %v7122_v0  ;;  %v6687_v41 = vld [vmem:[#allocation8 + $0x430] sm:$0xf0]  ;;  %v9392_v42 = vld [vmem:[#allocation8 + $0x524] sm:$0xf]  ;;  %v7090_v44 = vor.u32 %v9460_v30, %v7087_v31  ;;  %v3274_v56 = vpop.f32.mrf.mxu0  ;;  %v10382_v62 = vadd.f32 %v3311_v52, %v3299_v51 }
  0xd9   :  { %3527 = vmatpush.bf16.msrb.mxu0 %v6722_v6  ;;  %v6815_v45 = vld [vmem:[#allocation8 + $0x530] sm:$0xf0]  ;;  %v9424_v46 = vld [vmem:[#allocation8 + $0x624] sm:$0xf]  ;;  %v6690_v53 = vor.u32 %v9360_v39, %v6687_v41 }
  0xda   :  { %3540 = vmatpush.bf16.msrb.mxu1 %v6850_v10  ;;  %v6943_v47 = vld [vmem:[#allocation8 + $0x630] sm:$0xf0]  ;;  %v9456_v49 = vld [vmem:[#allocation8 + $0x724] sm:$0xf]  ;;  %v6818_v57 = vor.u32 %v9392_v42, %v6815_v45 }
  0xdb   :  { %3553 = vmatpush.bf16.msrb.mxu2 %v6978_v11  ;;  %v7071_v50 = vld [vmem:[#allocation8 + $0x730] sm:$0xf0]  ;;  %v9356_v54 = vld [vmem:[#allocation8 + $0x404] sm:$0xf]  ;;  %v6946_v58 = vor.u32 %v9424_v46, %v6943_v47 }
  0xdc   :  { %3566 = vmatpush.bf16.msrb.mxu3 %v7106_v21  ;;  %v6671_v55 = vld [vmem:[#allocation8 + $0x410] sm:$0xf0]  ;;  %v9388_v59 = vld [vmem:[#allocation8 + $0x504] sm:$0xf]  ;;  %v7074_v63 = vor.u32 %v9456_v49, %v7071_v50 }
  0xdd   :  { %3528 = vmatpush.bf16.msrb.mxu0 %v6706_v32  ;;  %v6799_v60 = vld [vmem:[#allocation8 + $0x510] sm:$0xf0]  ;;  %v9420_v61 = vld [vmem:[#allocation8 + $0x604] sm:$0xf]  ;;  %v6674_v6 = vor.u32 %v9356_v54, %v6671_v55  ;;  %v3300_v29 = vpop.f32.mrf.mxu2 }
  0xde   :  { %3541 = vmatpush.bf16.msrb.mxu1 %v6834_v35  ;;  %v6927_v0 = vld [vmem:[#allocation8 + $0x610] sm:$0xf0]  ;;  %v9452_v1 = vld [vmem:[#allocation8 + $0x704] sm:$0xf]  ;;  %v6802_v14 = vor.u32 %v9388_v59, %v6799_v60 }
  0xdf   :  { %3554 = vmatpush.bf16.msrb.mxu2 %v6962_v36  ;;  %v7055_v2 = vld [vmem:[#allocation8 + $0x710] sm:$0xf0]  ;;  %v9512_v3 = vld [vmem:[#allocation8 + $0x8e4] sm:$0xf]  ;;  %v6930_v16 = vor.u32 %v9420_v61, %v6927_v0  ;;  %v3313_v36 = vpop.f32.mrf.mxu3 }
  0xe0   :  { %3567 = vmatpush.bf16.msrb.mxu3 %v7090_v44  ;;  %v7295_v4 = vld [vmem:[#allocation8 + $0x8f0] sm:$0xf0]  ;;  %v9544_v5 = vld [vmem:[#allocation8 + $0x9e4] sm:$0xf]  ;;  %v7058_v24 = vor.u32 %v9452_v1, %v7055_v2 }
  0xe1   :  { %3529 = vmatpush.bf16.msrb.mxu0 %v6690_v53  ;;  %v7423_v7 = vld [vmem:[#allocation8 + $0x9f0] sm:$0xf0]  ;;  %v9576_v10 = vld [vmem:[#allocation8 + $0xae4] sm:$0xf]  ;;  %v7298_v28 = vor.u32 %v9512_v3, %v7295_v4 }
  0xe2   :  { %v7551_v11 = vld [vmem:[#allocation8 + $0xaf0] sm:$0xf0]  ;;  %3542 = vmatpush.bf16.msrb.mxu1 %v6818_v57  ;;  %v9608_v17 = vld [vmem:[#allocation8 + $0xbe4] sm:$0xf]  ;;  %v7426_v30 = vor.u32 %v9544_v5, %v7423_v7 }
  0xe3   :  { %3555 = vmatpush.bf16.msrb.mxu2 %v6946_v58  ;;  %v7679_v21 = vld [vmem:[#allocation8 + $0xbf0] sm:$0xf0]  ;;  %v7554_v31 = vor.u32 %v9576_v10, %v7551_v11  ;;  %v9508_v32 = vld [vmem:[#allocation8 + $0x8c4] sm:$0xf] }
  0xe4   :  { %3568 = vmatpush.bf16.msrb.mxu3 %v7074_v63  ;;  %v7279_v33 = vld [vmem:[#allocation8 + $0x8d0] sm:$0xf0]  ;;  %v9540_v35 = vld [vmem:[#allocation8 + $0x9c4] sm:$0xf]  ;;  %v7682_v39 = vor.u32 %v9608_v17, %v7679_v21 }
  0xe5   :  { %3530 = vmatpush.bf16.msrb.mxu0 %v6674_v6  ;;  %v7407_v41 = vld [vmem:[#allocation8 + $0x9d0] sm:$0xf0]  ;;  %v9572_v42 = vld [vmem:[#allocation8 + $0xac4] sm:$0xf]  ;;  %v7282_v46 = vor.u32 %v9508_v32, %v7279_v33 }
  0xe6   :  { %v7535_v43 = vld [vmem:[#allocation8 + $0xad0] sm:$0xf0]  ;;  %3543 = vmatpush.bf16.msrb.mxu1 %v6802_v14  ;;  %v9604_v44 = vld [vmem:[#allocation8 + $0xbc4] sm:$0xf]  ;;  %v7410_v47 = vor.u32 %v9540_v35, %v7407_v41 }
  0xe7   :  { %3556 = vmatpush.bf16.msrb.mxu2 %v6930_v16  ;;  %v7663_v45 = vld [vmem:[#allocation8 + $0xbd0] sm:$0xf0]  ;;  %v7538_v48 = vor.u32 %v9572_v42, %v7535_v43  ;;  %v9504_v49 = vld [vmem:[#allocation8 + $0x8a4] sm:$0xf] }
  0xe8   :  { %3569 = vmatpush.bf16.msrb.mxu3 %v7058_v24  ;;  %v7263_v50 = vld [vmem:[#allocation8 + $0x8b0] sm:$0xf0]  ;;  %v9536_v51 = vld [vmem:[#allocation8 + $0x9a4] sm:$0xf]  ;;  %v7666_v52 = vor.u32 %v9604_v44, %v7663_v45  ;;  %3531 = vmatmul.bf16.vlgmr.msrb.gmra.mxu0 %v10344_v37  ;;  %v3337_v24 = vpop.f32.mrf.mxu1 }
  0xe9   :  { %3575 = vmatpush.bf16.msra.mxu0 %v7298_v28  ;;  %v7391_v53 = vld [vmem:[#allocation8 + $0x9b0] sm:$0xf0]  ;;  %v9568_v54 = vld [vmem:[#allocation8 + $0xaa4] sm:$0xf]  ;;  %v7266_v58 = vor.u32 %v9504_v49, %v7263_v50  ;;  %3544 = vmatmul.bf16.vlgmr.msrb.gmra.mxu1 %v10348_v40  ;;  %v3324_v10 = vpop.f32.mrf.mxu0 }
  0xea   :  { %3588 = vmatpush.bf16.msra.mxu1 %v7426_v30  ;;  %3557 = vmatmul.bf16.vlgmr.msrb.gmra.mxu2 %v10342_v34  ;;  %v7519_v55 = vld [vmem:[#allocation8 + $0xab0] sm:$0xf0]  ;;  %v9600_v56 = vld [vmem:[#allocation8 + $0xba4] sm:$0xf]  ;;  %v7394_v59 = vor.u32 %v9536_v51, %v7391_v53  ;;  %v3325_v21 = vadd.f32 %v3324_v10, %v10382_v62 }
  0xeb   :  { %3601 = vmatpush.bf16.msra.mxu2 %v7554_v31  ;;  %v7647_v57 = vld [vmem:[#allocation8 + $0xbb0] sm:$0xf0]  ;;  %3570 = vmatmul.bf16.vlgmr.msrb.gmra.mxu3 %v10346_v38  ;;  %v7522_v60 = vor.u32 %v9568_v54, %v7519_v55  ;;  %v9500_v61 = vld [vmem:[#allocation8 + $0x884] sm:$0xf] }
  0xec   :  { %3614 = vmatpush.bf16.msra.mxu3 %v7682_v39  ;;  %v7247_v63 = vld [vmem:[#allocation8 + $0x890] sm:$0xf0]  ;;  %v9532_v0 = vld [vmem:[#allocation8 + $0x984] sm:$0xf]  ;;  %v7650_v1 = vor.u32 %v9600_v56, %v7647_v57  ;;  %v3338_v35 = vadd.f32 %v3337_v24, %v3325_v21  ;;  %v3363_v50 = vpop.f32.mrf.mxu3 }
  0xed   :  { %3576 = vmatpush.bf16.msra.mxu0 %v7282_v46  ;;  %v7375_v2 = vld [vmem:[#allocation8 + $0x990] sm:$0xf0]  ;;  %v9564_v3 = vld [vmem:[#allocation8 + $0xa84] sm:$0xf]  ;;  %v7250_v7 = vor.u32 %v9500_v61, %v7247_v63 }
  0xee   :  { %3589 = vmatpush.bf16.msra.mxu1 %v7410_v47  ;;  %v7503_v4 = vld [vmem:[#allocation8 + $0xa90] sm:$0xf0]  ;;  %v9596_v5 = vld [vmem:[#allocation8 + $0xb84] sm:$0xf]  ;;  %v7378_v11 = vor.u32 %v9532_v0, %v7375_v2  ;;  %v3350_v45 = vpop.f32.mrf.mxu2 }
  0xef   :  { %3602 = vmatpush.bf16.msra.mxu2 %v7538_v48  ;;  %v7631_v6 = vld [vmem:[#allocation8 + $0xb90] sm:$0xf0]  ;;  %v7506_v12 = vor.u32 %v9564_v3, %v7503_v4  ;;  %v9496_v14 = vld [vmem:[#allocation8 + $0x864] sm:$0xf]  ;;  %v3351_v49 = vadd.f32 %v3350_v45, %v3338_v35 }
  0xf0   :  { %3615 = vmatpush.bf16.msra.mxu3 %v7666_v52  ;;  %v7231_v16 = vld [vmem:[#allocation8 + $0x870] sm:$0xf0]  ;;  %v9528_v17 = vld [vmem:[#allocation8 + $0x964] sm:$0xf]  ;;  %v7634_v28 = vor.u32 %v9596_v5, %v7631_v6  ;;  %v3339_v61 = vpop.f32.mrf.mxu1 }
  0xf1   :  { %3577 = vmatpush.bf16.msra.mxu0 %v7266_v58  ;;  %v7359_v29 = vld [vmem:[#allocation8 + $0x970] sm:$0xf0]  ;;  %v9560_v30 = vld [vmem:[#allocation8 + $0xa64] sm:$0xf]  ;;  %v7234_v36 = vor.u32 %v9496_v14, %v7231_v16  ;;  %v10389_v54 = vadd.f32 %v3363_v50, %v3351_v49  ;;  %v3326_v55 = vpop.f32.mrf.mxu0 }
  0xf2   :  { %3590 = vmatpush.bf16.msra.mxu1 %v7394_v59  ;;  %v7487_v31 = vld [vmem:[#allocation8 + $0xa70] sm:$0xf0]  ;;  %v9592_v32 = vld [vmem:[#allocation8 + $0xb64] sm:$0xf]  ;;  %v7362_v39 = vor.u32 %v9528_v17, %v7359_v29 }
  0xf3   :  { %3603 = vmatpush.bf16.msra.mxu2 %v7522_v60  ;;  %v7615_v33 = vld [vmem:[#allocation8 + $0xb70] sm:$0xf0]  ;;  %v7490_v41 = vor.u32 %v9560_v30, %v7487_v31  ;;  %v9492_v42 = vld [vmem:[#allocation8 + $0x844] sm:$0xf] }
  0xf4   :  { %3616 = vmatpush.bf16.msra.mxu3 %v7650_v1  ;;  %v7215_v43 = vld [vmem:[#allocation8 + $0x850] sm:$0xf0]  ;;  %v9524_v44 = vld [vmem:[#allocation8 + $0x944] sm:$0xf]  ;;  %v7618_v62 = vor.u32 %v9592_v32, %v7615_v33  ;;  %v3365_v30 = vpop.f32.mrf.mxu3 }
  0xf5   :  { %3578 = vmatpush.bf16.msra.mxu0 %v7250_v7  ;;  %v7343_v46 = vld [vmem:[#allocation8 + $0x950] sm:$0xf0]  ;;  %v9556_v47 = vld [vmem:[#allocation8 + $0xa44] sm:$0xf]  ;;  %v7218_v53 = vor.u32 %v9492_v42, %v7215_v43 }
  0xf6   :  { %3591 = vmatpush.bf16.msra.mxu1 %v7378_v11  ;;  %v7471_v48 = vld [vmem:[#allocation8 + $0xa50] sm:$0xf0]  ;;  %v9588_v51 = vld [vmem:[#allocation8 + $0xb44] sm:$0xf]  ;;  %v7346_v56 = vor.u32 %v9524_v44, %v7343_v46  ;;  %v3352_v17 = vpop.f32.mrf.mxu2 }
  0xf7   :  { %3604 = vmatpush.bf16.msra.mxu2 %v7506_v12  ;;  %v7599_v52 = vld [vmem:[#allocation8 + $0xb50] sm:$0xf0]  ;;  %v7474_v57 = vor.u32 %v9556_v47, %v7471_v48  ;;  %v9488_v58 = vld [vmem:[#allocation8 + $0x824] sm:$0xf] }
  0xf8   :  { %3617 = vmatpush.bf16.msra.mxu3 %v7634_v28  ;;  %v7199_v59 = vld [vmem:[#allocation8 + $0x830] sm:$0xf0]  ;;  %v9520_v60 = vld [vmem:[#allocation8 + $0x924] sm:$0xf]  ;;  %v7602_v63 = vor.u32 %v9588_v51, %v7599_v52 }
  0xf9   :  { %3579 = vmatpush.bf16.msra.mxu0 %v7234_v36  ;;  %v7327_v0 = vld [vmem:[#allocation8 + $0x930] sm:$0xf0]  ;;  %v9552_v1 = vld [vmem:[#allocation8 + $0xa24] sm:$0xf]  ;;  %v7202_v5 = vor.u32 %v9488_v58, %v7199_v59 }
  0xfa   :  { %3592 = vmatpush.bf16.msra.mxu1 %v7362_v39  ;;  %v7455_v2 = vld [vmem:[#allocation8 + $0xa30] sm:$0xf0]  ;;  %v9584_v3 = vld [vmem:[#allocation8 + $0xb24] sm:$0xf]  ;;  %v7330_v10 = vor.u32 %v9520_v60, %v7327_v0 }
  0xfb   :  { %3605 = vmatpush.bf16.msra.mxu2 %v7490_v41  ;;  %v7583_v4 = vld [vmem:[#allocation8 + $0xb30] sm:$0xf0]  ;;  %v9484_v6 = vld [vmem:[#allocation8 + $0x804] sm:$0xf]  ;;  %v7458_v11 = vor.u32 %v9552_v1, %v7455_v2 }
  0xfc   :  { %3618 = vmatpush.bf16.msra.mxu3 %v7618_v62  ;;  %v7183_v7 = vld [vmem:[#allocation8 + $0x810] sm:$0xf0]  ;;  %v9516_v12 = vld [vmem:[#allocation8 + $0x904] sm:$0xf]  ;;  %v7586_v21 = vor.u32 %v9584_v3, %v7583_v4 }
  0xfd   :  { %3580 = vmatpush.bf16.msra.mxu0 %v7218_v53  ;;  %v7311_v14 = vld [vmem:[#allocation8 + $0x910] sm:$0xf0]  ;;  %v9548_v16 = vld [vmem:[#allocation8 + $0xa04] sm:$0xf]  ;;  %v7186_v35 = vor.u32 %v9484_v6, %v7183_v7 }
  0xfe   :  { %3593 = vmatpush.bf16.msra.mxu1 %v7346_v56  ;;  %v7439_v24 = vld [vmem:[#allocation8 + $0xa10] sm:$0xf0]  ;;  %v9580_v28 = vld [vmem:[#allocation8 + $0xb04] sm:$0xf]  ;;  %v7314_v42 = vor.u32 %v9516_v12, %v7311_v14 }
  0xff   :  { %3606 = vmatpush.bf16.msra.mxu2 %v7474_v57  ;;  %v7567_v29 = vld [vmem:[#allocation8 + $0xb10] sm:$0xf0]  ;;  %v9640_v31 = vld [vmem:[#allocation8 + $0xce4] sm:$0xf]  ;;  %v7442_v43 = vor.u32 %v9548_v16, %v7439_v24 }
 0x100   :  { %3619 = vmatpush.bf16.msra.mxu3 %v7602_v63  ;;  %v7807_v32 = vld [vmem:[#allocation8 + $0xcf0] sm:$0xf0]  ;;  %v9672_v33 = vld [vmem:[#allocation8 + $0xde4] sm:$0xf]  ;;  %v7570_v62 = vor.u32 %v9580_v28, %v7567_v29 }
 0x101   :  { %3581 = vmatpush.bf16.msra.mxu0 %v7202_v5  ;;  %v7935_v36 = vld [vmem:[#allocation8 + $0xdf0] sm:$0xf0]  ;;  %v9704_v39 = vld [vmem:[#allocation8 + $0xee4] sm:$0xf]  ;;  %v7810_v46 = vor.u32 %v9640_v31, %v7807_v32 }
 0x102   :  { %v8063_v41 = vld [vmem:[#allocation8 + $0xef0] sm:$0xf0]  ;;  %3594 = vmatpush.bf16.msra.mxu1 %v7330_v10  ;;  %v9736_v44 = vld [vmem:[#allocation8 + $0xfe4] sm:$0xf]  ;;  %v7938_v47 = vor.u32 %v9672_v33, %v7935_v36 }
 0x103   :  { %3607 = vmatpush.bf16.msra.mxu2 %v7458_v11  ;;  %v8191_v45 = vld [vmem:[#allocation8 + $0xff0] sm:$0xf0]  ;;  %v8066_v48 = vor.u32 %v9704_v39, %v8063_v41  ;;  %v9636_v49 = vld [vmem:[#allocation8 + $0xcc4] sm:$0xf] }
 0x104   :  { %3620 = vmatpush.bf16.msra.mxu3 %v7586_v21  ;;  %v7791_v50 = vld [vmem:[#allocation8 + $0xcd0] sm:$0xf0]  ;;  %v9668_v51 = vld [vmem:[#allocation8 + $0xdc4] sm:$0xf]  ;;  %v8194_v52 = vor.u32 %v9736_v44, %v8191_v45 }
 0x105   :  { %3582 = vmatpush.bf16.msra.mxu0 %v7186_v35  ;;  %v7919_v53 = vld [vmem:[#allocation8 + $0xdd0] sm:$0xf0]  ;;  %v9700_v55 = vld [vmem:[#allocation8 + $0xec4] sm:$0xf]  ;;  %v7794_v59 = vor.u32 %v9636_v49, %v7791_v50  ;;  %v3389_v36 = vpop.f32.mrf.mxu1 }
 0x106   :  { %v8047_v56 = vld [vmem:[#allocation8 + $0xed0] sm:$0xf0]  ;;  %3595 = vmatpush.bf16.msra.mxu1 %v7314_v42  ;;  %v9732_v57 = vld [vmem:[#allocation8 + $0xfc4] sm:$0xf]  ;;  %v7922_v60 = vor.u32 %v9668_v51, %v7919_v53 }
 0x107   :  { %3608 = vmatpush.bf16.msra.mxu2 %v7442_v43  ;;  %v8175_v58 = vld [vmem:[#allocation8 + $0xfd0] sm:$0xf0]  ;;  %v8050_v61 = vor.u32 %v9700_v55, %v8047_v56  ;;  %v9632_v63 = vld [vmem:[#allocation8 + $0xca4] sm:$0xf] }
 0x108   :  { %3621 = vmatpush.bf16.msra.mxu3 %v7570_v62  ;;  %v7775_v0 = vld [vmem:[#allocation8 + $0xcb0] sm:$0xf0]  ;;  %v9664_v1 = vld [vmem:[#allocation8 + $0xda4] sm:$0xf]  ;;  %3583 = vmatmul.bf16.vlgmr.msra.gmra.mxu0 %v10354_v18  ;;  %v8178_v2 = vor.u32 %v9732_v57, %v8175_v58 }
 0x109   :  { %3627 = vmatpush.bf16.msrb.mxu0 %v7810_v46  ;;  %v7903_v3 = vld [vmem:[#allocation8 + $0xdb0] sm:$0xf0]  ;;  %v9696_v4 = vld [vmem:[#allocation8 + $0xea4] sm:$0xf]  ;;  %3596 = vmatmul.bf16.vlgmr.msra.gmra.mxu1 %v10358_v23  ;;  %v7778_v10 = vor.u32 %v9632_v63, %v7775_v0  ;;  %v3376_v30 = vpop.f32.mrf.mxu0 }
 0x10a   :  { %3640 = vmatpush.bf16.msrb.mxu1 %v7938_v47  ;;  %v8031_v5 = vld [vmem:[#allocation8 + $0xeb0] sm:$0xf0]  ;;  %3609 = vmatmul.bf16.vlgmr.msra.gmra.mxu2 %v10356_v22  ;;  %v9728_v6 = vld [vmem:[#allocation8 + $0xfa4] sm:$0xf]  ;;  %v7906_v11 = vor.u32 %v9664_v1, %v7903_v3  ;;  %v3377_v33 = vadd.f32 %v3376_v30, %v10389_v54 }
 0x10b   :  { %3653 = vmatpush.bf16.msrb.mxu2 %v8066_v48  ;;  %v8159_v7 = vld [vmem:[#allocation8 + $0xfb0] sm:$0xf0]  ;;  %3622 = vmatmul.bf16.vlgmr.msra.gmra.mxu3 %v10360_v27  ;;  %v8034_v12 = vor.u32 %v9696_v4, %v8031_v5  ;;  %v9628_v14 = vld [vmem:[#allocation8 + $0xc84] sm:$0xf] }
 0x10c   :  { %3666 = vmatpush.bf16.msrb.mxu3 %v8194_v52  ;;  %v7759_v16 = vld [vmem:[#allocation8 + $0xc90] sm:$0xf0]  ;;  %v9660_v17 = vld [vmem:[#allocation8 + $0xd84] sm:$0xf]  ;;  %v8162_v21 = vor.u32 %v9728_v6, %v8159_v7  ;;  %v3390_v62 = vadd.f32 %v3389_v36, %v3377_v33 }
 0x10d   :  { %3628 = vmatpush.bf16.msrb.mxu0 %v7794_v59  ;;  %v7887_v24 = vld [vmem:[#allocation8 + $0xd90] sm:$0xf0]  ;;  %v9692_v28 = vld [vmem:[#allocation8 + $0xe84] sm:$0xf]  ;;  %v7762_v35 = vor.u32 %v9628_v14, %v7759_v16  ;;  %v3415_v0 = vpop.f32.mrf.mxu3  ;;  %v3391_v5 = vpop.f32.mrf.mxu1 }
 0x10e   :  { %3641 = vmatpush.bf16.msrb.mxu1 %v7922_v60  ;;  %v8015_v29 = vld [vmem:[#allocation8 + $0xe90] sm:$0xf0]  ;;  %v9724_v31 = vld [vmem:[#allocation8 + $0xf84] sm:$0xf]  ;;  %v7890_v39 = vor.u32 %v9660_v17, %v7887_v24  ;;  %v9319_v5 = vld [vmem:[#allocation8 + $0x2d4] sm:$0xf0] }
 0x10f   :  { %3654 = vmatpush.bf16.msrb.mxu2 %v8050_v61  ;;  %v8143_v32 = vld [vmem:[#allocation8 + $0xf90] sm:$0xf0]  ;;  %v8018_v41 = vor.u32 %v9692_v28, %v8015_v29  ;;  %v9624_v42 = vld [vmem:[#allocation8 + $0xc64] sm:$0xf]  ;;  %v3402_v58 = vpop.f32.mrf.mxu2 }
 0x110   :  { %3667 = vmatpush.bf16.msrb.mxu3 %v8178_v2  ;;  %v7743_v43 = vld [vmem:[#allocation8 + $0xc70] sm:$0xf0]  ;;  %v9656_v44 = vld [vmem:[#allocation8 + $0xd64] sm:$0xf]  ;;  %v8146_v45 = vor.u32 %v9724_v31, %v8143_v32  ;;  %v3403_v63 = vadd.f32 %v3402_v58, %v3390_v62 }
 0x111   :  { %3629 = vmatpush.bf16.msrb.mxu0 %v7778_v10  ;;  %v7871_v46 = vld [vmem:[#allocation8 + $0xd70] sm:$0xf0]  ;;  %v9688_v47 = vld [vmem:[#allocation8 + $0xe64] sm:$0xf]  ;;  %v7746_v51 = vor.u32 %v9624_v42, %v7743_v43  ;;  %v3378_v3 = vpop.f32.mrf.mxu0 }
 0x112   :  { %3642 = vmatpush.bf16.msrb.mxu1 %v7906_v11  ;;  %v7999_v48 = vld [vmem:[#allocation8 + $0xe70] sm:$0xf0]  ;;  %v9720_v49 = vld [vmem:[#allocation8 + $0xf64] sm:$0xf]  ;;  %v7874_v54 = vor.u32 %v9656_v44, %v7871_v46  ;;  %v10396_v6 = vadd.f32 %v3415_v0, %v3403_v63  ;;  %v6277_v46 = vld [vmem:[#allocation8 + $0xe8] sm:$0xf] }
 0x113   :  { %3655 = vmatpush.bf16.msrb.mxu2 %v8034_v12  ;;  %v8127_v50 = vld [vmem:[#allocation8 + $0xf70] sm:$0xf0]  ;;  %v8002_v52 = vor.u32 %v9688_v47, %v7999_v48  ;;  %v9620_v53 = vld [vmem:[#allocation8 + $0xc44] sm:$0xf]  ;;  %v9259_v47 = vld [vmem:[#allocation8 + $0xf4] sm:$0xf0] }
 0x114   :  { %3668 = vmatpush.bf16.msrb.mxu3 %v8162_v21  ;;  %v7727_v55 = vld [vmem:[#allocation8 + $0xc50] sm:$0xf0]  ;;  %v9652_v56 = vld [vmem:[#allocation8 + $0xd44] sm:$0xf]  ;;  %v8130_v57 = vor.u32 %v9720_v49, %v8127_v50  ;;  %v6405_v48 = vld [vmem:[#allocation8 + $0x1e8] sm:$0xf] }
 0x115   :  { %3630 = vmatpush.bf16.msrb.mxu0 %v7762_v35  ;;  %v7855_v59 = vld [vmem:[#allocation8 + $0xd50] sm:$0xf0]  ;;  %v9684_v60 = vld [vmem:[#allocation8 + $0xe44] sm:$0xf]  ;;  %v7730_v4 = vor.u32 %v9620_v53, %v7727_v55  ;;  %v3417_v49 = vpop.f32.mrf.mxu3  ;;  %v6261_v63 = vld [vmem:[#allocation8 + $0xc8] sm:$0xf] }
 0x116   :  { %3643 = vmatpush.bf16.msrb.mxu1 %v7890_v39  ;;  %v7983_v61 = vld [vmem:[#allocation8 + $0xe50] sm:$0xf0]  ;;  %v9716_v1 = vld [vmem:[#allocation8 + $0xf44] sm:$0xf]  ;;  %v7858_v7 = vor.u32 %v9652_v56, %v7855_v59  ;;  %v6661_v56 = vld [vmem:[#allocation8 + $0x3e8] sm:$0xf]  ;;  %v6278_v59 = vor.u32 %v9259_v47, %v6277_v46 }
 0x117   :  { %3656 = vmatpush.bf16.msrb.mxu2 %v8018_v41  ;;  %v8111_v2 = vld [vmem:[#allocation8 + $0xf50] sm:$0xf0]  ;;  %v7986_v10 = vor.u32 %v9684_v60, %v7983_v61  ;;  %v9616_v11 = vld [vmem:[#allocation8 + $0xc24] sm:$0xf]  ;;  %v3404_v62 = vpop.f32.mrf.mxu2  ;;  %v9255_v0 = vld [vmem:[#allocation8 + $0xd4] sm:$0xf0] }
 0x118   :  { %3669 = vmatpush.bf16.msrb.mxu3 %v8146_v45  ;;  %v7711_v12 = vld [vmem:[#allocation8 + $0xc30] sm:$0xf0]  ;;  %v9648_v14 = vld [vmem:[#allocation8 + $0xd24] sm:$0xf]  ;;  %v8114_v16 = vor.u32 %v9716_v1, %v8111_v2  ;;  %v6389_v1 = vld [vmem:[#allocation8 + $0x1c8] sm:$0xf] }
 0x119   :  { %3631 = vmatpush.bf16.msrb.mxu0 %v7746_v51  ;;  %v7839_v17 = vld [vmem:[#allocation8 + $0xd30] sm:$0xf0]  ;;  %v9680_v21 = vld [vmem:[#allocation8 + $0xe24] sm:$0xf]  ;;  %v7714_v30 = vor.u32 %v9616_v11, %v7711_v12  ;;  %v9291_v51 = vld [vmem:[#allocation8 + $0x1f4] sm:$0xf0]  ;;  %v6262_v11 = vor.u32 %v9255_v0, %v6261_v63 }
 0x11a   :  { %3644 = vmatpush.bf16.msrb.mxu1 %v7874_v54  ;;  %v7967_v24 = vld [vmem:[#allocation8 + $0xe30] sm:$0xf0]  ;;  %v9712_v28 = vld [vmem:[#allocation8 + $0xf24] sm:$0xf]  ;;  %v7842_v33 = vor.u32 %v9648_v14, %v7839_v17  ;;  %v6533_v54 = vld [vmem:[#allocation8 + $0x2e8] sm:$0xf]  ;;  %v6406_v60 = vor.u32 %v9291_v51, %v6405_v48 }
 0x11b   :  { %3657 = vmatpush.bf16.msrb.mxu2 %v8002_v52  ;;  %v8095_v29 = vld [vmem:[#allocation8 + $0xf30] sm:$0xf0]  ;;  %v9612_v31 = vld [vmem:[#allocation8 + $0xc04] sm:$0xf]  ;;  %v7970_v35 = vor.u32 %v9680_v21, %v7967_v24  ;;  %v9323_v52 = vld [vmem:[#allocation8 + $0x2f4] sm:$0xf0] }
 0x11c   :  { %3670 = vmatpush.bf16.msrb.mxu3 %v8130_v57  ;;  %v7695_v32 = vld [vmem:[#allocation8 + $0xc10] sm:$0xf0]  ;;  %v9644_v36 = vld [vmem:[#allocation8 + $0xd04] sm:$0xf]  ;;  %v8098_v42 = vor.u32 %v9712_v28, %v8095_v29  ;;  %v9355_v57 = vld [vmem:[#allocation8 + $0x3f4] sm:$0xf0]  ;;  %v6534_v61 = vor.u32 %v9323_v52, %v6533_v54 }
 0x11d   :  { %3632 = vmatpush.bf16.msrb.mxu0 %v7730_v4  ;;  %v7823_v39 = vld [vmem:[#allocation8 + $0xd10] sm:$0xf0]  ;;  %v9676_v41 = vld [vmem:[#allocation8 + $0xe04] sm:$0xf]  ;;  %v7698_v50 = vor.u32 %v9612_v31, %v7695_v32  ;;  %v6662_v2 = vor.u32 %v9355_v57, %v6661_v56  ;;  %v9287_v3 = vld [vmem:[#allocation8 + $0x1d4] sm:$0xf0] }
 0x11e   :  { %3645 = vmatpush.bf16.msrb.mxu1 %v7858_v7  ;;  %v7951_v43 = vld [vmem:[#allocation8 + $0xe10] sm:$0xf0]  ;;  %v9708_v44 = vld [vmem:[#allocation8 + $0xf04] sm:$0xf]  ;;  %v7826_v53 = vor.u32 %v9644_v36, %v7823_v39  ;;  %v6517_v4 = vld [vmem:[#allocation8 + $0x2c8] sm:$0xf]  ;;  %v6390_v12 = vor.u32 %v9287_v3, %v6389_v1 }
 0x11f   :  { %3658 = vmatpush.bf16.msrb.mxu2 %v7986_v10  ;;  %v8079_v45 = vld [vmem:[#allocation8 + $0xf10] sm:$0xf0]  ;;  %v7954_v55 = vor.u32 %v9676_v41, %v7951_v43  ;;  %v6645_v7 = vld [vmem:[#allocation8 + $0x3c8] sm:$0xf]  ;;  %v9351_v10 = vld [vmem:[#allocation8 + $0x3d4] sm:$0xf0]  ;;  %v6518_v14 = vor.u32 %v9319_v5, %v6517_v4 }
 0x120   :  { %3671 = vmatpush.bf16.msrb.mxu3 %v8114_v16  ;;  %v8082_v58 = vor.u32 %v9708_v44, %v8079_v45  ;;  %v6245_v16 = vld [vmem:[#allocation8 + $0xa8] sm:$0xf]  ;;  %v9251_v17 = vld [vmem:[#allocation8 + $0xb4] sm:$0xf0]  ;;  %v6646_v24 = vor.u32 %v9351_v10, %v6645_v7 }
 0x121   :  { %3633 = vmatpush.bf16.msrb.mxu0 %v7714_v30  ;;  %v6373_v21 = vld [vmem:[#allocation8 + $0x1a8] sm:$0xf]  ;;  %v9283_v28 = vld [vmem:[#allocation8 + $0x1b4] sm:$0xf0] }
 0x122   :  { %3646 = vmatpush.bf16.msrb.mxu1 %v7842_v33  ;;  %v6501_v29 = vld [vmem:[#allocation8 + $0x2a8] sm:$0xf]  ;;  %v9315_v30 = vld [vmem:[#allocation8 + $0x2b4] sm:$0xf0]  ;;  %v6246_v33 = vor.u32 %v9251_v17, %v6245_v16 }
 0x123   :  { %3659 = vmatpush.bf16.msrb.mxu2 %v7970_v35  ;;  %v6629_v31 = vld [vmem:[#allocation8 + $0x3a8] sm:$0xf]  ;;  %v9347_v32 = vld [vmem:[#allocation8 + $0x3b4] sm:$0xf0]  ;;  %v6374_v35 = vor.u32 %v9283_v28, %v6373_v21  ;;  %v6502_v36 = vor.u32 %v9315_v30, %v6501_v29 }
 0x124   :  { %3672 = vmatpush.bf16.msrb.mxu3 %v8098_v42  ;;  %v6229_v39 = vld [vmem:[#allocation8 + $0x88] sm:$0xf]  ;;  %v9247_v41 = vld [vmem:[#allocation8 + $0x94] sm:$0xf0]  ;;  %v6630_v43 = vor.u32 %v9347_v32, %v6629_v31 }
 0x125   :  { %3634 = vmatpush.bf16.msrb.mxu0 %v7698_v50  ;;  %v6357_v42 = vld [vmem:[#allocation8 + $0x188] sm:$0xf]  ;;  %v9279_v44 = vld [vmem:[#allocation8 + $0x194] sm:$0xf0]  ;;  %v6230_v50 = vor.u32 %v9247_v41, %v6229_v39 }
 0x126   :  { %3647 = vmatpush.bf16.msrb.mxu1 %v7826_v53  ;;  %v6485_v45 = vld [vmem:[#allocation8 + $0x288] sm:$0xf]  ;;  %v9311_v62 = vld [vmem:[#allocation8 + $0x294] sm:$0xf0]  ;;  %v3441_v51 = vpop.f32.mrf.mxu1  ;;  %v6358_v54 = vor.u32 %v9279_v44, %v6357_v42 }
 0x127   :  { %3660 = vmatpush.bf16.msrb.mxu2 %v7954_v55  ;;  %v3428_v46 = vpop.f32.mrf.mxu0  ;;  %v6613_v47 = vld [vmem:[#allocation8 + $0x388] sm:$0xf]  ;;  %v9343_v48 = vld [vmem:[#allocation8 + $0x394] sm:$0xf0]  ;;  %v6486_v52 = vor.u32 %v9311_v62, %v6485_v45 }
 0x128   :  { %3673 = vmatpush.bf16.msrb.mxu3 %v8082_v58  ;;  %3635 = vmatmul.bf16.vlgmr.msrb.gmra.mxu0 %v10366_v13  ;;  %v3429_v49 = vadd.f32 %v3428_v46, %v10396_v6  ;;  %v6213_v53 = vld [vmem:[#allocation8 + $0x68] sm:$0xf]  ;;  %v9243_v55 = vld [vmem:[#allocation8 + $0x74] sm:$0xf0]  ;;  %v6614_v57 = vor.u32 %v9343_v48, %v6613_v47 }
 0x129   :  { %3679 = vmatpush.bf16.msra.mxu0 %v6278_v59  ;;  %3648 = vmatmul.bf16.vlgmr.msrb.gmra.mxu1 %v10370_v20  ;;  %v6341_v56 = vld [vmem:[#allocation8 + $0x168] sm:$0xf]  ;;  %v9275_v59 = vld [vmem:[#allocation8 + $0x174] sm:$0xf0]  ;;  %v6214_v1 = vor.u32 %v9243_v55, %v6213_v53 }
 0x12a   :  { %3692 = vmatpush.bf16.msra.mxu1 %v6406_v60  ;;  %3661 = vmatmul.bf16.vlgmr.msrb.gmra.mxu2 %v10368_v19  ;;  %v3442_v58 = vadd.f32 %v3441_v51, %v3429_v49  ;;  %v6469_v60 = vld [vmem:[#allocation8 + $0x268] sm:$0xf]  ;;  %v9339_v0 = vld [vmem:[#allocation8 + $0x374] sm:$0xf0]  ;;  %v6342_v6 = vor.u32 %v9275_v59, %v6341_v56 }
 0x12b   :  { %3705 = vmatpush.bf16.msra.mxu2 %v6534_v61  ;;  %3674 = vmatmul.bf16.vlgmr.msrb.gmra.mxu3 %v10372_v26  ;;  %v9307_v61 = vld [vmem:[#allocation8 + $0x274] sm:$0xf0]  ;;  %v6597_v63 = vld [vmem:[#allocation8 + $0x368] sm:$0xf] }
 0x12c   :  { %3718 = vmatpush.bf16.msra.mxu3 %v6662_v2  ;;  %v6470_v2 = vor.u32 %v9307_v61, %v6469_v60  ;;  %v6197_v3 = vld [vmem:[#allocation8 + $0x48] sm:$0xf]  ;;  %v9239_v4 = vld [vmem:[#allocation8 + $0x54] sm:$0xf0]  ;;  %v6598_v7 = vor.u32 %v9339_v0, %v6597_v63 }
 0x12d   :  { %3680 = vmatpush.bf16.msra.mxu0 %v6262_v11  ;;  %v6325_v5 = vld [vmem:[#allocation8 + $0x148] sm:$0xf]  ;;  %v9271_v11 = vld [vmem:[#allocation8 + $0x154] sm:$0xf0]  ;;  %v6198_v29 = vor.u32 %v9239_v4, %v6197_v3 }
 0x12e   :  { %3693 = vmatpush.bf16.msra.mxu1 %v6390_v12  ;;  %v6453_v12 = vld [vmem:[#allocation8 + $0x248] sm:$0xf]  ;;  %v3467_v17 = vpop.f32.mrf.mxu3  ;;  %v3443_v30 = vpop.f32.mrf.mxu1  ;;  %v6326_v32 = vor.u32 %v9271_v11, %v6325_v5  ;;  %v9267_v42 = vld [vmem:[#allocation8 + $0x134] sm:$0xf0] }
 0x12f   :  { %3706 = vmatpush.bf16.msra.mxu2 %v6518_v14  ;;  %v3454_v10 = vpop.f32.mrf.mxu2  ;;  %v9303_v14 = vld [vmem:[#allocation8 + $0x254] sm:$0xf0]  ;;  %v6581_v21 = vld [vmem:[#allocation8 + $0x348] sm:$0xf]  ;;  %v3430_v28 = vpop.f32.mrf.mxu0 }
 0x130   :  { %3719 = vmatpush.bf16.msra.mxu3 %v6646_v24  ;;  %v3455_v16 = vadd.f32 %v3454_v10, %v3442_v58  ;;  %v9335_v24 = vld [vmem:[#allocation8 + $0x354] sm:$0xf0]  ;;  %v6309_v39 = vld [vmem:[#allocation8 + $0x128] sm:$0xf] }
 0x131   :  { %3681 = vmatpush.bf16.msra.mxu0 %v6246_v33  ;;  %v6454_v33 = vor.u32 %v9303_v14, %v6453_v12  ;;  %v6582_v41 = vor.u32 %v9335_v24, %v6581_v21  ;;  %v9299_v44 = vld [vmem:[#allocation8 + $0x234] sm:$0xf0]  ;;  %v6565_v45 = vld [vmem:[#allocation8 + $0x328] sm:$0xf]  ;;  %v6310_v49 = vor.u32 %v9267_v42, %v6309_v39 }
 0x132   :  { %3694 = vmatpush.bf16.msra.mxu1 %v6374_v35  ;;  %v10403_v31 = vadd.f32 %v3467_v17, %v3455_v16  ;;  %v6181_v35 = vld [vmem:[#allocation8 + $0x28] sm:$0xf]  ;;  %v9331_v62 = vld [vmem:[#allocation8 + $0x334] sm:$0xf0] }
 0x133   :  { %3707 = vmatpush.bf16.msra.mxu2 %v6502_v36  ;;  %v9235_v36 = vld [vmem:[#allocation8 + $0x34] sm:$0xf0]  ;;  %v6165_v47 = vld [vmem:[#allocation8 + $0x8] sm:$0xf]  ;;  %v6566_v53 = vor.u32 %v9331_v62, %v6565_v45 }
 0x134   :  { %3720 = vmatpush.bf16.msra.mxu3 %v6630_v43  ;;  %v6437_v43 = vld [vmem:[#allocation8 + $0x228] sm:$0xf]  ;;  %v6182_v46 = vor.u32 %v9235_v36, %v6181_v35  ;;  %v9231_v48 = vld [vmem:[#allocation8 + $0x14] sm:$0xf0] }
 0x135   :  { %3682 = vmatpush.bf16.msra.mxu0 %v6230_v50  ;;  %v6438_v50 = vor.u32 %v9299_v44, %v6437_v43  ;;  %v6293_v51 = vld [vmem:[#allocation8 + $0x108] sm:$0xf]  ;;  %v9295_v55 = vld [vmem:[#allocation8 + $0x214] sm:$0xf0]  ;;  %v6166_v0 = vor.u32 %v9231_v48, %v6165_v47 }
 0x136   :  { %3695 = vmatpush.bf16.msra.mxu1 %v6358_v54  ;;  %v9263_v54 = vld [vmem:[#allocation8 + $0x114] sm:$0xf0]  ;;  %v6549_v56 = vld [vmem:[#allocation8 + $0x308] sm:$0xf]  ;;  %v3469_v63 = vpop.f32.mrf.mxu3 }
 0x137   :  { %3708 = vmatpush.bf16.msra.mxu2 %v6486_v52  ;;  %v6421_v52 = vld [vmem:[#allocation8 + $0x208] sm:$0xf]  ;;  %v3456_v58 = vpop.f32.mrf.mxu2  ;;  %v9387_v60 = vld [vmem:[#allocation8 + $0x4f4] sm:$0xf0]  ;;  %v6294_v3 = vor.u32 %v9263_v54, %v6293_v51 }
 0x138   :  { %3721 = vmatpush.bf16.msra.mxu3 %v6614_v57  ;;  %v9327_v57 = vld [vmem:[#allocation8 + $0x314] sm:$0xf0]  ;;  %v6789_v59 = vld [vmem:[#allocation8 + $0x4e8] sm:$0xf]  ;;  %v6422_v4 = vor.u32 %v9295_v55, %v6421_v52  ;;  %v10011_v55 = vld [vmem:[#allocation9] sm:$0xf] }
 0x139   :  { %3683 = vmatpush.bf16.msra.mxu0 %v6214_v1  ;;  %v6917_v61 = vld [vmem:[#allocation8 + $0x5e8] sm:$0xf]  ;;  %v9419_v1 = vld [vmem:[#allocation8 + $0x5f4] sm:$0xf0]  ;;  %v6550_v10 = vor.u32 %v9327_v57, %v6549_v56  ;;  %v6790_v11 = vor.u32 %v9387_v60, %v6789_v59  ;;  %v696_v56 = vperm.slane %v10011_v55, 1 }
 0x13a   :  { %3696 = vmatpush.bf16.msra.mxu1 %v6342_v6  ;;  %v7045_v6 = vld [vmem:[#allocation8 + $0x6e8] sm:$0xf]  ;;  %v6918_v12 = vor.u32 %v9419_v1, %v6917_v61  ;;  %v9383_v17 = vld [vmem:[#allocation8 + $0x4d4] sm:$0xf0] }
 0x13b   :  { %3709 = vmatpush.bf16.msra.mxu2 %v6470_v2  ;;  %v9451_v2 = vld [vmem:[#allocation8 + $0x6f4] sm:$0xf0]  ;;  %v7173_v5 = vld [vmem:[#allocation8 + $0x7e8] sm:$0xf] }
 0x13c   :  { %3722 = vmatpush.bf16.msra.mxu3 %v6598_v7  ;;  %v9483_v7 = vld [vmem:[#allocation8 + $0x7f4] sm:$0xf0]  ;;  %v7046_v14 = vor.u32 %v9451_v2, %v7045_v6  ;;  %v6773_v16 = vld [vmem:[#allocation8 + $0x4c8] sm:$0xf] }
 0x13d   :  { %3684 = vmatpush.bf16.msra.mxu0 %v6198_v29  ;;  %v6901_v21 = vld [vmem:[#allocation8 + $0x5c8] sm:$0xf]  ;;  %v7174_v24 = vor.u32 %v9483_v7, %v7173_v5  ;;  %v9415_v28 = vld [vmem:[#allocation8 + $0x5d4] sm:$0xf0]  ;;  %v6774_v35 = vor.u32 %v9383_v17, %v6773_v16 }
 0x13e   :  { %3697 = vmatpush.bf16.msra.mxu1 %v6326_v32  ;;  %v7029_v29 = vld [vmem:[#allocation8 + $0x6c8] sm:$0xf]  ;;  %v9447_v30 = vld [vmem:[#allocation8 + $0x6d4] sm:$0xf0]  ;;  %v6902_v36 = vor.u32 %v9415_v28, %v6901_v21 }
 0x13f   :  { %3710 = vmatpush.bf16.msra.mxu2 %v6454_v33  ;;  %v7157_v32 = vld [vmem:[#allocation8 + $0x7c8] sm:$0xf]  ;;  %v9479_v33 = vld [vmem:[#allocation8 + $0x7d4] sm:$0xf0]  ;;  %v7030_v39 = vor.u32 %v9447_v30, %v7029_v29 }
 0x140   :  { %3723 = vmatpush.bf16.msra.mxu3 %v6582_v41  ;;  %v6757_v41 = vld [vmem:[#allocation8 + $0x4a8] sm:$0xf]  ;;  %v9379_v42 = vld [vmem:[#allocation8 + $0x4b4] sm:$0xf0]  ;;  %v7158_v44 = vor.u32 %v9479_v33, %v7157_v32 }
 0x141   :  { %3685 = vmatpush.bf16.msra.mxu0 %v6182_v46  ;;  %v6885_v43 = vld [vmem:[#allocation8 + $0x5a8] sm:$0xf]  ;;  %v9411_v45 = vld [vmem:[#allocation8 + $0x5b4] sm:$0xf0] }
 0x142   :  { %3698 = vmatpush.bf16.msra.mxu1 %v6310_v49  ;;  %v7013_v62 = vld [vmem:[#allocation8 + $0x6a8] sm:$0xf]  ;;  %v9443_v46 = vld [vmem:[#allocation8 + $0x6b4] sm:$0xf0]  ;;  %v6758_v49 = vor.u32 %v9379_v42, %v6757_v41  ;;  %v6886_v51 = vor.u32 %v9411_v45, %v6885_v43 }
 0x143   :  { %3711 = vmatpush.bf16.msra.mxu2 %v6438_v50  ;;  %v7141_v47 = vld [vmem:[#allocation8 + $0x7a8] sm:$0xf]  ;;  %v9475_v48 = vld [vmem:[#allocation8 + $0x7b4] sm:$0xf0]  ;;  %v7014_v54 = vor.u32 %v9443_v46, %v7013_v62 }
 0x144   :  { %3724 = vmatpush.bf16.msra.mxu3 %v6566_v53  ;;  %v6741_v50 = vld [vmem:[#allocation8 + $0x488] sm:$0xf]  ;;  %v9375_v52 = vld [vmem:[#allocation8 + $0x494] sm:$0xf0]  ;;  %v7142_v57 = vor.u32 %v9475_v48, %v7141_v47 }
 0x145   :  { %3686 = vmatpush.bf16.msra.mxu0 %v6166_v0  ;;  %v6869_v53 = vld [vmem:[#allocation8 + $0x588] sm:$0xf]  ;;  %v9407_v58 = vld [vmem:[#allocation8 + $0x594] sm:$0xf0]  ;;  %v6742_v0 = vor.u32 %v9375_v52, %v6741_v50  ;;  %v3480_v1 = vpop.f32.mrf.mxu0 }
 0x146   :  { %3699 = vmatpush.bf16.msra.mxu1 %v6294_v3  ;;  %v6997_v59 = vld [vmem:[#allocation8 + $0x688] sm:$0xf]  ;;  %v9439_v60 = vld [vmem:[#allocation8 + $0x694] sm:$0xf0]  ;;  %v6870_v6 = vor.u32 %v9407_v58, %v6869_v53  ;;  %v3481_v7 = vadd.f32 %v3480_v1, %v696_v56 }
 0x147   :  { %3712 = vmatpush.bf16.msra.mxu2 %v6422_v4  ;;  %v7125_v61 = vld [vmem:[#allocation8 + $0x788] sm:$0xf]  ;;  %v9471_v63 = vld [vmem:[#allocation8 + $0x794] sm:$0xf0]  ;;  %v6998_v2 = vor.u32 %v9439_v60, %v6997_v59 }
 0x148   :  { %3725 = vmatpush.bf16.msra.mxu3 %v6550_v10  ;;  %3687 = vmatmul.bf16.vlgmr.msra.gmra.mxu0 %v10332_v9  ;;  %v6725_v3 = vld [vmem:[#allocation8 + $0x468] sm:$0xf]  ;;  %v9371_v4 = vld [vmem:[#allocation8 + $0x474] sm:$0xf0]  ;;  %v3493_v10 = vpop.f32.mrf.mxu1 }
 0x149   :  { %3731 = vmatpush.bf16.msrb.mxu0 %v6790_v11  ;;  %3700 = vmatmul.bf16.vlgmr.msra.gmra.mxu1 %v10339_v25  ;;  %v6853_v5 = vld [vmem:[#allocation8 + $0x568] sm:$0xf]  ;;  %v7126_v11 = vor.u32 %v9471_v63, %v7125_v61  ;;  %v9435_v16 = vld [vmem:[#allocation8 + $0x674] sm:$0xf0]  ;;  %v6726_v28 = vor.u32 %v9371_v4, %v6725_v3 }
 0x14a   :  { %3744 = vmatpush.bf16.msrb.mxu1 %v6918_v12  ;;  %3713 = vmatmul.bf16.vlgmr.msra.gmra.mxu2 %v10330_v8  ;;  %v9403_v12 = vld [vmem:[#allocation8 + $0x574] sm:$0xf0]  ;;  %v7109_v17 = vld [vmem:[#allocation8 + $0x768] sm:$0xf] }
 0x14b   :  { %3757 = vmatpush.bf16.msrb.mxu2 %v7046_v14  ;;  %3726 = vmatmul.bf16.vlgmr.msra.gmra.mxu3 %v10334_v15  ;;  %v6981_v14 = vld [vmem:[#allocation8 + $0x668] sm:$0xf]  ;;  %v9467_v21 = vld [vmem:[#allocation8 + $0x774] sm:$0xf0]  ;;  %v6854_v29 = vor.u32 %v9403_v12, %v6853_v5 }
 0x14c   :  { %3770 = vmatpush.bf16.msrb.mxu3 %v7174_v24  ;;  %v3494_v24 = vadd.f32 %v3493_v10, %v3481_v7  ;;  %v6982_v30 = vor.u32 %v9435_v16, %v6981_v14  ;;  %v6709_v32 = vld [vmem:[#allocation8 + $0x448] sm:$0xf]  ;;  %v9367_v33 = vld [vmem:[#allocation8 + $0x454] sm:$0xf0] }
 0x14d   :  { %3732 = vmatpush.bf16.msrb.mxu0 %v6774_v35  ;;  %v6837_v35 = vld [vmem:[#allocation8 + $0x548] sm:$0xf]  ;;  %v9399_v41 = vld [vmem:[#allocation8 + $0x554] sm:$0xf0]  ;;  %v6710_v47 = vor.u32 %v9367_v33, %v6709_v32 }
 0x14e   :  { %3745 = vmatpush.bf16.msrb.mxu1 %v6902_v36  ;;  %v3506_v36 = vpop.f32.mrf.mxu2  ;;  %v6965_v42 = vld [vmem:[#allocation8 + $0x648] sm:$0xf]  ;;  %v9431_v43 = vld [vmem:[#allocation8 + $0x654] sm:$0xf0]  ;;  %v3519_v45 = vpop.f32.mrf.mxu3  ;;  %v6838_v50 = vor.u32 %v9399_v41, %v6837_v35 }
 0x14f   :  { %3758 = vmatpush.bf16.msrb.mxu2 %v7030_v39  ;;  %v7110_v39 = vor.u32 %v9467_v21, %v7109_v17  ;;  %v7093_v62 = vld [vmem:[#allocation8 + $0x748] sm:$0xf]  ;;  %v9463_v46 = vld [vmem:[#allocation8 + $0x754] sm:$0xf0] }
 0x150   :  { %3771 = vmatpush.bf16.msrb.mxu3 %v7158_v44  ;;  %v3507_v44 = vadd.f32 %v3506_v36, %v3494_v24  ;;  %v9363_v52 = vld [vmem:[#allocation8 + $0x434] sm:$0xf0]  ;;  %v6821_v53 = vld [vmem:[#allocation8 + $0x528] sm:$0xf]  ;;  %v3495_v55 = vpop.f32.mrf.mxu1  ;;  %v7094_v56 = vor.u32 %v9463_v46, %v7093_v62 }
 0x151   :  { %3733 = vmatpush.bf16.msrb.mxu0 %v6758_v49  ;;  %v3482_v49 = vpop.f32.mrf.mxu0  ;;  %v6949_v58 = vld [vmem:[#allocation8 + $0x628] sm:$0xf]  ;;  %v9427_v59 = vld [vmem:[#allocation8 + $0x634] sm:$0xf0] }
 0x152   :  { %3746 = vmatpush.bf16.msrb.mxu1 %v6886_v51  ;;  %v10409_v48 = vadd.f32 %v3519_v45, %v3507_v44  ;;  %v6966_v51 = vor.u32 %v9431_v43, %v6965_v42  ;;  %v7077_v60 = vld [vmem:[#allocation8 + $0x728] sm:$0xf]  ;;  %v9459_v61 = vld [vmem:[#allocation8 + $0x734] sm:$0xf0] }
 0x153   :  { %3759 = vmatpush.bf16.msrb.mxu2 %v7014_v54  ;;  %v6693_v54 = vld [vmem:[#allocation8 + $0x428] sm:$0xf]  ;;  %v9359_v1 = vld [vmem:[#allocation8 + $0x414] sm:$0xf0]  ;;  %v7078_v10 = vor.u32 %v9459_v61, %v7077_v60 }
 0x154   :  { %3772 = vmatpush.bf16.msrb.mxu3 %v7142_v57  ;;  %v9395_v57 = vld [vmem:[#allocation8 + $0x534] sm:$0xf0]  ;;  %v6694_v63 = vor.u32 %v9363_v52, %v6693_v54  ;;  %v6805_v3 = vld [vmem:[#allocation8 + $0x508] sm:$0xf] }
 0x155   :  { %3734 = vmatpush.bf16.msrb.mxu0 %v6742_v0  ;;  %v6677_v0 = vld [vmem:[#allocation8 + $0x408] sm:$0xf]  ;;  %v9391_v4 = vld [vmem:[#allocation8 + $0x514] sm:$0xf0] }
 0x156   :  { %3747 = vmatpush.bf16.msrb.mxu1 %v6870_v6  ;;  %v6822_v6 = vor.u32 %v9395_v57, %v6821_v53  ;;  %v6933_v5 = vld [vmem:[#allocation8 + $0x608] sm:$0xf]  ;;  %v3508_v7 = vpop.f32.mrf.mxu2  ;;  %v9455_v14 = vld [vmem:[#allocation8 + $0x714] sm:$0xf0]  ;;  %v3521_v16 = vpop.f32.mrf.mxu3  ;;  %v6806_v33 = vor.u32 %v9391_v4, %v6805_v3 }
 0x157   :  { %3760 = vmatpush.bf16.msrb.mxu2 %v6998_v2  ;;  %v6950_v2 = vor.u32 %v9427_v59, %v6949_v58  ;;  %v7061_v12 = vld [vmem:[#allocation8 + $0x708] sm:$0xf]  ;;  %v9515_v21 = vld [vmem:[#allocation8 + $0x8f4] sm:$0xf0] }
 0x158   :  { %3773 = vmatpush.bf16.msrb.mxu3 %v7126_v11  ;;  %v9423_v11 = vld [vmem:[#allocation8 + $0x614] sm:$0xf0]  ;;  %v7301_v17 = vld [vmem:[#allocation8 + $0x8e8] sm:$0xf]  ;;  %v7062_v41 = vor.u32 %v9455_v14, %v7061_v12 }
 0x159   :  { %3735 = vmatpush.bf16.msrb.mxu0 %v6726_v28  ;;  %v7429_v24 = vld [vmem:[#allocation8 + $0x9e8] sm:$0xf]  ;;  %v6678_v28 = vor.u32 %v9359_v1, %v6677_v0  ;;  %v9579_v32 = vld [vmem:[#allocation8 + $0xaf4] sm:$0xf0]  ;;  %v6934_v35 = vor.u32 %v9423_v11, %v6933_v5  ;;  %v7302_v42 = vor.u32 %v9515_v21, %v7301_v17 }
 0x15a   :  { %3748 = vmatpush.bf16.msrb.mxu1 %v6854_v29  ;;  %v9547_v29 = vld [vmem:[#allocation8 + $0x9f4] sm:$0xf0]  ;;  %v7685_v36 = vld [vmem:[#allocation8 + $0xbe8] sm:$0xf] }
 0x15b   :  { %3761 = vmatpush.bf16.msrb.mxu2 %v6982_v30  ;;  %v7557_v30 = vld [vmem:[#allocation8 + $0xae8] sm:$0xf]  ;;  %v7430_v43 = vor.u32 %v9547_v29, %v7429_v24  ;;  %v9511_v62 = vld [vmem:[#allocation8 + $0x8d4] sm:$0xf0] }
 0x15c   :  { %3774 = vmatpush.bf16.msrb.mxu3 %v7110_v39  ;;  %v9611_v39 = vld [vmem:[#allocation8 + $0xbf4] sm:$0xf0]  ;;  %v7558_v44 = vor.u32 %v9579_v32, %v7557_v30  ;;  %v7285_v45 = vld [vmem:[#allocation8 + $0x8c8] sm:$0xf] }
 0x15d   :  { %3736 = vmatpush.bf16.msrb.mxu0 %v6710_v47  ;;  %v7413_v46 = vld [vmem:[#allocation8 + $0x9c8] sm:$0xf]  ;;  %v7686_v47 = vor.u32 %v9611_v39, %v7685_v36  ;;  %v9543_v49 = vld [vmem:[#allocation8 + $0x9d4] sm:$0xf0]  ;;  %v7286_v53 = vor.u32 %v9511_v62, %v7285_v45 }
 0x15e   :  { %3749 = vmatpush.bf16.msrb.mxu1 %v6838_v50  ;;  %v7541_v50 = vld [vmem:[#allocation8 + $0xac8] sm:$0xf]  ;;  %v9607_v52 = vld [vmem:[#allocation8 + $0xbd4] sm:$0xf0]  ;;  %v7414_v55 = vor.u32 %v9543_v49, %v7413_v46 }
 0x15f   :  { %3762 = vmatpush.bf16.msrb.mxu2 %v6966_v51  ;;  %v9575_v51 = vld [vmem:[#allocation8 + $0xad4] sm:$0xf0]  ;;  %v7669_v54 = vld [vmem:[#allocation8 + $0xbc8] sm:$0xf] }
 0x160   :  { %3775 = vmatpush.bf16.msrb.mxu3 %v7094_v56  ;;  %v7542_v56 = vor.u32 %v9575_v51, %v7541_v50  ;;  %v7269_v57 = vld [vmem:[#allocation8 + $0x8a8] sm:$0xf]  ;;  %v9507_v58 = vld [vmem:[#allocation8 + $0x8b4] sm:$0xf0]  ;;  %v7670_v60 = vor.u32 %v9607_v52, %v7669_v54 }
 0x161   :  { %3737 = vmatpush.bf16.msrb.mxu0 %v6694_v63  ;;  %v7397_v59 = vld [vmem:[#allocation8 + $0x9a8] sm:$0xf]  ;;  %v9539_v61 = vld [vmem:[#allocation8 + $0x9b4] sm:$0xf0] }
 0x162   :  { %3750 = vmatpush.bf16.msrb.mxu1 %v6822_v6  ;;  %v7525_v63 = vld [vmem:[#allocation8 + $0xaa8] sm:$0xf]  ;;  %v9571_v0 = vld [vmem:[#allocation8 + $0xab4] sm:$0xf0]  ;;  %v7398_v3 = vor.u32 %v9539_v61, %v7397_v59 }
 0x163   :  { %3763 = vmatpush.bf16.msrb.mxu2 %v6950_v2  ;;  %v7653_v1 = vld [vmem:[#allocation8 + $0xba8] sm:$0xf]  ;;  %v9603_v6 = vld [vmem:[#allocation8 + $0xbb4] sm:$0xf0]  ;;  %v7270_v2 = vor.u32 %v9507_v58, %v7269_v57  ;;  %v7526_v4 = vor.u32 %v9571_v0, %v7525_v63 }
 0x164   :  { %3776 = vmatpush.bf16.msrb.mxu3 %v7078_v10  ;;  %v7253_v5 = vld [vmem:[#allocation8 + $0x888] sm:$0xf]  ;;  %v9503_v7 = vld [vmem:[#allocation8 + $0x894] sm:$0xf0]  ;;  %v7654_v11 = vor.u32 %v9603_v6, %v7653_v1 }
 0x165   :  { %3738 = vmatpush.bf16.msrb.mxu0 %v6678_v28  ;;  %v7381_v10 = vld [vmem:[#allocation8 + $0x988] sm:$0xf]  ;;  %v9535_v12 = vld [vmem:[#allocation8 + $0x994] sm:$0xf0]  ;;  %v7254_v24 = vor.u32 %v9503_v7, %v7253_v5  ;;  %v3532_v28 = vpop.f32.mrf.mxu0 }
 0x166   :  { %3751 = vmatpush.bf16.msrb.mxu1 %v6806_v33  ;;  %v7509_v14 = vld [vmem:[#allocation8 + $0xa88] sm:$0xf]  ;;  %v9567_v16 = vld [vmem:[#allocation8 + $0xa94] sm:$0xf0]  ;;  %v7382_v29 = vor.u32 %v9535_v12, %v7381_v10  ;;  %v3533_v36 = vadd.f32 %v3532_v28, %v10409_v48  ;;  %v3545_v39 = vpop.f32.mrf.mxu1 }
 0x167   :  { %3764 = vmatpush.bf16.msrb.mxu2 %v6934_v35  ;;  %v7637_v17 = vld [vmem:[#allocation8 + $0xb88] sm:$0xf]  ;;  %v9599_v21 = vld [vmem:[#allocation8 + $0xb94] sm:$0xf0]  ;;  %v7510_v30 = vor.u32 %v9567_v16, %v7509_v14 }
 0x168   :  { %3777 = vmatpush.bf16.msrb.mxu3 %v7062_v41  ;;  %3739 = vmatmul.bf16.vlgmr.msrb.gmra.mxu0 %v10344_v37  ;;  %v7237_v32 = vld [vmem:[#allocation8 + $0x868] sm:$0xf]  ;;  %v9499_v33 = vld [vmem:[#allocation8 + $0x874] sm:$0xf0]  ;;  %v7638_v41 = vor.u32 %v9599_v21, %v7637_v17  ;;  %v3546_v46 = vadd.f32 %v3545_v39, %v3533_v36 }
 0x169   :  { %3783 = vmatpush.bf16.msra.mxu0 %v7302_v42  ;;  %3752 = vmatmul.bf16.vlgmr.msrb.gmra.mxu1 %v10348_v40  ;;  %v7365_v35 = vld [vmem:[#allocation8 + $0x968] sm:$0xf]  ;;  %v9531_v42 = vld [vmem:[#allocation8 + $0x974] sm:$0xf0] }
 0x16a   :  { %3796 = vmatpush.bf16.msra.mxu1 %v7430_v43  ;;  %3765 = vmatmul.bf16.vlgmr.msrb.gmra.mxu2 %v10342_v34  ;;  %v7493_v43 = vld [vmem:[#allocation8 + $0xa68] sm:$0xf]  ;;  %v9595_v62 = vld [vmem:[#allocation8 + $0xb74] sm:$0xf0]  ;;  %v7366_v49 = vor.u32 %v9531_v42, %v7365_v35 }
 0x16b   :  { %3809 = vmatpush.bf16.msra.mxu2 %v7558_v44  ;;  %3778 = vmatmul.bf16.vlgmr.msrb.gmra.mxu3 %v10346_v38  ;;  %v9563_v44 = vld [vmem:[#allocation8 + $0xa74] sm:$0xf0]  ;;  %v7621_v45 = vld [vmem:[#allocation8 + $0xb68] sm:$0xf] }
 0x16c   :  { %3822 = vmatpush.bf16.msra.mxu3 %v7686_v47  ;;  %v7238_v47 = vor.u32 %v9499_v33, %v7237_v32  ;;  %v7494_v50 = vor.u32 %v9563_v44, %v7493_v43  ;;  %v7221_v51 = vld [vmem:[#allocation8 + $0x848] sm:$0xf]  ;;  %v9495_v54 = vld [vmem:[#allocation8 + $0x854] sm:$0xf0]  ;;  %v7622_v48 = vor.u32 %v9595_v62, %v7621_v45 }
 0x16d   :  { %3784 = vmatpush.bf16.msra.mxu0 %v7286_v53  ;;  %v7349_v52 = vld [vmem:[#allocation8 + $0x948] sm:$0xf]  ;;  %v3558_v53 = vpop.f32.mrf.mxu2  ;;  %v9559_v57 = vld [vmem:[#allocation8 + $0xa54] sm:$0xf0]  ;;  %v7222_v63 = vor.u32 %v9495_v54, %v7221_v51  ;;  %v3534_v1 = vpop.f32.mrf.mxu0 }
 0x16e   :  { %3797 = vmatpush.bf16.msra.mxu1 %v7414_v55  ;;  %v9527_v55 = vld [vmem:[#allocation8 + $0x954] sm:$0xf0]  ;;  %v3559_v58 = vadd.f32 %v3558_v53, %v3546_v46  ;;  %v3571_v59 = vpop.f32.mrf.mxu3  ;;  %v7333_v5 = vld [vmem:[#allocation8 + $0x928] sm:$0xf]  ;;  %v3547_v7 = vpop.f32.mrf.mxu1 }
 0x16f   :  { %3810 = vmatpush.bf16.msra.mxu2 %v7542_v56  ;;  %v7477_v56 = vld [vmem:[#allocation8 + $0xa48] sm:$0xf]  ;;  %v9591_v61 = vld [vmem:[#allocation8 + $0xb54] sm:$0xf0]  ;;  %v7350_v6 = vor.u32 %v9527_v55, %v7349_v52 }
 0x170   :  { %3823 = vmatpush.bf16.msra.mxu3 %v7670_v60  ;;  %v7605_v60 = vld [vmem:[#allocation8 + $0xb48] sm:$0xf]  ;;  %v10416_v0 = vadd.f32 %v3571_v59, %v3559_v58  ;;  %v9555_v14 = vld [vmem:[#allocation8 + $0xa34] sm:$0xf0] }
 0x171   :  { %3785 = vmatpush.bf16.msra.mxu0 %v7270_v2  ;;  %v7478_v2 = vor.u32 %v9559_v57, %v7477_v56  ;;  %v7606_v10 = vor.u32 %v9591_v61, %v7605_v60  ;;  %v7461_v12 = vld [vmem:[#allocation8 + $0xa28] sm:$0xf]  ;;  %v9587_v17 = vld [vmem:[#allocation8 + $0xb34] sm:$0xf0] }
 0x172   :  { %3798 = vmatpush.bf16.msra.mxu1 %v7398_v3  ;;  %v7205_v3 = vld [vmem:[#allocation8 + $0x828] sm:$0xf]  ;;  %v9487_v28 = vld [vmem:[#allocation8 + $0x814] sm:$0xf0] }
 0x173   :  { %3811 = vmatpush.bf16.msra.mxu2 %v7526_v4  ;;  %v9491_v4 = vld [vmem:[#allocation8 + $0x834] sm:$0xf0]  ;;  %v7589_v16 = vld [vmem:[#allocation8 + $0xb28] sm:$0xf] }
 0x174   :  { %3824 = vmatpush.bf16.msra.mxu3 %v7654_v11  ;;  %v9523_v11 = vld [vmem:[#allocation8 + $0x934] sm:$0xf0]  ;;  %v7206_v21 = vor.u32 %v9491_v4, %v7205_v3  ;;  %v7317_v32 = vld [vmem:[#allocation8 + $0x908] sm:$0xf]  ;;  %v7590_v39 = vor.u32 %v9587_v17, %v7589_v16 }
 0x175   :  { %3786 = vmatpush.bf16.msra.mxu0 %v7254_v24  ;;  %v7189_v24 = vld [vmem:[#allocation8 + $0x808] sm:$0xf]  ;;  %v9519_v33 = vld [vmem:[#allocation8 + $0x914] sm:$0xf0]  ;;  %v3560_v36 = vpop.f32.mrf.mxu2 }
 0x176   :  { %3799 = vmatpush.bf16.msra.mxu1 %v7382_v29  ;;  %v7334_v29 = vor.u32 %v9523_v11, %v7333_v5  ;;  %v7445_v35 = vld [vmem:[#allocation8 + $0xa08] sm:$0xf]  ;;  %v9583_v43 = vld [vmem:[#allocation8 + $0xb14] sm:$0xf0]  ;;  %v3573_v44 = vpop.f32.mrf.mxu3  ;;  %v7318_v54 = vor.u32 %v9519_v33, %v7317_v32 }
 0x177   :  { %3812 = vmatpush.bf16.msra.mxu2 %v7510_v30  ;;  %v7462_v30 = vor.u32 %v9555_v14, %v7461_v12  ;;  %v7573_v42 = vld [vmem:[#allocation8 + $0xb08] sm:$0xf]  ;;  %v9643_v62 = vld [vmem:[#allocation8 + $0xcf4] sm:$0xf0] }
 0x178   :  { %3825 = vmatpush.bf16.msra.mxu3 %v7638_v41  ;;  %v9551_v41 = vld [vmem:[#allocation8 + $0xa14] sm:$0xf0]  ;;  %v7813_v45 = vld [vmem:[#allocation8 + $0xce8] sm:$0xf]  ;;  %v7574_v55 = vor.u32 %v9583_v43, %v7573_v42 }
 0x179   :  { %3787 = vmatpush.bf16.msra.mxu0 %v7238_v47  ;;  %v7941_v46 = vld [vmem:[#allocation8 + $0xde8] sm:$0xf]  ;;  %v7190_v47 = vor.u32 %v9487_v28, %v7189_v24  ;;  %v9707_v51 = vld [vmem:[#allocation8 + $0xef4] sm:$0xf0]  ;;  %v7446_v52 = vor.u32 %v9551_v41, %v7445_v35  ;;  %v7814_v56 = vor.u32 %v9643_v62, %v7813_v45 }
 0x17a   :  { %3800 = vmatpush.bf16.msra.mxu1 %v7366_v49  ;;  %v9675_v49 = vld [vmem:[#allocation8 + $0xdf4] sm:$0xf0]  ;;  %v8197_v53 = vld [vmem:[#allocation8 + $0xfe8] sm:$0xf] }
 0x17b   :  { %3813 = vmatpush.bf16.msra.mxu2 %v7494_v50  ;;  %v8069_v50 = vld [vmem:[#allocation8 + $0xee8] sm:$0xf]  ;;  %v7942_v57 = vor.u32 %v9675_v49, %v7941_v46  ;;  %v9639_v60 = vld [vmem:[#allocation8 + $0xcd4] sm:$0xf0] }
 0x17c   :  { %3826 = vmatpush.bf16.msra.mxu3 %v7622_v48  ;;  %v9739_v48 = vld [vmem:[#allocation8 + $0xff4] sm:$0xf0]  ;;  %v8070_v58 = vor.u32 %v9707_v51, %v8069_v50  ;;  %v7797_v59 = vld [vmem:[#allocation8 + $0xcc8] sm:$0xf] }
 0x17d   :  { %3788 = vmatpush.bf16.msra.mxu0 %v7222_v63  ;;  %v7925_v61 = vld [vmem:[#allocation8 + $0xdc8] sm:$0xf]  ;;  %v8198_v63 = vor.u32 %v9739_v48, %v8197_v53  ;;  %v9671_v1 = vld [vmem:[#allocation8 + $0xdd4] sm:$0xf0]  ;;  %v7798_v5 = vor.u32 %v9639_v60, %v7797_v59 }
 0x17e   :  { %3801 = vmatpush.bf16.msra.mxu1 %v7350_v6  ;;  %v8053_v6 = vld [vmem:[#allocation8 + $0xec8] sm:$0xf]  ;;  %v9735_v4 = vld [vmem:[#allocation8 + $0xfd4] sm:$0xf0]  ;;  %v7926_v7 = vor.u32 %v9671_v1, %v7925_v61 }
 0x17f   :  { %3814 = vmatpush.bf16.msra.mxu2 %v7478_v2  ;;  %v9703_v2 = vld [vmem:[#allocation8 + $0xed4] sm:$0xf0]  ;;  %v8181_v3 = vld [vmem:[#allocation8 + $0xfc8] sm:$0xf] }
 0x180   :  { %3827 = vmatpush.bf16.msra.mxu3 %v7606_v10  ;;  %v8054_v10 = vor.u32 %v9703_v2, %v8053_v6  ;;  %v7781_v11 = vld [vmem:[#allocation8 + $0xca8] sm:$0xf]  ;;  %v9635_v12 = vld [vmem:[#allocation8 + $0xcb4] sm:$0xf0]  ;;  %v8182_v16 = vor.u32 %v9735_v4, %v8181_v3 }
 0x181   :  { %3789 = vmatpush.bf16.msra.mxu0 %v7206_v21  ;;  %v7909_v14 = vld [vmem:[#allocation8 + $0xda8] sm:$0xf]  ;;  %v9667_v17 = vld [vmem:[#allocation8 + $0xdb4] sm:$0xf0] }
 0x182   :  { %3802 = vmatpush.bf16.msra.mxu1 %v7334_v29  ;;  %v8037_v21 = vld [vmem:[#allocation8 + $0xea8] sm:$0xf]  ;;  %v9699_v24 = vld [vmem:[#allocation8 + $0xeb4] sm:$0xf0]  ;;  %v7910_v32 = vor.u32 %v9667_v17, %v7909_v14 }
 0x183   :  { %3815 = vmatpush.bf16.msra.mxu2 %v7462_v30  ;;  %v8165_v28 = vld [vmem:[#allocation8 + $0xfa8] sm:$0xf]  ;;  %v9731_v29 = vld [vmem:[#allocation8 + $0xfb4] sm:$0xf0]  ;;  %v7782_v30 = vor.u32 %v9635_v12, %v7781_v11  ;;  %v8038_v33 = vor.u32 %v9699_v24, %v8037_v21 }
 0x184   :  { %3828 = vmatpush.bf16.msra.mxu3 %v7590_v39  ;;  %v7765_v35 = vld [vmem:[#allocation8 + $0xc88] sm:$0xf]  ;;  %v9631_v36 = vld [vmem:[#allocation8 + $0xc94] sm:$0xf0]  ;;  %v8166_v41 = vor.u32 %v9731_v29, %v8165_v28 }
 0x185   :  { %3790 = vmatpush.bf16.msra.mxu0 %v7190_v47  ;;  %v7893_v39 = vld [vmem:[#allocation8 + $0xd88] sm:$0xf]  ;;  %v9663_v42 = vld [vmem:[#allocation8 + $0xd94] sm:$0xf0]  ;;  %v3584_v45 = vpop.f32.mrf.mxu0  ;;  %v7766_v49 = vor.u32 %v9631_v36, %v7765_v35 }
 0x186   :  { %3803 = vmatpush.bf16.msra.mxu1 %v7318_v54  ;;  %v8021_v43 = vld [vmem:[#allocation8 + $0xe88] sm:$0xf]  ;;  %v9695_v44 = vld [vmem:[#allocation8 + $0xe94] sm:$0xf0]  ;;  %v3585_v47 = vadd.f32 %v3584_v45, %v10416_v0  ;;  %v3597_v50 = vpop.f32.mrf.mxu1  ;;  %v7894_v51 = vor.u32 %v9663_v42, %v7893_v39 }
 0x187   :  { %3816 = vmatpush.bf16.msra.mxu2 %v7446_v52  ;;  %v8149_v62 = vld [vmem:[#allocation8 + $0xf88] sm:$0xf]  ;;  %v9727_v46 = vld [vmem:[#allocation8 + $0xf94] sm:$0xf0]  ;;  %v8022_v54 = vor.u32 %v9695_v44, %v8021_v43 }
 0x188   :  { %3829 = vmatpush.bf16.msra.mxu3 %v7574_v55  ;;  %3791 = vmatmul.bf16.vlgmr.msra.gmra.mxu0 %v10354_v18  ;;  %v7749_v52 = vld [vmem:[#allocation8 + $0xc68] sm:$0xf]  ;;  %v9627_v53 = vld [vmem:[#allocation8 + $0xc74] sm:$0xf0]  ;;  %v8150_v55 = vor.u32 %v9727_v46, %v8149_v62 }
 0x189   :  { %3835 = vmatpush.bf16.msrb.mxu0 %v7814_v56  ;;  %3804 = vmatmul.bf16.vlgmr.msra.gmra.mxu1 %v10358_v23  ;;  %v7877_v48 = vld [vmem:[#allocation8 + $0xd68] sm:$0xf]  ;;  %v3598_v56 = vadd.f32 %v3597_v50, %v3585_v47  ;;  %v9691_v59 = vld [vmem:[#allocation8 + $0xe74] sm:$0xf0] }
 0x18a   :  { %3848 = vmatpush.bf16.msrb.mxu1 %v7942_v57  ;;  %3817 = vmatmul.bf16.vlgmr.msra.gmra.mxu2 %v10356_v22  ;;  %v9659_v57 = vld [vmem:[#allocation8 + $0xd74] sm:$0xf0]  ;;  %v8133_v60 = vld [vmem:[#allocation8 + $0xf68] sm:$0xf] }
 0x18b   :  { %3861 = vmatpush.bf16.msrb.mxu2 %v8070_v58  ;;  %3830 = vmatmul.bf16.vlgmr.msra.gmra.mxu3 %v10360_v27  ;;  %v8005_v58 = vld [vmem:[#allocation8 + $0xe68] sm:$0xf]  ;;  %v9723_v61 = vld [vmem:[#allocation8 + $0xf74] sm:$0xf0]  ;;  %v7878_v0 = vor.u32 %v9659_v57, %v7877_v48 }
 0x18c   :  { %3874 = vmatpush.bf16.msrb.mxu3 %v8198_v63  ;;  %v7750_v63 = vor.u32 %v9627_v53, %v7749_v52  ;;  %v8006_v1 = vor.u32 %v9691_v59, %v8005_v58  ;;  %v7733_v6 = vld [vmem:[#allocation8 + $0xc48] sm:$0xf]  ;;  %v9623_v2 = vld [vmem:[#allocation8 + $0xc54] sm:$0xf0]  ;;  %v8134_v4 = vor.u32 %v9723_v61, %v8133_v60  ;;  %v9257_v58 = vld [vmem:[#allocation8 + $0xec] sm:$0xf] }
 0x18d   :  { %3836 = vmatpush.bf16.msrb.mxu0 %v7798_v5  ;;  %v7861_v3 = vld [vmem:[#allocation8 + $0xd48] sm:$0xf]  ;;  %v3610_v5 = vpop.f32.mrf.mxu2  ;;  %v9687_v11 = vld [vmem:[#allocation8 + $0xe54] sm:$0xf0]  ;;  %v3586_v21 = vpop.f32.mrf.mxu0  ;;  %v7734_v24 = vor.u32 %v9623_v2, %v7733_v6  ;;  %v6279_v59 = vld [vmem:[#allocation8 + $0xf8] sm:$0xf0] }
 0x18e   :  { %3849 = vmatpush.bf16.msrb.mxu1 %v7926_v7  ;;  %v9655_v7 = vld [vmem:[#allocation8 + $0xd54] sm:$0xf0]  ;;  %v3611_v12 = vadd.f32 %v3610_v5, %v3598_v56  ;;  %v3623_v14 = vpop.f32.mrf.mxu3  ;;  %v3599_v28 = vpop.f32.mrf.mxu1  ;;  %v7845_v36 = vld [vmem:[#allocation8 + $0xd28] sm:$0xf]  ;;  %v9289_v60 = vld [vmem:[#allocation8 + $0x1ec] sm:$0xf] }
 0x18f   :  { %3862 = vmatpush.bf16.msrb.mxu2 %v8054_v10  ;;  %v7989_v10 = vld [vmem:[#allocation8 + $0xe48] sm:$0xf]  ;;  %v9719_v17 = vld [vmem:[#allocation8 + $0xf54] sm:$0xf0]  ;;  %v6535_v6 = vld [vmem:[#allocation8 + $0x2f8] sm:$0xf0] }
 0x190   :  { %3875 = vmatpush.bf16.msrb.mxu3 %v8182_v16  ;;  %v8117_v16 = vld [vmem:[#allocation8 + $0xf48] sm:$0xf]  ;;  %v10423_v29 = vadd.f32 %v3623_v14, %v3611_v12  ;;  %v9619_v35 = vld [vmem:[#allocation8 + $0xc34] sm:$0xf0]  ;;  %v6663_v5 = vld [vmem:[#allocation8 + $0x3f8] sm:$0xf0] }
 0x191   :  { %3837 = vmatpush.bf16.msrb.mxu0 %v7782_v30  ;;  %v7862_v30 = vor.u32 %v9655_v7, %v7861_v3  ;;  %v8118_v39 = vor.u32 %v9719_v17, %v8117_v16  ;;  %v7973_v42 = vld [vmem:[#allocation8 + $0xe28] sm:$0xf]  ;;  %v9683_v43 = vld [vmem:[#allocation8 + $0xe34] sm:$0xf0]  ;;  %v9253_v14 = vld [vmem:[#allocation8 + $0xcc] sm:$0xf] }
 0x192   :  { %3850 = vmatpush.bf16.msrb.mxu1 %v7910_v32  ;;  %v7990_v32 = vor.u32 %v9687_v11, %v7989_v10  ;;  %v8101_v44 = vld [vmem:[#allocation8 + $0xf28] sm:$0xf]  ;;  %v9715_v45 = vld [vmem:[#allocation8 + $0xf34] sm:$0xf0]  ;;  %v7974_v50 = vor.u32 %v9683_v43, %v7973_v42  ;;  %v6282_v10 = vor.u32 %v9257_v58, %v6279_v59  ;;  %v6263_v16 = vld [vmem:[#allocation8 + $0xd8] sm:$0xf0] }
 0x193   :  { %3863 = vmatpush.bf16.msrb.mxu2 %v8038_v33  ;;  %v7717_v33 = vld [vmem:[#allocation8 + $0xc28] sm:$0xf]  ;;  %v9615_v47 = vld [vmem:[#allocation8 + $0xc14] sm:$0xf0]  ;;  %v8102_v53 = vor.u32 %v9715_v45, %v8101_v44  ;;  %v9285_v17 = vld [vmem:[#allocation8 + $0x1cc] sm:$0xf] }
 0x194   :  { %3876 = vmatpush.bf16.msrb.mxu3 %v8166_v41  ;;  %v9651_v41 = vld [vmem:[#allocation8 + $0xd34] sm:$0xf0]  ;;  %v7718_v62 = vor.u32 %v9619_v35, %v7717_v33  ;;  %v7701_v46 = vld [vmem:[#allocation8 + $0xc08] sm:$0xf]  ;;  %v9317_v28 = vld [vmem:[#allocation8 + $0x2cc] sm:$0xf]  ;;  %v6266_v35 = vor.u32 %v9253_v14, %v6263_v16 }
 0x195   :  { %3838 = vmatpush.bf16.msrb.mxu0 %v7766_v49  ;;  %v7846_v49 = vor.u32 %v9651_v41, %v7845_v36  ;;  %v7957_v52 = vld [vmem:[#allocation8 + $0xe08] sm:$0xf]  ;;  %v9679_v48 = vld [vmem:[#allocation8 + $0xe14] sm:$0xf0]  ;;  %v3612_v57 = vpop.f32.mrf.mxu2  ;;  %v6647_v33 = vld [vmem:[#allocation8 + $0x3d8] sm:$0xf0] }
 0x196   :  { %3851 = vmatpush.bf16.msrb.mxu1 %v7894_v51  ;;  %v7829_v51 = vld [vmem:[#allocation8 + $0xd08] sm:$0xf]  ;;  %v9711_v56 = vld [vmem:[#allocation8 + $0xf14] sm:$0xf0]  ;;  %v3625_v61 = vpop.f32.mrf.mxu3  ;;  %v7958_v3 = vor.u32 %v9679_v48, %v7957_v52  ;;  %v9249_v41 = vld [vmem:[#allocation8 + $0xac] sm:$0xf] }
 0x197   :  { %3864 = vmatpush.bf16.msrb.mxu2 %v8022_v54  ;;  %v9647_v54 = vld [vmem:[#allocation8 + $0xd14] sm:$0xf0]  ;;  %v6247_v42 = vld [vmem:[#allocation8 + $0xb8] sm:$0xf0]  ;;  %v9281_v43 = vld [vmem:[#allocation8 + $0x1ac] sm:$0xf] }
 0x198   :  { %3877 = vmatpush.bf16.msrb.mxu3 %v8150_v55  ;;  %v8085_v55 = vld [vmem:[#allocation8 + $0xf08] sm:$0xf]  ;;  %v7830_v2 = vor.u32 %v9647_v54, %v7829_v51  ;;  %v6375_v45 = vld [vmem:[#allocation8 + $0x1b8] sm:$0xf0]  ;;  %v9245_v52 = vld [vmem:[#allocation8 + $0x8c] sm:$0xf] }
 0x199   :  { %3839 = vmatpush.bf16.msrb.mxu0 %v7750_v63  ;;  %v7702_v63 = vor.u32 %v9615_v47, %v7701_v46  ;;  %v8086_v7 = vor.u32 %v9711_v56, %v8085_v55  ;;  %v6503_v46 = vld [vmem:[#allocation8 + $0x2b8] sm:$0xf0]  ;;  %v9345_v47 = vld [vmem:[#allocation8 + $0x3ac] sm:$0xf]  ;;  %v6378_v51 = vor.u32 %v9281_v43, %v6375_v45 }
 0x19a   :  { %3852 = vmatpush.bf16.msrb.mxu1 %v7878_v0  ;;  %v6407_v0 = vld [vmem:[#allocation8 + $0x1f8] sm:$0xf0]  ;;  %v9277_v48 = vld [vmem:[#allocation8 + $0x18c] sm:$0xf] }
 0x19b   :  { %3865 = vmatpush.bf16.msrb.mxu2 %v8006_v1  ;;  %v9321_v1 = vld [vmem:[#allocation8 + $0x2ec] sm:$0xf]  ;;  %v6410_v11 = vor.u32 %v9289_v60, %v6407_v0  ;;  %v6359_v56 = vld [vmem:[#allocation8 + $0x198] sm:$0xf0] }
 0x19c   :  { %3878 = vmatpush.bf16.msrb.mxu3 %v8134_v4  ;;  %v9353_v4 = vld [vmem:[#allocation8 + $0x3ec] sm:$0xf]  ;;  %v6538_v12 = vor.u32 %v9321_v1, %v6535_v6  ;;  %v6487_v58 = vld [vmem:[#allocation8 + $0x298] sm:$0xf0]  ;;  %v6362_v6 = vor.u32 %v9277_v48, %v6359_v56 }
 0x19d   :  { %3840 = vmatpush.bf16.msrb.mxu0 %v7734_v24  ;;  %v6666_v21 = vor.u32 %v9353_v4, %v6663_v5  ;;  %v6391_v24 = vld [vmem:[#allocation8 + $0x1d8] sm:$0xf0]  ;;  %v9309_v57 = vld [vmem:[#allocation8 + $0x28c] sm:$0xf] }
 0x19e   :  { %3853 = vmatpush.bf16.msrb.mxu1 %v7862_v30  ;;  %v6519_v30 = vld [vmem:[#allocation8 + $0x2d8] sm:$0xf0]  ;;  %v6394_v36 = vor.u32 %v9285_v17, %v6391_v24  ;;  %v9341_v60 = vld [vmem:[#allocation8 + $0x38c] sm:$0xf] }
 0x19f   :  { %3866 = vmatpush.bf16.msrb.mxu2 %v7990_v32  ;;  %v9349_v32 = vld [vmem:[#allocation8 + $0x3cc] sm:$0xf]  ;;  %v6615_v61 = vld [vmem:[#allocation8 + $0x398] sm:$0xf0] }
 0x1a0   :  { %3879 = vmatpush.bf16.msrb.mxu3 %v8118_v39  ;;  %v6522_v39 = vor.u32 %v9317_v28, %v6519_v30  ;;  %v6650_v44 = vor.u32 %v9349_v32, %v6647_v33  ;;  %v6215_v4 = vld [vmem:[#allocation8 + $0x78] sm:$0xf0]  ;;  %v9273_v5 = vld [vmem:[#allocation8 + $0x16c] sm:$0xf] }
 0x1a1   :  { %3841 = vmatpush.bf16.msrb.mxu0 %v7718_v62  ;;  %v9313_v62 = vld [vmem:[#allocation8 + $0x2ac] sm:$0xf]  ;;  %v6471_v14 = vld [vmem:[#allocation8 + $0x278] sm:$0xf0] }
 0x1a2   :  { %3854 = vmatpush.bf16.msrb.mxu1 %v7846_v49  ;;  %v6631_v49 = vld [vmem:[#allocation8 + $0x3b8] sm:$0xf0]  ;;  %v6506_v54 = vor.u32 %v9313_v62, %v6503_v46  ;;  %v9337_v16 = vld [vmem:[#allocation8 + $0x36c] sm:$0xf] }
 0x1a3   :  { %3867 = vmatpush.bf16.msrb.mxu2 %v7974_v50  ;;  %v6250_v50 = vor.u32 %v9249_v41, %v6247_v42  ;;  %v6634_v55 = vor.u32 %v9345_v47, %v6631_v49  ;;  %v6599_v17 = vld [vmem:[#allocation8 + $0x378] sm:$0xf0]  ;;  %v9237_v28 = vld [vmem:[#allocation8 + $0x4c] sm:$0xf] }
 0x1a4   :  { %3880 = vmatpush.bf16.msrb.mxu3 %v8102_v53  ;;  %v6231_v53 = vld [vmem:[#allocation8 + $0x98] sm:$0xf0]  ;;  %v9269_v32 = vld [vmem:[#allocation8 + $0x14c] sm:$0xf]  ;;  %v6602_v33 = vor.u32 %v9337_v16, %v6599_v17 }
 0x1a5   :  { %3842 = vmatpush.bf16.msrb.mxu0 %v7702_v63  ;;  %v3636_v59 = vpop.f32.mrf.mxu0  ;;  %v6234_v0 = vor.u32 %v9245_v52, %v6231_v53  ;;  %v6199_v30 = vld [vmem:[#allocation8 + $0x58] sm:$0xf0]  ;;  %v9265_v53 = vld [vmem:[#allocation8 + $0x12c] sm:$0xf] }
 0x1a6   :  { %3855 = vmatpush.bf16.msrb.mxu1 %v7830_v2  ;;  %v3637_v63 = vadd.f32 %v3636_v59, %v10423_v29  ;;  %v3649_v1 = vpop.f32.mrf.mxu1  ;;  %v6490_v2 = vor.u32 %v9309_v57, %v6487_v58  ;;  %v6455_v41 = vld [vmem:[#allocation8 + $0x258] sm:$0xf0]  ;;  %v6202_v46 = vor.u32 %v9237_v28, %v6199_v30  ;;  %v9297_v56 = vld [vmem:[#allocation8 + $0x22c] sm:$0xf] }
 0x1a7   :  { %3868 = vmatpush.bf16.msrb.mxu2 %v7958_v3  ;;  %v9241_v3 = vld [vmem:[#allocation8 + $0x6c] sm:$0xf]  ;;  %v6583_v45 = vld [vmem:[#allocation8 + $0x358] sm:$0xf0] }
 0x1a8   :  { %3881 = vmatpush.bf16.msrb.mxu3 %v8086_v7  ;;  %3843 = vmatmul.bf16.vlgmr.msrb.gmra.mxu0 %v10366_v13  ;;  %v6618_v7 = vor.u32 %v9341_v60, %v6615_v61  ;;  %v6183_v52 = vld [vmem:[#allocation8 + $0x38] sm:$0xf0]  ;;  %v9329_v58 = vld [vmem:[#allocation8 + $0x32c] sm:$0xf] }
 0x1a9   :  { %3887 = vmatpush.bf16.msra.mxu0 %v6282_v10  ;;  %3856 = vmatmul.bf16.vlgmr.msrb.gmra.mxu1 %v10370_v20  ;;  %v3650_v10 = vadd.f32 %v3649_v1, %v3637_v63  ;;  %v6439_v57 = vld [vmem:[#allocation8 + $0x238] sm:$0xf0]  ;;  %v9229_v61 = vld [vmem:[#allocation8 + $0xc] sm:$0xf] }
 0x1aa   :  { %3900 = vmatpush.bf16.msra.mxu1 %v6410_v11  ;;  %3869 = vmatmul.bf16.vlgmr.msrb.gmra.mxu2 %v10368_v19  ;;  %v6343_v11 = vld [vmem:[#allocation8 + $0x178] sm:$0xf0]  ;;  %v6442_v1 = vor.u32 %v9297_v56, %v6439_v57  ;;  %v9417_v16 = vld [vmem:[#allocation8 + $0x5ec] sm:$0xf] }
 0x1ab   :  { %3913 = vmatpush.bf16.msra.mxu2 %v6538_v12  ;;  %3882 = vmatmul.bf16.vlgmr.msrb.gmra.mxu3 %v10372_v26  ;;  %v9305_v12 = vld [vmem:[#allocation8 + $0x26c] sm:$0xf]  ;;  %v6346_v29 = vor.u32 %v9273_v5, %v6343_v11  ;;  %v6567_v59 = vld [vmem:[#allocation8 + $0x338] sm:$0xf0] }
 0x1ac   :  { %3926 = vmatpush.bf16.msra.mxu3 %v6666_v21  ;;  %v6218_v21 = vor.u32 %v9241_v3, %v6215_v4  ;;  %v6474_v24 = vor.u32 %v9305_v12, %v6471_v14  ;;  %v6167_v63 = vld [vmem:[#allocation8 + $0x18] sm:$0xf0]  ;;  %v9293_v3 = vld [vmem:[#allocation8 + $0x20c] sm:$0xf]  ;;  %v6570_v4 = vor.u32 %v9329_v58, %v6567_v59 }
 0x1ad   :  { %3888 = vmatpush.bf16.msra.mxu0 %v6266_v35  ;;  %v3662_v35 = vpop.f32.mrf.mxu2  ;;  %v3638_v62 = vpop.f32.mrf.mxu0  ;;  %v6423_v5 = vld [vmem:[#allocation8 + $0x218] sm:$0xf0]  ;;  %v9385_v12 = vld [vmem:[#allocation8 + $0x4ec] sm:$0xf] }
 0x1ae   :  { %3901 = vmatpush.bf16.msra.mxu1 %v6394_v36  ;;  %v6327_v36 = vld [vmem:[#allocation8 + $0x158] sm:$0xf0]  ;;  %v3663_v42 = vadd.f32 %v3662_v35, %v3650_v10  ;;  %v3675_v43 = vpop.f32.mrf.mxu3  ;;  %v3651_v47 = vpop.f32.mrf.mxu1  ;;  %v9409_v57 = vld [vmem:[#allocation8 + $0x5ac] sm:$0xf] }
 0x1af   :  { %3914 = vmatpush.bf16.msra.mxu2 %v6522_v39  ;;  %v9301_v39 = vld [vmem:[#allocation8 + $0x24c] sm:$0xf]  ;;  %v6551_v10 = vld [vmem:[#allocation8 + $0x318] sm:$0xf0] }
 0x1b0   :  { %3927 = vmatpush.bf16.msra.mxu3 %v6650_v44  ;;  %v9333_v44 = vld [vmem:[#allocation8 + $0x34c] sm:$0xf]  ;;  %v10430_v49 = vadd.f32 %v3675_v43, %v3663_v42  ;;  %v6791_v14 = vld [vmem:[#allocation8 + $0x4f8] sm:$0xf0] }
 0x1b1   :  { %3889 = vmatpush.bf16.msra.mxu0 %v6250_v50  ;;  %v6330_v50 = vor.u32 %v9269_v32, %v6327_v36  ;;  %v6586_v48 = vor.u32 %v9333_v44, %v6583_v45  ;;  %v7047_v28 = vld [vmem:[#allocation8 + $0x6f8] sm:$0xf0]  ;;  %v6426_v32 = vor.u32 %v9293_v3, %v6423_v5  ;;  %v9381_v43 = vld [vmem:[#allocation8 + $0x4cc] sm:$0xf] }
 0x1b2   :  { %3902 = vmatpush.bf16.msra.mxu1 %v6378_v51  ;;  %v6458_v51 = vor.u32 %v9301_v39, %v6455_v41  ;;  %v7175_v35 = vld [vmem:[#allocation8 + $0x7f8] sm:$0xf0]  ;;  %v6794_v39 = vor.u32 %v9385_v12, %v6791_v14  ;;  %v9413_v45 = vld [vmem:[#allocation8 + $0x5cc] sm:$0xf] }
 0x1b3   :  { %3915 = vmatpush.bf16.msra.mxu2 %v6506_v54  ;;  %v9233_v54 = vld [vmem:[#allocation8 + $0x2c] sm:$0xf]  ;;  %v6775_v44 = vld [vmem:[#allocation8 + $0x4d8] sm:$0xf0] }
 0x1b4   :  { %3928 = vmatpush.bf16.msra.mxu3 %v6634_v55  ;;  %v6311_v55 = vld [vmem:[#allocation8 + $0x138] sm:$0xf0]  ;;  %v6186_v60 = vor.u32 %v9233_v54, %v6183_v52  ;;  %v9445_v47 = vld [vmem:[#allocation8 + $0x6cc] sm:$0xf]  ;;  %v6778_v52 = vor.u32 %v9381_v43, %v6775_v44 }
 0x1b5   :  { %3890 = vmatpush.bf16.msra.mxu0 %v6234_v0  ;;  %v6314_v0 = vor.u32 %v9265_v53, %v6311_v55  ;;  %v3664_v11 = vpop.f32.mrf.mxu2  ;;  %v7159_v54 = vld [vmem:[#allocation8 + $0x7d8] sm:$0xf0]  ;;  %v9377_v55 = vld [vmem:[#allocation8 + $0x4ac] sm:$0xf] }
 0x1b6   :  { %3903 = vmatpush.bf16.msra.mxu1 %v6362_v6  ;;  %v9261_v6 = vld [vmem:[#allocation8 + $0x10c] sm:$0xf]  ;;  %v3677_v17 = vpop.f32.mrf.mxu3  ;;  %v6759_v56 = vld [vmem:[#allocation8 + $0x4b8] sm:$0xf0] }
 0x1b7   :  { %3916 = vmatpush.bf16.msra.mxu2 %v6490_v2  ;;  %v6295_v2 = vld [vmem:[#allocation8 + $0x118] sm:$0xf0]  ;;  %v9405_v5 = vld [vmem:[#allocation8 + $0x58c] sm:$0xf] }
 0x1b8   :  { %3929 = vmatpush.bf16.msra.mxu3 %v6618_v7  ;;  %v9325_v7 = vld [vmem:[#allocation8 + $0x30c] sm:$0xf]  ;;  %v6298_v30 = vor.u32 %v9261_v6, %v6295_v2  ;;  %v6887_v59 = vld [vmem:[#allocation8 + $0x5b8] sm:$0xf0] }
 0x1b9   :  { %3891 = vmatpush.bf16.msra.mxu0 %v6218_v21  ;;  %v6170_v21 = vor.u32 %v9229_v61, %v6167_v63  ;;  %v6554_v36 = vor.u32 %v9325_v7, %v6551_v10  ;;  %v7015_v61 = vld [vmem:[#allocation8 + $0x6b8] sm:$0xf0]  ;;  %v9473_v63 = vld [vmem:[#allocation8 + $0x7ac] sm:$0xf]  ;;  %v6890_v2 = vor.u32 %v9409_v57, %v6887_v59  ;;  %v10012_v7 = vld [vmem:[#allocation9] sm:$0xf] }
 0x1ba   :  { %3904 = vmatpush.bf16.msra.mxu1 %v6346_v29  ;;  %v6919_v29 = vld [vmem:[#allocation8 + $0x5f8] sm:$0xf0]  ;;  %v9373_v6 = vld [vmem:[#allocation8 + $0x48c] sm:$0xf]  ;;  %v697_v10 = vperm.slane %v10012_v7, 2 }
 0x1bb   :  { %3917 = vmatpush.bf16.msra.mxu2 %v6474_v24  ;;  %v9449_v24 = vld [vmem:[#allocation8 + $0x6ec] sm:$0xf]  ;;  %v6922_v41 = vor.u32 %v9417_v16, %v6919_v29  ;;  %v6871_v11 = vld [vmem:[#allocation8 + $0x598] sm:$0xf0] }
 0x1bc   :  { %3930 = vmatpush.bf16.msra.mxu3 %v6602_v33  ;;  %v9481_v33 = vld [vmem:[#allocation8 + $0x7ec] sm:$0xf]  ;;  %v7050_v42 = vor.u32 %v9449_v24, %v7047_v28  ;;  %v6727_v24 = vld [vmem:[#allocation8 + $0x478] sm:$0xf0] }
 0x1bd   :  { %3892 = vmatpush.bf16.msra.mxu0 %v6202_v46  ;;  %v7178_v62 = vor.u32 %v9481_v33, %v7175_v35  ;;  %v6903_v46 = vld [vmem:[#allocation8 + $0x5d8] sm:$0xf0]  ;;  %v9437_v12 = vld [vmem:[#allocation8 + $0x68c] sm:$0xf] }
 0x1be   :  { %3905 = vmatpush.bf16.msra.mxu1 %v6330_v50  ;;  %v7031_v50 = vld [vmem:[#allocation8 + $0x6d8] sm:$0xf0]  ;;  %v6906_v53 = vor.u32 %v9413_v45, %v6903_v46  ;;  %v9469_v14 = vld [vmem:[#allocation8 + $0x78c] sm:$0xf] }
 0x1bf   :  { %3918 = vmatpush.bf16.msra.mxu2 %v6458_v51  ;;  %v9477_v51 = vld [vmem:[#allocation8 + $0x7cc] sm:$0xf]  ;;  %v6855_v35 = vld [vmem:[#allocation8 + $0x578] sm:$0xf0] }
 0x1c0   :  { %3931 = vmatpush.bf16.msra.mxu3 %v6586_v48  ;;  %v7034_v48 = vor.u32 %v9445_v47, %v7031_v50  ;;  %v7162_v58 = vor.u32 %v9477_v51, %v7159_v54  ;;  %v9369_v29 = vld [vmem:[#allocation8 + $0x46c] sm:$0xf]  ;;  %v6711_v47 = vld [vmem:[#allocation8 + $0x458] sm:$0xf0] }
 0x1c1   :  { %3893 = vmatpush.bf16.msra.mxu0 %v6186_v60  ;;  %v9441_v60 = vld [vmem:[#allocation8 + $0x6ac] sm:$0xf]  ;;  %v6730_v44 = vor.u32 %v9369_v29, %v6727_v24 }
 0x1c2   :  { %3906 = vmatpush.bf16.msra.mxu1 %v6314_v0  ;;  %v7143_v0 = vld [vmem:[#allocation8 + $0x7b8] sm:$0xf0]  ;;  %v7018_v3 = vor.u32 %v9441_v60, %v7015_v61  ;;  %v9401_v28 = vld [vmem:[#allocation8 + $0x56c] sm:$0xf] }
 0x1c3   :  { %3919 = vmatpush.bf16.msra.mxu2 %v6442_v1  ;;  %v6762_v1 = vor.u32 %v9377_v55, %v6759_v56  ;;  %v6858_v45 = vor.u32 %v9401_v28, %v6855_v35  ;;  %v9365_v46 = vld [vmem:[#allocation8 + $0x44c] sm:$0xf]  ;;  %v6935_v28 = vld [vmem:[#allocation8 + $0x618] sm:$0xf0] }
 0x1c4   :  { %3932 = vmatpush.bf16.msra.mxu3 %v6570_v4  ;;  %v6743_v4 = vld [vmem:[#allocation8 + $0x498] sm:$0xf0]  ;;  %v9397_v50 = vld [vmem:[#allocation8 + $0x54c] sm:$0xf]  ;;  %v6714_v59 = vor.u32 %v9365_v46, %v6711_v47 }
 0x1c5   :  { %3894 = vmatpush.bf16.msra.mxu0 %v6170_v21  ;;  %v6746_v16 = vor.u32 %v9373_v6, %v6743_v4  ;;  %v3688_v17 = vpop.f32.mrf.mxu0  ;;  %v9461_v57 = vld [vmem:[#allocation8 + $0x74c] sm:$0xf]  ;;  %v6695_v6 = vld [vmem:[#allocation8 + $0x438] sm:$0xf0] }
 0x1c6   :  { %3907 = vmatpush.bf16.msra.mxu1 %v6298_v30  ;;  %v3689_v30 = vadd.f32 %v3688_v17, %v697_v10  ;;  %v9425_v7 = vld [vmem:[#allocation8 + $0x62c] sm:$0xf]  ;;  %v6951_v10 = vld [vmem:[#allocation8 + $0x638] sm:$0xf0] }
 0x1c7   :  { %3920 = vmatpush.bf16.msra.mxu2 %v6426_v32  ;;  %v3701_v32 = vpop.f32.mrf.mxu1  ;;  %v9389_v17 = vld [vmem:[#allocation8 + $0x50c] sm:$0xf]  ;;  %v7687_v47 = vld [vmem:[#allocation8 + $0xbf8] sm:$0xf0] }
 0x1c8   :  { %3933 = vmatpush.bf16.msra.mxu3 %v6554_v36  ;;  %3895 = vmatmul.bf16.vlgmr.msra.gmra.mxu0 %v10332_v9  ;;  %v6999_v9 = vld [vmem:[#allocation8 + $0x698] sm:$0xf0]  ;;  %v9433_v36 = vld [vmem:[#allocation8 + $0x66c] sm:$0xf]  ;;  %v3702_v43 = vadd.f32 %v3701_v32, %v3689_v30 }
 0x1c9   :  { %3939 = vmatpush.bf16.msrb.mxu0 %v6794_v39  ;;  %3908 = vmatmul.bf16.vlgmr.msra.gmra.mxu1 %v10339_v25  ;;  %v6874_v25 = vor.u32 %v9405_v5, %v6871_v11  ;;  %v7002_v21 = vor.u32 %v9437_v12, %v6999_v9  ;;  %v6983_v39 = vld [vmem:[#allocation8 + $0x678] sm:$0xf0]  ;;  %v9357_v9 = vld [vmem:[#allocation8 + $0x40c] sm:$0xf] }
 0x1ca   :  { %3952 = vmatpush.bf16.msrb.mxu1 %v6922_v41  ;;  %3921 = vmatmul.bf16.vlgmr.msra.gmra.mxu2 %v10330_v8  ;;  %v7146_v8 = vor.u32 %v9473_v63, %v7143_v0  ;;  %v9465_v41 = vld [vmem:[#allocation8 + $0x76c] sm:$0xf]  ;;  %v6823_v5 = vld [vmem:[#allocation8 + $0x538] sm:$0xf0] }
 0x1cb   :  { %3965 = vmatpush.bf16.msrb.mxu2 %v7050_v42  ;;  %3934 = vmatmul.bf16.vlgmr.msra.gmra.mxu3 %v10334_v15  ;;  %v7127_v15 = vld [vmem:[#allocation8 + $0x798] sm:$0xf0]  ;;  %v9453_v30 = vld [vmem:[#allocation8 + $0x70c] sm:$0xf] }
 0x1cc   :  { %3978 = vmatpush.bf16.msrb.mxu3 %v7178_v62  ;;  %v7130_v33 = vor.u32 %v9469_v14, %v7127_v15  ;;  %v7111_v42 = vld [vmem:[#allocation8 + $0x778] sm:$0xf0]  ;;  %v6986_v62 = vor.u32 %v9433_v36, %v6983_v39  ;;  %v9513_v35 = vld [vmem:[#allocation8 + $0x8ec] sm:$0xf] }
 0x1cd   :  { %3940 = vmatpush.bf16.msrb.mxu0 %v6778_v52  ;;  %v3714_v51 = vpop.f32.mrf.mxu2  ;;  %v7114_v54 = vor.u32 %v9465_v41, %v7111_v42  ;;  %v6839_v52 = vld [vmem:[#allocation8 + $0x558] sm:$0xf0]  ;;  %v3690_v61 = vpop.f32.mrf.mxu0  ;;  %v9545_v39 = vld [vmem:[#allocation8 + $0x9ec] sm:$0xf] }
 0x1ce   :  { %3953 = vmatpush.bf16.msrb.mxu1 %v6906_v53  ;;  %v9429_v53 = vld [vmem:[#allocation8 + $0x64c] sm:$0xf]  ;;  %v3715_v55 = vadd.f32 %v3714_v51, %v3702_v43  ;;  %v3727_v56 = vpop.f32.mrf.mxu3  ;;  %v6842_v63 = vor.u32 %v9397_v50, %v6839_v52  ;;  %v7079_v11 = vld [vmem:[#allocation8 + $0x738] sm:$0xf0] }
 0x1cf   :  { %3966 = vmatpush.bf16.msrb.mxu2 %v7034_v48  ;;  %v6967_v48 = vld [vmem:[#allocation8 + $0x658] sm:$0xf0]  ;;  %v9577_v43 = vld [vmem:[#allocation8 + $0xaec] sm:$0xf] }
 0x1d0   :  { %3979 = vmatpush.bf16.msrb.mxu3 %v7162_v58  ;;  %v7095_v58 = vld [vmem:[#allocation8 + $0x758] sm:$0xf0]  ;;  %v10436_v60 = vadd.f32 %v3727_v56, %v3715_v55  ;;  %v6970_v0 = vor.u32 %v9429_v53, %v6967_v48  ;;  %v9609_v46 = vld [vmem:[#allocation8 + $0xbec] sm:$0xf] }
 0x1d1   :  { %3941 = vmatpush.bf16.msrb.mxu0 %v6762_v1  ;;  %v9361_v1 = vld [vmem:[#allocation8 + $0x42c] sm:$0xf]  ;;  %v7098_v4 = vor.u32 %v9461_v57, %v7095_v58  ;;  %v6679_v14 = vld [vmem:[#allocation8 + $0x418] sm:$0xf0]  ;;  %v7690_v56 = vor.u32 %v9609_v46, %v7687_v47 }
 0x1d2   :  { %3954 = vmatpush.bf16.msrb.mxu1 %v6890_v2  ;;  %v9393_v2 = vld [vmem:[#allocation8 + $0x52c] sm:$0xf]  ;;  %v6698_v12 = vor.u32 %v9361_v1, %v6695_v6  ;;  %v7063_v32 = vld [vmem:[#allocation8 + $0x718] sm:$0xf0]  ;;  %v6682_v41 = vor.u32 %v9357_v9, %v6679_v14 }
 0x1d3   :  { %3967 = vmatpush.bf16.msrb.mxu2 %v7018_v3  ;;  %v3703_v3 = vpop.f32.mrf.mxu1  ;;  %v6826_v15 = vor.u32 %v9393_v2, %v6823_v5  ;;  %v7303_v36 = vld [vmem:[#allocation8 + $0x8f8] sm:$0xf0]  ;;  %v7066_v50 = vor.u32 %v9453_v30, %v7063_v32  ;;  %v9509_v53 = vld [vmem:[#allocation8 + $0x8cc] sm:$0xf] }
 0x1d4   :  { %3980 = vmatpush.bf16.msrb.mxu3 %v7146_v8  ;;  %v9457_v8 = vld [vmem:[#allocation8 + $0x72c] sm:$0xf]  ;;  %v7431_v42 = vld [vmem:[#allocation8 + $0x9f8] sm:$0xf0]  ;;  %v7306_v51 = vor.u32 %v9513_v35, %v7303_v36 }
 0x1d5   :  { %3942 = vmatpush.bf16.msrb.mxu0 %v6746_v16  ;;  %v6954_v16 = vor.u32 %v9425_v7, %v6951_v10  ;;  %v3716_v29 = vpop.f32.mrf.mxu2  ;;  %v7082_v24 = vor.u32 %v9457_v8, %v7079_v11  ;;  %v7287_v48 = vld [vmem:[#allocation8 + $0x8d8] sm:$0xf0]  ;;  %v9541_v55 = vld [vmem:[#allocation8 + $0x9cc] sm:$0xf] }
 0x1d6   :  { %3955 = vmatpush.bf16.msrb.mxu1 %v6874_v25  ;;  %v6807_v25 = vld [vmem:[#allocation8 + $0x518] sm:$0xf0]  ;;  %v9573_v58 = vld [vmem:[#allocation8 + $0xacc] sm:$0xf] }
 0x1d7   :  { %3968 = vmatpush.bf16.msrb.mxu2 %v7002_v21  ;;  %v9421_v21 = vld [vmem:[#allocation8 + $0x60c] sm:$0xf]  ;;  %v7415_v57 = vld [vmem:[#allocation8 + $0x9d8] sm:$0xf0] }
 0x1d8   :  { %3981 = vmatpush.bf16.msrb.mxu3 %v7130_v33  ;;  %v3729_v33 = vpop.f32.mrf.mxu3  ;;  %v9605_v61 = vld [vmem:[#allocation8 + $0xbcc] sm:$0xf]  ;;  %v7418_v1 = vor.u32 %v9541_v55, %v7415_v57  ;;  %v7271_v3 = vld [vmem:[#allocation8 + $0x8b8] sm:$0xf0] }
 0x1d9   :  { %3943 = vmatpush.bf16.msrb.mxu0 %v6730_v44  ;;  %v7559_v44 = vld [vmem:[#allocation8 + $0xaf8] sm:$0xf0]  ;;  %v9505_v2 = vld [vmem:[#allocation8 + $0x8ac] sm:$0xf] }
 0x1da   :  { %3956 = vmatpush.bf16.msrb.mxu1 %v6858_v45  ;;  %v6810_v45 = vor.u32 %v9389_v17, %v6807_v25  ;;  %v7562_v52 = vor.u32 %v9577_v43, %v7559_v44  ;;  %v7399_v7 = vld [vmem:[#allocation8 + $0x9b8] sm:$0xf0]  ;;  %v9569_v10 = vld [vmem:[#allocation8 + $0xaac] sm:$0xf]  ;;  %v7274_v9 = vor.u32 %v9505_v2, %v7271_v3 }
 0x1db   :  { %3969 = vmatpush.bf16.msrb.mxu2 %v6986_v62  ;;  %v6938_v62 = vor.u32 %v9421_v21, %v6935_v28  ;;  %v7527_v8 = vld [vmem:[#allocation8 + $0xab8] sm:$0xf0]  ;;  %v9601_v11 = vld [vmem:[#allocation8 + $0xbac] sm:$0xf] }
 0x1dc   :  { %3982 = vmatpush.bf16.msrb.mxu3 %v7114_v54  ;;  %v7434_v54 = vor.u32 %v9545_v39, %v7431_v42  ;;  %v7255_v17 = vld [vmem:[#allocation8 + $0x898] sm:$0xf0]  ;;  %v9565_v29 = vld [vmem:[#allocation8 + $0xa8c] sm:$0xf] }
 0x1dd   :  { %3944 = vmatpush.bf16.msrb.mxu0 %v6714_v59  ;;  %v7543_v59 = vld [vmem:[#allocation8 + $0xad8] sm:$0xf0]  ;;  %v9597_v28 = vld [vmem:[#allocation8 + $0xb8c] sm:$0xf] }
 0x1de   :  { %3957 = vmatpush.bf16.msrb.mxu1 %v6842_v63  ;;  %v7671_v63 = vld [vmem:[#allocation8 + $0xbd8] sm:$0xf0]  ;;  %v7546_v6 = vor.u32 %v9573_v58, %v7543_v59  ;;  %v9497_v33 = vld [vmem:[#allocation8 + $0x86c] sm:$0xf] }
 0x1df   :  { %3970 = vmatpush.bf16.msrb.mxu2 %v6970_v0  ;;  %v7290_v0 = vor.u32 %v9509_v53, %v7287_v48  ;;  %v7674_v5 = vor.u32 %v9605_v61, %v7671_v63  ;;  %v7383_v21 = vld [vmem:[#allocation8 + $0x998] sm:$0xf0]  ;;  %v9529_v36 = vld [vmem:[#allocation8 + $0x96c] sm:$0xf] }
 0x1e0   :  { %3983 = vmatpush.bf16.msrb.mxu3 %v7098_v4  ;;  %v9537_v4 = vld [vmem:[#allocation8 + $0x9ac] sm:$0xf]  ;;  %v7239_v35 = vld [vmem:[#allocation8 + $0x878] sm:$0xf0] }
 0x1e1   :  { %3945 = vmatpush.bf16.msrb.mxu0 %v6698_v12  ;;  %v7655_v12 = vld [vmem:[#allocation8 + $0xbb8] sm:$0xf0]  ;;  %v7402_v14 = vor.u32 %v9537_v4, %v7399_v7  ;;  %v9561_v43 = vld [vmem:[#allocation8 + $0xa6c] sm:$0xf]  ;;  %v7242_v46 = vor.u32 %v9497_v33, %v7239_v35 }
 0x1e2   :  { %3958 = vmatpush.bf16.msrb.mxu1 %v6826_v15  ;;  %v7530_v15 = vor.u32 %v9569_v10, %v7527_v8  ;;  %v7658_v25 = vor.u32 %v9601_v11, %v7655_v12  ;;  %v7367_v42 = vld [vmem:[#allocation8 + $0x978] sm:$0xf0]  ;;  %v9589_v59 = vld [vmem:[#allocation8 + $0xb4c] sm:$0xf] }
 0x1e3   :  { %3971 = vmatpush.bf16.msrb.mxu2 %v6954_v16  ;;  %v9501_v16 = vld [vmem:[#allocation8 + $0x88c] sm:$0xf]  ;;  %v7495_v44 = vld [vmem:[#allocation8 + $0xa78] sm:$0xf0]  ;;  %v7370_v47 = vor.u32 %v9529_v36, %v7367_v42 }
 0x1e4   :  { %3984 = vmatpush.bf16.msrb.mxu3 %v7082_v24  ;;  %v7511_v24 = vld [vmem:[#allocation8 + $0xa98] sm:$0xf0]  ;;  %v9489_v2 = vld [vmem:[#allocation8 + $0x82c] sm:$0xf] }
 0x1e5   :  { %3946 = vmatpush.bf16.msrb.mxu0 %v6682_v41  ;;  %v10442_v30 = vpop.f32.mrf.mxu0  ;;  %v7514_v32 = vor.u32 %v9565_v29, %v7511_v24  ;;  %v7351_v55 = vld [vmem:[#allocation8 + $0x958] sm:$0xf0]  ;;  %v9521_v4 = vld [vmem:[#allocation8 + $0x92c] sm:$0xf] }
 0x1e6   :  { %3959 = vmatpush.bf16.msrb.mxu1 %v6810_v45  ;;  %v10444_v39 = vpop.f32.mrf.mxu1  ;;  %v9593_v45 = vld [vmem:[#allocation8 + $0xb6c] sm:$0xf]  ;;  %v7479_v57 = vld [vmem:[#allocation8 + $0xa58] sm:$0xf0] }
 0x1e7   :  { %3972 = vmatpush.bf16.msrb.mxu2 %v6938_v62  ;;  %v7623_v62 = vld [vmem:[#allocation8 + $0xb78] sm:$0xf0]  ;;  %v9553_v8 = vld [vmem:[#allocation8 + $0xa2c] sm:$0xf] }
 0x1e8   :  { %3985 = vmatpush.bf16.msrb.mxu3 %v7066_v50  ;;  %3947 = vmatmul.bf16.vlgmr.msrb.gmra.mxu0 %v10344_v37  ;;  %v7639_v37 = vld [vmem:[#allocation8 + $0xb98] sm:$0xf0]  ;;  %v7498_v50 = vor.u32 %v9561_v43, %v7495_v44  ;;  %v7626_v48 = vor.u32 %v9593_v45, %v7623_v62  ;;  %v9585_v12 = vld [vmem:[#allocation8 + $0xb2c] sm:$0xf] }
 0x1e9   :  { %3991 = vmatpush.bf16.msra.mxu0 %v7306_v51  ;;  %3960 = vmatmul.bf16.vlgmr.msrb.gmra.mxu1 %v10348_v40  ;;  %v7642_v41 = vor.u32 %v9597_v28, %v7639_v37  ;;  %v9493_v51 = vld [vmem:[#allocation8 + $0x84c] sm:$0xf]  ;;  %v7607_v61 = vld [vmem:[#allocation8 + $0xb58] sm:$0xf0] }
 0x1ea   :  { %4004 = vmatpush.bf16.msra.mxu1 %v7434_v54  ;;  %3973 = vmatmul.bf16.vlgmr.msrb.gmra.mxu2 %v10342_v34  ;;  %v9533_v34 = vld [vmem:[#allocation8 + $0x98c] sm:$0xf]  ;;  %v7223_v54 = vld [vmem:[#allocation8 + $0x858] sm:$0xf0]  ;;  %v7610_v7 = vor.u32 %v9589_v59, %v7607_v61 }
 0x1eb   :  { %4017 = vmatpush.bf16.msra.mxu2 %v7562_v52  ;;  %3986 = vmatmul.bf16.vlgmr.msrb.gmra.mxu3 %v10346_v38  ;;  %v7258_v38 = vor.u32 %v9501_v16, %v7255_v17  ;;  %v7386_v40 = vor.u32 %v9533_v34, %v7383_v21  ;;  %v9525_v52 = vld [vmem:[#allocation8 + $0x94c] sm:$0xf]  ;;  %v7226_v63 = vor.u32 %v9493_v51, %v7223_v54  ;;  %v7207_v3 = vld [vmem:[#allocation8 + $0x838] sm:$0xf0] }
 0x1ec   :  { %4030 = vmatpush.bf16.msra.mxu3 %v7690_v56  ;;  %v9557_v56 = vld [vmem:[#allocation8 + $0xa4c] sm:$0xf]  ;;  %v7335_v10 = vld [vmem:[#allocation8 + $0x938] sm:$0xf0] }
 0x1ed   :  { %3992 = vmatpush.bf16.msra.mxu0 %v7290_v0  ;;  %v10446_v53 = vpop.f32.mrf.mxu2  ;;  %v3742_v0 = vpop.f32.mrf.mxu0  ;;  %v7463_v11 = vld [vmem:[#allocation8 + $0xa38] sm:$0xf0]  ;;  %v7338_v17 = vor.u32 %v9521_v4, %v7335_v10  ;;  %v9549_v29 = vld [vmem:[#allocation8 + $0xa0c] sm:$0xf] }
 0x1ee   :  { %4005 = vmatpush.bf16.msra.mxu1 %v7418_v1  ;;  %v10448_v58 = vpop.f32.mrf.mxu3  ;;  %v7354_v1 = vor.u32 %v9525_v52, %v7351_v55  ;;  %v7191_v16 = vld [vmem:[#allocation8 + $0x818] sm:$0xf0]  ;;  %v7466_v34 = vor.u32 %v9553_v8, %v7463_v11  ;;  %v9641_v33 = vld [vmem:[#allocation8 + $0xcec] sm:$0xf] }
 0x1ef   :  { %4018 = vmatpush.bf16.msra.mxu2 %v7546_v6  ;;  %v7482_v6 = vor.u32 %v9557_v56, %v7479_v57  ;;  %v7319_v21 = vld [vmem:[#allocation8 + $0x918] sm:$0xf0]  ;;  %v9673_v36 = vld [vmem:[#allocation8 + $0xdec] sm:$0xf] }
 0x1f0   :  { %4031 = vmatpush.bf16.msra.mxu3 %v7674_v5  ;;  %v3755_v5 = vpop.f32.mrf.mxu1  ;;  %v7447_v37 = vld [vmem:[#allocation8 + $0xa18] sm:$0xf0]  ;;  %v9705_v43 = vld [vmem:[#allocation8 + $0xeec] sm:$0xf] }
 0x1f1   :  { %3993 = vmatpush.bf16.msra.mxu0 %v7274_v9  ;;  %v7591_v9 = vld [vmem:[#allocation8 + $0xb38] sm:$0xf0]  ;;  %v7450_v62 = vor.u32 %v9549_v29, %v7447_v37  ;;  %v9669_v56 = vld [vmem:[#allocation8 + $0xdcc] sm:$0xf] }
 0x1f2   :  { %4006 = vmatpush.bf16.msra.mxu1 %v7402_v14  ;;  %v7210_v14 = vor.u32 %v9489_v2, %v7207_v3  ;;  %v7594_v28 = vor.u32 %v9585_v12, %v7591_v9  ;;  %v7815_v35 = vld [vmem:[#allocation8 + $0xcf8] sm:$0xf0]  ;;  %v9701_v61 = vld [vmem:[#allocation8 + $0xecc] sm:$0xf] }
 0x1f3   :  { %4019 = vmatpush.bf16.msra.mxu2 %v7530_v15  ;;  %v9485_v15 = vld [vmem:[#allocation8 + $0x80c] sm:$0xf]  ;;  %v7943_v42 = vld [vmem:[#allocation8 + $0xdf8] sm:$0xf0]  ;;  %v7818_v51 = vor.u32 %v9641_v33, %v7815_v35 }
 0x1f4   :  { %4032 = vmatpush.bf16.msra.mxu3 %v7658_v25  ;;  %v9517_v25 = vld [vmem:[#allocation8 + $0x90c] sm:$0xf]  ;;  %v8071_v44 = vld [vmem:[#allocation8 + $0xef8] sm:$0xf0]  ;;  %v7946_v54 = vor.u32 %v9673_v36, %v7943_v42 }
 0x1f5   :  { %3994 = vmatpush.bf16.msra.mxu0 %v7258_v38  ;;  %v3768_v24 = vpop.f32.mrf.mxu2  ;;  %v9581_v38 = vld [vmem:[#allocation8 + $0xb0c] sm:$0xf]  ;;  %v7322_v45 = vor.u32 %v9517_v25, %v7319_v21  ;;  %v8074_v52 = vor.u32 %v9705_v43, %v8071_v44  ;;  %v7799_v55 = vld [vmem:[#allocation8 + $0xcd8] sm:$0xf0] }
 0x1f6   :  { %4007 = vmatpush.bf16.msra.mxu1 %v7386_v40  ;;  %v7575_v40 = vld [vmem:[#allocation8 + $0xb18] sm:$0xf0]  ;;  %v9733_v0 = vld [vmem:[#allocation8 + $0xfcc] sm:$0xf] }
 0x1f7   :  { %4020 = vmatpush.bf16.msra.mxu2 %v7514_v32  ;;  %v3781_v32 = vpop.f32.mrf.mxu3  ;;  %v7927_v59 = vld [vmem:[#allocation8 + $0xdd8] sm:$0xf0]  ;;  %v9633_v4 = vld [vmem:[#allocation8 + $0xcac] sm:$0xf] }
 0x1f8   :  { %4033 = vmatpush.bf16.msra.mxu3 %v7642_v41  ;;  %v7194_v41 = vor.u32 %v9485_v15, %v7191_v16  ;;  %v7930_v2 = vor.u32 %v9669_v56, %v7927_v59  ;;  %v7783_v5 = vld [vmem:[#allocation8 + $0xcb8] sm:$0xf0]  ;;  %v9697_v11 = vld [vmem:[#allocation8 + $0xeac] sm:$0xf] }
 0x1f9   :  { %3995 = vmatpush.bf16.msra.mxu0 %v7242_v46  ;;  %v9737_v46 = vld [vmem:[#allocation8 + $0xfec] sm:$0xf]  ;;  %v7911_v8 = vld [vmem:[#allocation8 + $0xdb8] sm:$0xf0]  ;;  %v7786_v15 = vor.u32 %v9633_v4, %v7783_v5 }
 0x1fa   :  { %4008 = vmatpush.bf16.msra.mxu1 %v7370_v47  ;;  %v8199_v47 = vld [vmem:[#allocation8 + $0xff8] sm:$0xf0]  ;;  %v9729_v9 = vld [vmem:[#allocation8 + $0xfac] sm:$0xf] }
 0x1fb   :  { %4021 = vmatpush.bf16.msra.mxu2 %v7498_v50  ;;  %v7578_v50 = vor.u32 %v9581_v38, %v7575_v40  ;;  %v8202_v57 = vor.u32 %v9737_v46, %v8199_v47  ;;  %v8039_v12 = vld [vmem:[#allocation8 + $0xeb8] sm:$0xf0]  ;;  %v9661_v25 = vld [vmem:[#allocation8 + $0xd8c] sm:$0xf] }
 0x1fc   :  { %4034 = vmatpush.bf16.msra.mxu3 %v7626_v48  ;;  %v9637_v48 = vld [vmem:[#allocation8 + $0xccc] sm:$0xf]  ;;  %v7895_v29 = vld [vmem:[#allocation8 + $0xd98] sm:$0xf0] }
 0x1fd   :  { %3996 = vmatpush.bf16.msra.mxu0 %v7226_v63  ;;  %v8055_v63 = vld [vmem:[#allocation8 + $0xed8] sm:$0xf0]  ;;  %v9693_v24 = vld [vmem:[#allocation8 + $0xe8c] sm:$0xf]  ;;  %v7898_v40 = vor.u32 %v9661_v25, %v7895_v29 }
 0x1fe   :  { %4009 = vmatpush.bf16.msra.mxu1 %v7354_v1  ;;  %v8183_v1 = vld [vmem:[#allocation8 + $0xfd8] sm:$0xf0]  ;;  %v8058_v3 = vor.u32 %v9701_v61, %v8055_v63  ;;  %v9625_v33 = vld [vmem:[#allocation8 + $0xc6c] sm:$0xf] }
 0x1ff   :  { %4022 = vmatpush.bf16.msra.mxu2 %v7482_v6  ;;  %v7802_v6 = vor.u32 %v9637_v48, %v7799_v55  ;;  %v8186_v10 = vor.u32 %v9733_v0, %v8183_v1  ;;  %v8151_v37 = vld [vmem:[#allocation8 + $0xf98] sm:$0xf0]  ;;  %v9657_v36 = vld [vmem:[#allocation8 + $0xd6c] sm:$0xf] }
 0x200   :  { %4035 = vmatpush.bf16.msra.mxu3 %v7610_v7  ;;  %v9665_v7 = vld [vmem:[#allocation8 + $0xdac] sm:$0xf]  ;;  %v7751_v35 = vld [vmem:[#allocation8 + $0xc78] sm:$0xf0] }
 0x201   :  { %3997 = vmatpush.bf16.msra.mxu0 %v7210_v14  ;;  %v8167_v14 = vld [vmem:[#allocation8 + $0xfb8] sm:$0xf0]  ;;  %v7914_v16 = vor.u32 %v9665_v7, %v7911_v8  ;;  %v9689_v43 = vld [vmem:[#allocation8 + $0xe6c] sm:$0xf]  ;;  %v7754_v46 = vor.u32 %v9625_v33, %v7751_v35  ;;  %v8317_v33 = vld [vmem:[#allocation12 + $0xe0] sm:$0xf] }
 0x202   :  { %4010 = vmatpush.bf16.msra.mxu1 %v7338_v17  ;;  %v8042_v17 = vor.u32 %v9697_v11, %v8039_v12  ;;  %v8170_v21 = vor.u32 %v9729_v9, %v8167_v14  ;;  %v7879_v42 = vld [vmem:[#allocation8 + $0xd78] sm:$0xf0]  ;;  %v9717_v63 = vld [vmem:[#allocation8 + $0xf4c] sm:$0xf]  ;;  %v9898_v35 = vld [vmem:[#allocation12 + $0xec] sm:$0xf0] }
 0x203   :  { %4023 = vmatpush.bf16.msra.mxu2 %v7466_v34  ;;  %v9629_v34 = vld [vmem:[#allocation8 + $0xc8c] sm:$0xf]  ;;  %v8007_v44 = vld [vmem:[#allocation8 + $0xe78] sm:$0xf0]  ;;  %v7882_v47 = vor.u32 %v9657_v36, %v7879_v42  ;;  %v9930_v42 = vld [vmem:[#allocation12 + $0x1ec] sm:$0xf0] }
 0x204   :  { %4036 = vmatpush.bf16.msra.mxu3 %v7594_v28  ;;  %v7863_v56 = vld [vmem:[#allocation8 + $0xd58] sm:$0xf0]  ;;  %v9617_v5 = vld [vmem:[#allocation8 + $0xc2c] sm:$0xf] }
 0x205   :  { %3998 = vmatpush.bf16.msra.mxu0 %v7194_v41  ;;  %v10454_v28 = vpop.f32.mrf.mxu0  ;;  %v7991_v59 = vld [vmem:[#allocation8 + $0xe58] sm:$0xf0]  ;;  %v9681_v12 = vld [vmem:[#allocation8 + $0xe2c] sm:$0xf] }
 0x206   :  { %4011 = vmatpush.bf16.msra.mxu1 %v7322_v45  ;;  %v10456_v38 = vpop.f32.mrf.mxu1  ;;  %v9721_v45 = vld [vmem:[#allocation8 + $0xf6c] sm:$0xf]  ;;  %v8119_v0 = vld [vmem:[#allocation8 + $0xf58] sm:$0xf0] }
 0x207   :  { %4024 = vmatpush.bf16.msra.mxu2 %v7450_v62  ;;  %v8135_v62 = vld [vmem:[#allocation8 + $0xf78] sm:$0xf0]  ;;  %v8122_v8 = vor.u32 %v9717_v63, %v8119_v0  ;;  %v9713_v14 = vld [vmem:[#allocation8 + $0xf2c] sm:$0xf] }
 0x208   :  { %4037 = vmatpush.bf16.msra.mxu3 %v7578_v50  ;;  %3999 = vmatmul.bf16.vlgmr.msra.gmra.mxu0 %v10354_v18  ;;  %v7767_v18 = vld [vmem:[#allocation8 + $0xc98] sm:$0xf0]  ;;  %v8010_v50 = vor.u32 %v9689_v43, %v8007_v44  ;;  %v8138_v48 = vor.u32 %v9721_v45, %v8135_v62  ;;  %v9645_v29 = vld [vmem:[#allocation8 + $0xd0c] sm:$0xf]  ;;  %v8573_v43 = vld [vmem:[#allocation12 + $0x2e0] sm:$0xf] }
 0x209   :  { %4043 = vmatpush.bf16.msrb.mxu0 %v7818_v51  ;;  %4012 = vmatmul.bf16.vlgmr.msra.gmra.mxu1 %v10358_v23  ;;  %v9725_v23 = vld [vmem:[#allocation8 + $0xf8c] sm:$0xf]  ;;  %v7719_v7 = vld [vmem:[#allocation8 + $0xc38] sm:$0xf0]  ;;  %v9962_v44 = vld [vmem:[#allocation12 + $0x2ec] sm:$0xf0] }
 0x20a   :  { %4056 = vmatpush.bf16.msrb.mxu1 %v7946_v54  ;;  %4025 = vmatmul.bf16.vlgmr.msra.gmra.mxu2 %v10356_v22  ;;  %v8023_v22 = vld [vmem:[#allocation8 + $0xe98] sm:$0xf0]  ;;  %v8154_v41 = vor.u32 %v9725_v23, %v8151_v37  ;;  %v9621_v51 = vld [vmem:[#allocation8 + $0xc4c] sm:$0xf] }
 0x20b   :  { %4069 = vmatpush.bf16.msrb.mxu2 %v8074_v52  ;;  %4038 = vmatmul.bf16.vlgmr.msra.gmra.mxu3 %v10360_v27  ;;  %v7770_v27 = vor.u32 %v9629_v34, %v7767_v18  ;;  %v8026_v32 = vor.u32 %v9693_v24, %v8023_v22  ;;  %v7735_v54 = vld [vmem:[#allocation8 + $0xc58] sm:$0xf0]  ;;  %v9653_v52 = vld [vmem:[#allocation8 + $0xd4c] sm:$0xf] }
 0x20c   :  { %4082 = vmatpush.bf16.msrb.mxu3 %v8202_v57  ;;  %v9685_v57 = vld [vmem:[#allocation8 + $0xe4c] sm:$0xf]  ;;  %v7847_v11 = vld [vmem:[#allocation8 + $0xd38] sm:$0xf0] }
 0x20d   :  { %4044 = vmatpush.bf16.msrb.mxu0 %v7802_v6  ;;  %v10458_v55 = vpop.f32.mrf.mxu2  ;;  %v3794_v1 = vpop.f32.mrf.mxu0  ;;  %v7738_v6 = vor.u32 %v9621_v51, %v7735_v54  ;;  %v7994_v4 = vor.u32 %v9685_v57, %v7991_v59  ;;  %v7975_v9 = vld [vmem:[#allocation8 + $0xe38] sm:$0xf0]  ;;  %v9613_v34 = vld [vmem:[#allocation8 + $0xc0c] sm:$0xf]  ;;  %v8574_v51 = vor.u32 %v9962_v44, %v8573_v43  ;;  %v8301_v54 = vld [vmem:[#allocation12 + $0xc0] sm:$0xf] }
 0x20e   :  { %4057 = vmatpush.bf16.msrb.mxu1 %v7930_v2  ;;  %v10460_v61 = vpop.f32.mrf.mxu3  ;;  %v3807_v2 = vpop.f32.mrf.mxu1  ;;  %v7703_v18 = vld [vmem:[#allocation8 + $0xc18] sm:$0xf0]  ;;  %v9677_v22 = vld [vmem:[#allocation8 + $0xe0c] sm:$0xf]  ;;  %v8557_v57 = vld [vmem:[#allocation12 + $0x2c0] sm:$0xf] }
 0x20f   :  { %4070 = vmatpush.bf16.msrb.mxu2 %v8058_v3  ;;  %v7866_v3 = vor.u32 %v9653_v52, %v7863_v56  ;;  %v7831_v24 = vld [vmem:[#allocation8 + $0xd18] sm:$0xf0]  ;;  %v9894_v52 = vld [vmem:[#allocation12 + $0xcc] sm:$0xf0] }
 0x210   :  { %4083 = vmatpush.bf16.msrb.mxu3 %v8186_v10  ;;  %v9649_v10 = vld [vmem:[#allocation8 + $0xd2c] sm:$0xf]  ;;  %v7959_v37 = vld [vmem:[#allocation8 + $0xe18] sm:$0xf0]  ;;  %v7834_v45 = vor.u32 %v9645_v29, %v7831_v24  ;;  %v9958_v59 = vld [vmem:[#allocation12 + $0x2cc] sm:$0xf0]  ;;  %v8302_v63 = vor.u32 %v9894_v52, %v8301_v54 }
 0x211   :  { %4045 = vmatpush.bf16.msrb.mxu0 %v7786_v15  ;;  %v8103_v15 = vld [vmem:[#allocation8 + $0xf38] sm:$0xf0]  ;;  %v7850_v25 = vor.u32 %v9649_v10, %v7847_v11  ;;  %v7962_v62 = vor.u32 %v9677_v22, %v7959_v37  ;;  %v8558_v1 = vor.u32 %v9958_v59, %v8557_v57  ;;  %v9890_v2 = vld [vmem:[#allocation12 + $0xac] sm:$0xf0]  ;;  %v8509_v22 = vld [vmem:[#allocation12 + $0x260] sm:$0xf] }
 0x212   :  { %4058 = vmatpush.bf16.msrb.mxu1 %v7914_v16  ;;  %v3741_v16 = vadd.f32 %v10442_v30, %v10436_v60  ;;  %v8106_v23 = vor.u32 %v9713_v14, %v8103_v15  ;;  %v8445_v60 = vld [vmem:[#allocation12 + $0x1e0] sm:$0xf]  ;;  %v9918_v14 = vld [vmem:[#allocation12 + $0x18c] sm:$0xf0] }
 0x213   :  { %4071 = vmatpush.bf16.msrb.mxu2 %v8042_v17  ;;  %v7722_v17 = vor.u32 %v9617_v5, %v7719_v7  ;;  %v8541_v5 = vld [vmem:[#allocation12 + $0x2a0] sm:$0xf]  ;;  %v9954_v7 = vld [vmem:[#allocation12 + $0x2ac] sm:$0xf0] }
 0x214   :  { %4084 = vmatpush.bf16.msrb.mxu3 %v8170_v21  ;;  %v7978_v21 = vor.u32 %v9681_v12, %v7975_v9  ;;  %v3754_v36 = vadd.f32 %v10444_v39, %v3741_v16  ;;  %v9926_v39 = vld [vmem:[#allocation12 + $0x1cc] sm:$0xf0]  ;;  %v8542_v12 = vor.u32 %v9954_v7, %v8541_v5  ;;  %v8477_v52 = vld [vmem:[#allocation12 + $0x220] sm:$0xf]  ;;  %v8319_v5 = vld [vmem:[#allocation12 + $0xf0] sm:$0xf0] }
 0x215   :  { %4046 = vmatpush.bf16.msrb.mxu0 %v7770_v27  ;;  %v9709_v27 = vld [vmem:[#allocation8 + $0xf0c] sm:$0xf]  ;;  %v9886_v9 = vld [vmem:[#allocation12 + $0x8c] sm:$0xf0]  ;;  %v9928_v7 = vld [vmem:[#allocation12 + $0x1e4] sm:$0xf] }
 0x216   :  { %4059 = vmatpush.bf16.msrb.mxu1 %v7898_v40  ;;  %v8087_v40 = vld [vmem:[#allocation8 + $0xf18] sm:$0xf0]  ;;  %v3833_v30 = vpop.f32.mrf.mxu3  ;;  %v3767_v56 = vadd.f32 %v10446_v53, %v3754_v36  ;;  %v9922_v53 = vld [vmem:[#allocation12 + $0x1ac] sm:$0xf0]  ;;  %v8493_v36 = vld [vmem:[#allocation12 + $0x240] sm:$0xf] }
 0x217   :  { %4072 = vmatpush.bf16.msrb.mxu2 %v8026_v32  ;;  %v3820_v32 = vpop.f32.mrf.mxu2  ;;  %v9950_v15 = vld [vmem:[#allocation12 + $0x28c] sm:$0xf0] }
 0x218   :  { %4085 = vmatpush.bf16.msrb.mxu3 %v8154_v41  ;;  %v7706_v41 = vor.u32 %v9613_v34, %v7703_v18  ;;  %v8253_v18 = vld [vmem:[#allocation12 + $0x60] sm:$0xf]  ;;  %v9914_v24 = vld [vmem:[#allocation12 + $0x16c] sm:$0xf0] }
 0x219   :  { %4047 = vmatpush.bf16.msrb.mxu0 %v7754_v46  ;;  %v8090_v46 = vor.u32 %v9709_v27, %v8087_v40  ;;  %v8237_v40 = vld [vmem:[#allocation12 + $0x40] sm:$0xf]  ;;  %v9878_v32 = vld [vmem:[#allocation12 + $0x4c] sm:$0xf0] }
 0x21a   :  { %4060 = vmatpush.bf16.msrb.mxu1 %v7882_v47  ;;  %v8318_v47 = vor.u32 %v9898_v35, %v8317_v33  ;;  %v8365_v33 = vld [vmem:[#allocation12 + $0x140] sm:$0xf]  ;;  %v9910_v30 = vld [vmem:[#allocation12 + $0x14c] sm:$0xf0]  ;;  %v8238_v44 = vor.u32 %v9878_v32, %v8237_v40  ;;  %v8415_v40 = vld [vmem:[#allocation12 + $0x1b0] sm:$0xf0] }
 0x21b   :  { %4073 = vmatpush.bf16.msrb.mxu2 %v8010_v50  ;;  %v8446_v50 = vor.u32 %v9930_v42, %v8445_v60  ;;  %v9906_v54 = vld [vmem:[#allocation12 + $0x12c] sm:$0xf0]  ;;  %v9952_v32 = vld [vmem:[#allocation12 + $0x2a4] sm:$0xf] }
 0x21c   :  { %4086 = vmatpush.bf16.msrb.mxu3 %v8138_v48  ;;  %v8429_v48 = vld [vmem:[#allocation12 + $0x1c0] sm:$0xf] }
 0x21d   :  { %4048 = vmatpush.bf16.msrb.mxu0 %v7738_v6  ;;  %v8430_v0 = vor.u32 %v9926_v39, %v8429_v48  ;;  %v8285_v6 = vld [vmem:[#allocation12 + $0xa0] sm:$0xf] }
 0x21e   :  { %4061 = vmatpush.bf16.msrb.mxu1 %v7866_v3  ;;  %v8413_v3 = vld [vmem:[#allocation12 + $0x1a0] sm:$0xf] }
 0x21f   :  { %4074 = vmatpush.bf16.msrb.mxu2 %v7994_v4  ;;  %v3780_v4 = vadd.f32 %v10448_v58, %v3767_v56  ;;  %v8414_v11 = vor.u32 %v9922_v53, %v8413_v3  ;;  %v8269_v58 = vld [vmem:[#allocation12 + $0x80] sm:$0xf]  ;;  %v9934_v3 = vld [vmem:[#allocation12 + $0x20c] sm:$0xf0] }
 0x220   :  { %4087 = vmatpush.bf16.msrb.mxu3 %v8122_v8  ;;  %v8286_v8 = vor.u32 %v9890_v2, %v8285_v6  ;;  %v8205_v39 = vld [vmem:[#allocation12] sm:$0xf] }
 0x221   :  { %4049 = vmatpush.bf16.msrb.mxu0 %v7722_v17  ;;  %v3793_v10 = vadd.f32 %v10454_v28, %v3780_v4  ;;  %v8461_v2 = vld [vmem:[#allocation12 + $0x200] sm:$0xf]  ;;  %v9896_v4 = vld [vmem:[#allocation12 + $0xe4] sm:$0xf] }
 0x222   :  { %4062 = vmatpush.bf16.msrb.mxu1 %v7850_v25  ;;  %v9882_v25 = vld [vmem:[#allocation12 + $0x6c] sm:$0xf0] }
 0x223   :  { %4075 = vmatpush.bf16.msrb.mxu2 %v7978_v21  ;;  %v3806_v17 = vadd.f32 %v10456_v38, %v3793_v10  ;;  %v8381_v21 = vld [vmem:[#allocation12 + $0x160] sm:$0xf]  ;;  %v8254_v37 = vor.u32 %v9882_v25, %v8253_v18  ;;  %v8447_v10 = vld [vmem:[#allocation12 + $0x1f0] sm:$0xf0]  ;;  %v10479_v25 = vpack.c.bf16 %v10403_v31, %v10403_v31 }
 0x224   :  { %4088 = vmatpush.bf16.msrb.mxu3 %v8106_v23  ;;  %v9946_v23 = vld [vmem:[#allocation12 + $0x26c] sm:$0xf0]  ;;  %v8382_v38 = vor.u32 %v9914_v24, %v8381_v21  ;;  %v8559_v18 = vld [vmem:[#allocation12 + $0x2d0] sm:$0xf0]  ;;  %v10483_v21 = vpack.c.bf16 %v10430_v49, %v10430_v49 }
 0x225   :  { %4050 = vmatpush.bf16.msrb.mxu0 %v7706_v41  ;;  %v3844_v16 = vpop.f32.mrf.mxu0  ;;  %v3819_v29 = vadd.f32 %v10458_v55, %v3806_v17  ;;  %v8510_v27 = vor.u32 %v9946_v23, %v8509_v22  ;;  %v9942_v41 = vld [vmem:[#allocation12 + $0x24c] sm:$0xf0]  ;;  %v9888_v23 = vld [vmem:[#allocation12 + $0xa4] sm:$0xf] }
 0x226   :  { %4063 = vmatpush.bf16.msrb.mxu1 %v7834_v45 }
 0x227   :  { %4076 = vmatpush.bf16.msrb.mxu2 %v7962_v62  ;;  %v3832_v35 = vadd.f32 %v10460_v61, %v3819_v29  ;;  %v8366_v62 = vor.u32 %v9910_v30, %v8365_v33  ;;  %v9938_v61 = vld [vmem:[#allocation12 + $0x22c] sm:$0xf0]  ;;  %v8543_v33 = vld [vmem:[#allocation12 + $0x2b0] sm:$0xf0]  ;;  %v9884_v30 = vld [vmem:[#allocation12 + $0x84] sm:$0xf] }
 0x228   :  { %4089 = vmatpush.bf16.msrb.mxu3 %v8090_v46  ;;  %4051 = vmatmul.bf16.vlgmr.msrb.gmra.mxu0 %v10366_v13  ;;  %v8397_v13 = vld [vmem:[#allocation12 + $0x180] sm:$0xf]  ;;  %v8494_v46 = vor.u32 %v9942_v41, %v8493_v36  ;;  %v8478_v59 = vor.u32 %v9938_v61, %v8477_v52  ;;  %v8271_v36 = vld [vmem:[#allocation12 + $0x90] sm:$0xf0]  ;;  %v8546_v41 = vor.u32 %v9952_v32, %v8543_v33  ;;  %v9912_v61 = vld [vmem:[#allocation12 + $0x164] sm:$0xf] }
 0x229   :  { %5003 = vmatpush.bf16.msra.mxu0 %v8318_v47  ;;  %4064 = vmatmul.bf16.vlgmr.msrb.gmra.mxu1 %v10370_v20  ;;  %v8525_v20 = vld [vmem:[#allocation12 + $0x280] sm:$0xf]  ;;  %v8398_v28 = vor.u32 %v9918_v14, %v8397_v13  ;;  %v3845_v43 = vadd.f32 %v3844_v16, %v3832_v35  ;;  %v8462_v13 = vor.u32 %v9934_v3, %v8461_v2  ;;  %v9892_v16 = vld [vmem:[#allocation12 + $0xc4] sm:$0xf]  ;;  %v8255_v52 = vld [vmem:[#allocation12 + $0x70] sm:$0xf0] }
 0x22a   :  { %5016 = vmatpush.bf16.msra.mxu1 %v8446_v50  ;;  %4077 = vmatmul.bf16.vlgmr.msrb.gmra.mxu2 %v10368_v19  ;;  %v8270_v19 = vor.u32 %v9886_v9, %v8269_v58  ;;  %v8526_v34 = vor.u32 %v9950_v15, %v8525_v20  ;;  %v8221_v47 = vld [vmem:[#allocation12 + $0x20] sm:$0xf]  ;;  %v9874_v50 = vld [vmem:[#allocation12 + $0x2c] sm:$0xf0]  ;;  %v8575_v58 = vld [vmem:[#allocation12 + $0x2f0] sm:$0xf0]  ;;  %v8322_v20 = vor.u32 %v9896_v4, %v8319_v5 }
 0x22b   :  { %5029 = vmatpush.bf16.msra.mxu2 %v8574_v51  ;;  %4090 = vmatmul.bf16.vlgmr.msrb.gmra.mxu3 %v10372_v26  ;;  %v3857_v26 = vpop.f32.mrf.mxu1  ;;  %v8349_v51 = vld [vmem:[#allocation12 + $0x120] sm:$0xf]  ;;  %v8222_v56 = vor.u32 %v9874_v50, %v8221_v47  ;;  %v8450_v15 = vor.u32 %v9928_v7, %v8447_v10  ;;  %v9880_v50 = vld [vmem:[#allocation12 + $0x64] sm:$0xf]  ;;  %v8239_v3 = vld [vmem:[#allocation12 + $0x50] sm:$0xf0] }
 0x22c   :  { %v3858_v48 = vadd.f32 %v3857_v26, %v3845_v43  ;;  %v8350_v57 = vor.u32 %v9906_v54, %v8349_v51  ;;  %v9924_v26 = vld [vmem:[#allocation12 + $0x1c4] sm:$0xf]  ;;  %v10013_v43 = vld [vmem:[#allocation9] sm:$0xf]  ;;  %v8495_v10 = vld [vmem:[#allocation12 + $0x250] sm:$0xf0] }
 0x22d   :  { %5004 = vmatpush.bf16.msra.mxu0 %v8302_v63  ;;  %v3870_v60 = vpop.f32.mrf.mxu2  ;;  %v3846_v55 = vpop.f32.mrf.mxu0  ;;  %v9870_v63 = vld [vmem:[#allocation12 + $0xc] sm:$0xf0]  ;;  %v9908_v4 = vld [vmem:[#allocation12 + $0x144] sm:$0xf]  ;;  %v8335_v32 = vld [vmem:[#allocation12 + $0x110] sm:$0xf0] }
 0x22e   :  { %5017 = vmatpush.bf16.msra.mxu1 %v8430_v0  ;;  %v3883_v42 = vpop.f32.mrf.mxu3  ;;  %v8333_v0 = vld [vmem:[#allocation12 + $0x100] sm:$0xf]  ;;  %v3871_v6 = vadd.f32 %v3870_v60, %v3858_v48  ;;  %v8399_v55 = vld [vmem:[#allocation12 + $0x190] sm:$0xf0]  ;;  %v9940_v7 = vld [vmem:[#allocation12 + $0x244] sm:$0xf] }
 0x22f   :  { %5030 = vmatpush.bf16.msra.mxu2 %v8558_v1  ;;  %v9902_v1 = vld [vmem:[#allocation12 + $0x10c] sm:$0xf0]  ;;  %v8383_v48 = vld [vmem:[#allocation12 + $0x170] sm:$0xf0]  ;;  %v9932_v33 = vld [vmem:[#allocation12 + $0x204] sm:$0xf] }
 0x230   :  { %v8334_v9 = vor.u32 %v9902_v1, %v8333_v0  ;;  %v10475_v14 = vadd.f32 %v3883_v42, %v3871_v6  ;;  %v9916_v42 = vld [vmem:[#allocation12 + $0x184] sm:$0xf]  ;;  %v8258_v0 = vor.u32 %v9880_v50, %v8255_v52  ;;  %v8386_v1 = vor.u32 %v9912_v61, %v8383_v48 }
 0x231   :  { %5005 = vmatpush.bf16.msra.mxu0 %v8286_v8  ;;  %v8402_v47 = vor.u32 %v9916_v42, %v8399_v55  ;;  %v9876_v6 = vld [vmem:[#allocation12 + $0x44] sm:$0xf]  ;;  %v8453_v42 = vld [vmem:[#allocation12 + $0x1e8] sm:$0xf] }
 0x232   :  { %5018 = vmatpush.bf16.msra.mxu1 %v8414_v11  ;;  %v8206_v11 = vor.u32 %v9870_v63, %v8205_v39  ;;  %v10487_v29 = vpack.c.bf16 %v10475_v14, %v10475_v14 }
 0x233   :  { %5031 = vmatpush.bf16.msra.mxu2 %v8542_v12  ;;  %v3859_v45 = vpop.f32.mrf.mxu1  ;;  %v9960_v12 = vld [vmem:[#allocation12 + $0x2e4] sm:$0xf] }
 0x234   :  { %v8578_v17 = vor.u32 %v9960_v12, %v8575_v58  ;;  %v9948_v45 = vld [vmem:[#allocation12 + $0x284] sm:$0xf]  ;;  %v8242_v12 = vor.u32 %v9876_v6, %v8239_v3  ;;  %v9986_v6 = vld [vmem:[#allocation12 + $0x3ac] sm:$0xf0] }
 0x235   :  { %5006 = vmatpush.bf16.msra.mxu0 %v8270_v19  ;;  %v3872_v53 = vpop.f32.mrf.mxu2  ;;  %v8303_v19 = vld [vmem:[#allocation12 + $0xd0] sm:$0xf0] }
 0x236   :  { %5019 = vmatpush.bf16.msra.mxu1 %v8398_v28  ;;  %v3885_v8 = vpop.f32.mrf.mxu3  ;;  %v8431_v28 = vld [vmem:[#allocation12 + $0x1d0] sm:$0xf0]  ;;  %v8306_v24 = vor.u32 %v9892_v16, %v8303_v19  ;;  %v8498_v16 = vor.u32 %v9940_v7, %v8495_v10  ;;  %v9891_v7 = vld [vmem:[#allocation12 + $0xb4] sm:$0xf0]  ;;  %v8421_v10 = vld [vmem:[#allocation12 + $0x1a8] sm:$0xf] }
 0x237   :  { %5032 = vmatpush.bf16.msra.mxu2 %v8526_v34  ;;  %v9956_v34 = vld [vmem:[#allocation12 + $0x2c4] sm:$0xf]  ;;  %v8434_v22 = vor.u32 %v9924_v26, %v8431_v28  ;;  %v8367_v53 = vld [vmem:[#allocation12 + $0x150] sm:$0xf0] }
 0x238   :  { %v8370_v58 = vor.u32 %v9908_v4, %v8367_v53  ;;  %v8351_v19 = vld [vmem:[#allocation12 + $0x130] sm:$0xf0]  ;;  %v9936_v26 = vld [vmem:[#allocation12 + $0x224] sm:$0xf] }
 0x239   :  { %5007 = vmatpush.bf16.msra.mxu0 %v8254_v37  ;;  %v8562_v37 = vor.u32 %v9956_v34, %v8559_v18  ;;  %v8479_v34 = vld [vmem:[#allocation12 + $0x230] sm:$0xf0]  ;;  %v8701_v18 = vld [vmem:[#allocation12 + $0x3e0] sm:$0xf] }
 0x23a   :  { %5020 = vmatpush.bf16.msra.mxu1 %v8382_v38  ;;  %v8287_v38 = vld [vmem:[#allocation12 + $0xb0] sm:$0xf0] }
 0x23b   :  { %5033 = vmatpush.bf16.msra.mxu2 %v8510_v27  ;;  %v9920_v27 = vld [vmem:[#allocation12 + $0x1a4] sm:$0xf]  ;;  %v8290_v35 = vor.u32 %v9888_v23, %v8287_v38  ;;  %v8207_v23 = vld [vmem:[#allocation12 + $0x10] sm:$0xf0] }
 0x23c   :  { %v8418_v60 = vor.u32 %v9920_v27, %v8415_v40  ;;  %v9900_v40 = vld [vmem:[#allocation12 + $0x104] sm:$0xf] }
 0x23d   :  { %5008 = vmatpush.bf16.msra.mxu0 %v8238_v44  ;;  %v698_v44 = vperm.slane %v10013_v43, 3  ;;  %v8685_v43 = vld [vmem:[#allocation12 + $0x3c0] sm:$0xf] }
 0x23e   :  { %5021 = vmatpush.bf16.msra.mxu1 %v8366_v62  ;;  %v8527_v62 = vld [vmem:[#allocation12 + $0x290] sm:$0xf0] }
 0x23f   :  { %5034 = vmatpush.bf16.msra.mxu2 %v8494_v46  ;;  %v8274_v46 = vor.u32 %v9884_v30, %v8271_v36  ;;  %v8530_v54 = vor.u32 %v9948_v45, %v8527_v62  ;;  %v8325_v30 = vld [vmem:[#allocation12 + $0xe8] sm:$0xf]  ;;  %v9899_v36 = vld [vmem:[#allocation12 + $0xf4] sm:$0xf0] }
 0x240   :  { %v9931_v45 = vld [vmem:[#allocation12 + $0x1f4] sm:$0xf0]  ;;  %v8581_v62 = vld [vmem:[#allocation12 + $0x2e8] sm:$0xf]  ;;  %v8326_v52 = vor.u32 %v9899_v36, %v8325_v30 }
 0x241   :  { %5009 = vmatpush.bf16.msra.mxu0 %v8222_v56  ;;  %v8454_v61 = vor.u32 %v9931_v45, %v8453_v42  ;;  %v9915_v30 = vld [vmem:[#allocation12 + $0x174] sm:$0xf0]  ;;  %v8517_v36 = vld [vmem:[#allocation12 + $0x268] sm:$0xf] }
 0x242   :  { %5022 = vmatpush.bf16.msra.mxu1 %v8350_v57  ;;  %v9944_v57 = vld [vmem:[#allocation12 + $0x264] sm:$0xf] }
 0x243   :  { %5035 = vmatpush.bf16.msra.mxu2 %v8478_v59  ;;  %v8511_v59 = vld [vmem:[#allocation12 + $0x270] sm:$0xf0] }
 0x244   :  { %v8514_v2 = vor.u32 %v9944_v57, %v8511_v59  ;;  %v8437_v57 = vld [vmem:[#allocation12 + $0x1c8] sm:$0xf]  ;;  %v9927_v59 = vld [vmem:[#allocation12 + $0x1d4] sm:$0xf0] }
 0x245   :  { %5010 = vmatpush.bf16.msra.mxu0 %v8206_v11  ;;  %v3896_v51 = vpop.f32.mrf.mxu0  ;;  %v8438_v4 = vor.u32 %v9927_v59, %v8437_v57  ;;  %v9970_v57 = vld [vmem:[#allocation12 + $0x32c] sm:$0xf0] }
 0x246   :  { %5023 = vmatpush.bf16.msra.mxu1 %v8334_v9  ;;  %v3897_v56 = vadd.f32 %v3896_v51, %v698_v44  ;;  %v3909_v39 = vpop.f32.mrf.mxu1  ;;  %v9872_v9 = vld [vmem:[#allocation12 + $0x24] sm:$0xf]  ;;  %v9990_v44 = vld [vmem:[#allocation12 + $0x3cc] sm:$0xf0]  ;;  %v8338_v51 = vor.u32 %v9900_v40, %v8335_v32  ;;  %v8261_v32 = vld [vmem:[#allocation12 + $0x68] sm:$0xf] }
 0x247   :  { %5036 = vmatpush.bf16.msra.mxu2 %v8462_v13  ;;  %v8223_v13 = vld [vmem:[#allocation12 + $0x30] sm:$0xf0] }
 0x248   :  { %5011 = vmatmul.bf16.vlgmr.msra.gmra.mxu0 %v10479_v25  ;;  %v3910_v63 = vadd.f32 %v3909_v39, %v3897_v56  ;;  %v8226_v38 = vor.u32 %v9872_v9, %v8223_v13  ;;  %v8309_v56 = vld [vmem:[#allocation12 + $0xc8] sm:$0xf]  ;;  %v9895_v39 = vld [vmem:[#allocation12 + $0xd4] sm:$0xf0]  ;;  %v9982_v9 = vld [vmem:[#allocation12 + $0x38c] sm:$0xf0] }
 0x249   :  { %5055 = vmatpush.bf16.msrb.mxu0 %v8322_v20  ;;  %5024 = vmatmul.bf16.vlgmr.msra.gmra.mxu1 %v10483_v21 }
 0x24a   :  { %5068 = vmatpush.bf16.msrb.mxu1 %v8450_v15  ;;  %5037 = vmatmul.bf16.vlgmr.msra.gmra.mxu2 %v10487_v29 }
 0x24b   :  { %5081 = vmatpush.bf16.msrb.mxu2 %v8578_v17  ;;  %v9904_v17 = vld [vmem:[#allocation12 + $0x124] sm:$0xf] }
 0x24c   :  { %v8354_v27 = vor.u32 %v9904_v17, %v8351_v19  ;;  %v8277_v19 = vld [vmem:[#allocation12 + $0x88] sm:$0xf] }
 0x24d   :  { %5056 = vmatpush.bf16.msrb.mxu0 %v8306_v24  ;;  %v3922_v5 = vpop.f32.mrf.mxu2  ;;  %v3898_v15 = vpop.f32.mrf.mxu0  ;;  %v9994_v24 = vld [vmem:[#allocation12 + $0x3ec] sm:$0xf0] }
 0x24e   :  { %5069 = vmatpush.bf16.msrb.mxu1 %v8434_v22  ;;  %v3923_v8 = vadd.f32 %v3922_v5, %v3910_v63  ;;  %v3935_v11 = vpop.f32.mrf.mxu3  ;;  %v3911_v28 = vpop.f32.mrf.mxu1  ;;  %v9868_v22 = vld [vmem:[#allocation12 + $0x4] sm:$0xf]  ;;  %v8565_v63 = vld [vmem:[#allocation12 + $0x2c8] sm:$0xf] }
 0x24f   :  { %5082 = vmatpush.bf16.msrb.mxu2 %v8562_v37  ;;  %v8702_v37 = vor.u32 %v9994_v24, %v8701_v18  ;;  %v8210_v50 = vor.u32 %v9868_v22, %v8207_v23  ;;  %v8293_v5 = vld [vmem:[#allocation12 + $0xa8] sm:$0xf]  ;;  %v9951_v24 = vld [vmem:[#allocation12 + $0x294] sm:$0xf0]  ;;  %v8637_v22 = vld [vmem:[#allocation12 + $0x360] sm:$0xf] }
 0x250   :  { %v10492_v20 = vadd.f32 %v3935_v11, %v3923_v8  ;;  %v9923_v8 = vld [vmem:[#allocation12 + $0x1b4] sm:$0xf0]  ;;  %v8549_v11 = vld [vmem:[#allocation12 + $0x2a8] sm:$0xf]  ;;  %v8294_v13 = vor.u32 %v9891_v7, %v8293_v5  ;;  %v9978_v23 = vld [vmem:[#allocation12 + $0x36c] sm:$0xf0] }
 0x251   :  { %5057 = vmatpush.bf16.msrb.mxu0 %v8290_v35  ;;  %v8482_v35 = vor.u32 %v9936_v26, %v8479_v34  ;;  %5042 = vmatpush.bf16.msra.mxu3 %v8702_v37  ;;  %v9887_v26 = vld [vmem:[#allocation12 + $0x94] sm:$0xf0]  ;;  %v8405_v28 = vld [vmem:[#allocation12 + $0x188] sm:$0xf] }
 0x252   :  { %5070 = vmatpush.bf16.msrb.mxu1 %v8418_v60  ;;  %v8463_v60 = vld [vmem:[#allocation12 + $0x210] sm:$0xf0]  ;;  %v9919_v34 = vld [vmem:[#allocation12 + $0x194] sm:$0xf0]  ;;  %v8533_v18 = vld [vmem:[#allocation12 + $0x288] sm:$0xf]  ;;  %v8278_v37 = vor.u32 %v9887_v26, %v8277_v19 }
 0x253   :  { %5083 = vmatpush.bf16.msrb.mxu2 %v8546_v41  ;;  %v8534_v40 = vor.u32 %v9951_v24, %v8533_v18  ;;  %v8485_v5 = vld [vmem:[#allocation12 + $0x228] sm:$0xf]  ;;  %v9939_v7 = vld [vmem:[#allocation12 + $0x234] sm:$0xf0] }
 0x254   :  { %v8486_v26 = vor.u32 %v9939_v7, %v8485_v5  ;;  %v9935_v18 = vld [vmem:[#allocation12 + $0x214] sm:$0xf0]  ;;  %v9980_v5 = vld [vmem:[#allocation12 + $0x384] sm:$0xf]  ;;  %v8655_v7 = vld [vmem:[#allocation12 + $0x390] sm:$0xf0] }
 0x255   :  { %5058 = vmatpush.bf16.msrb.mxu0 %v8274_v46  ;;  %v3924_v41 = vpop.f32.mrf.mxu2  ;;  %v9963_v46 = vld [vmem:[#allocation12 + $0x2f4] sm:$0xf0] }
 0x256   :  { %5071 = vmatpush.bf16.msrb.mxu1 %v8402_v47  ;;  %v3937_v55 = vpop.f32.mrf.mxu3  ;;  %v8686_v47 = vor.u32 %v9990_v44, %v8685_v43  ;;  %v8582_v48 = vor.u32 %v9963_v46, %v8581_v62  ;;  %v9947_v41 = vld [vmem:[#allocation12 + $0x274] sm:$0xf0]  ;;  %v9974_v43 = vld [vmem:[#allocation12 + $0x34c] sm:$0xf0] }
 0x257   :  { %5084 = vmatpush.bf16.msrb.mxu2 %v8530_v54  ;;  %v8466_v54 = vor.u32 %v9932_v33, %v8463_v60  ;;  %v9883_v33 = vld [vmem:[#allocation12 + $0x74] sm:$0xf0]  ;;  %v8621_v55 = vld [vmem:[#allocation12 + $0x340] sm:$0xf]  ;;  %v8518_v46 = vor.u32 %v9947_v41, %v8517_v36  ;;  %v8583_v36 = vld [vmem:[#allocation12 + $0x2f8] sm:$0xf0] }
 0x258   :  { %5043 = vmatpush.bf16.msra.mxu3 %v8686_v47  ;;  %v8262_v44 = vor.u32 %v9883_v33, %v8261_v32  ;;  %v8622_v45 = vor.u32 %v9974_v43, %v8621_v55  ;;  %v8245_v47 = vld [vmem:[#allocation12 + $0x48] sm:$0xf]  ;;  %v9988_v32 = vld [vmem:[#allocation12 + $0x3c4] sm:$0xf]  ;;  %v8687_v33 = vld [vmem:[#allocation12 + $0x3d0] sm:$0xf0] }
 0x259   :  { %5059 = vmatpush.bf16.msrb.mxu0 %v8258_v0  ;;  %v9959_v0 = vld [vmem:[#allocation12 + $0x2d4] sm:$0xf0]  ;;  %v8690_v41 = vor.u32 %v9988_v32, %v8687_v33  ;;  %v9945_v32 = vld [vmem:[#allocation12 + $0x26c] sm:$0xf]  ;;  %v8519_v33 = vld [vmem:[#allocation12 + $0x278] sm:$0xf0] }
 0x25a   :  { %5072 = vmatpush.bf16.msrb.mxu1 %v8386_v1  ;;  %v8669_v1 = vld [vmem:[#allocation12 + $0x3a0] sm:$0xf]  ;;  %v8566_v53 = vor.u32 %v9959_v0, %v8565_v63 }
 0x25b   :  { %5085 = vmatpush.bf16.msrb.mxu2 %v8514_v2  ;;  %v8310_v2 = vor.u32 %v9895_v39, %v8309_v56  ;;  %v8670_v3 = vor.u32 %v9986_v6, %v8669_v1  ;;  %v8605_v39 = vld [vmem:[#allocation12 + $0x320] sm:$0xf]  ;;  %v8229_v6 = vld [vmem:[#allocation12 + $0x28] sm:$0xf] }
 0x25c   :  { %v8606_v63 = vor.u32 %v9970_v57, %v8605_v39  ;;  %v8671_v39 = vld [vmem:[#allocation12 + $0x3b0] sm:$0xf0] }
 0x25d   :  { %5060 = vmatpush.bf16.msrb.mxu0 %v8242_v12  ;;  %v9955_v12 = vld [vmem:[#allocation12 + $0x2b4] sm:$0xf0]  ;;  %5044 = vmatpush.bf16.msra.mxu3 %v8670_v3  ;;  %v8357_v3 = vld [vmem:[#allocation12 + $0x128] sm:$0xf] }
 0x25e   :  { %5073 = vmatpush.bf16.msrb.mxu1 %v8370_v58  ;;  %v8653_v58 = vld [vmem:[#allocation12 + $0x380] sm:$0xf]  ;;  %v8550_v17 = vor.u32 %v9955_v12, %v8549_v11  ;;  %v9966_v12 = vld [vmem:[#allocation12 + $0x30c] sm:$0xf0] }
 0x25f   :  { %5086 = vmatpush.bf16.msrb.mxu2 %v8498_v16  ;;  %v8654_v15 = vor.u32 %v9982_v9, %v8653_v58  ;;  %v8422_v16 = vor.u32 %v9923_v8, %v8421_v10  ;;  %v8213_v8 = vld [vmem:[#allocation12 + $0x8] sm:$0xf]  ;;  %v8589_v11 = vld [vmem:[#allocation12 + $0x300] sm:$0xf]  ;;  %v9992_v58 = vld [vmem:[#allocation12 + $0x3e4] sm:$0xf] }
 0x261   :  { %5061 = vmatpush.bf16.msrb.mxu0 %v8226_v38  ;;  %5045 = vmatpush.bf16.msra.mxu3 %v8654_v15  ;;  %v8638_v38 = vor.u32 %v9978_v23, %v8637_v22  ;;  %v8341_v15 = vld [vmem:[#allocation12 + $0x108] sm:$0xf]  ;;  %v9897_v22 = vld [vmem:[#allocation12 + $0xec] sm:$0xf]  ;;  %v8327_v23 = vld [vmem:[#allocation12 + $0xf8] sm:$0xf0] }
 0x262   :  { %5074 = vmatpush.bf16.msrb.mxu1 %v8354_v27  ;;  %v8406_v27 = vor.u32 %v9919_v34, %v8405_v28  ;;  %v9903_v28 = vld [vmem:[#allocation12 + $0x114] sm:$0xf0]  ;;  %v8469_v34 = vld [vmem:[#allocation12 + $0x208] sm:$0xf] }
 0x263   :  { %5087 = vmatpush.bf16.msrb.mxu2 %v8482_v35  ;;  %v8389_v35 = vld [vmem:[#allocation12 + $0x168] sm:$0xf]  ;;  %v8342_v55 = vor.u32 %v9903_v28, %v8341_v15  ;;  %v8470_v43 = vor.u32 %v9935_v18, %v8469_v34  ;;  %v8407_v15 = vld [vmem:[#allocation12 + $0x198] sm:$0xf0] }
 0x264   :  { %v8390_v62 = vor.u32 %v9915_v30, %v8389_v35  ;;  %v9961_v30 = vld [vmem:[#allocation12 + $0x2ec] sm:$0xf] }
 0x265   :  { %5062 = vmatpush.bf16.msrb.mxu0 %v8210_v50  ;;  %v10497_v60 = vpop.f32.mrf.mxu0  ;;  %5046 = vmatpush.bf16.msra.mxu3 %v8638_v38  ;;  %v9879_v50 = vld [vmem:[#allocation12 + $0x54] sm:$0xf0] }
 0x266   :  { %5075 = vmatpush.bf16.msrb.mxu1 %v8338_v51  ;;  %v10499_v42 = vpop.f32.mrf.mxu1  ;;  %v8373_v51 = vld [vmem:[#allocation12 + $0x148] sm:$0xf]  ;;  %v8246_v59 = vor.u32 %v9879_v50, %v8245_v47  ;;  %v8586_v47 = vor.u32 %v9961_v30, %v8583_v36  ;;  %v9925_v50 = vld [vmem:[#allocation12 + $0x1cc] sm:$0xf]  ;;  %v8623_v30 = vld [vmem:[#allocation12 + $0x350] sm:$0xf0] }
 0x267   :  { %5088 = vmatpush.bf16.msrb.mxu2 %v8466_v54  ;;  %v9911_v54 = vld [vmem:[#allocation12 + $0x154] sm:$0xf0] }
 0x268   :  { %5063 = vmatmul.bf16.vlgmr.msrb.gmra.mxu0 %v10479_v25  ;;  %v8374_v0 = vor.u32 %v9911_v54, %v8373_v51  ;;  %v8439_v51 = vld [vmem:[#allocation12 + $0x1d8] sm:$0xf0]  ;;  %v9957_v54 = vld [vmem:[#allocation12 + $0x2cc] sm:$0xf] }
 0x269   :  { %5107 = vmatpush.bf16.msra.mxu0 %v8326_v52  ;;  %5076 = vmatmul.bf16.vlgmr.msrb.gmra.mxu1 %v10483_v21  ;;  %v8501_v52 = vld [vmem:[#allocation12 + $0x248] sm:$0xf] }
 0x26a   :  { %5120 = vmatpush.bf16.msra.mxu1 %v8454_v61  ;;  %5089 = vmatmul.bf16.vlgmr.msrb.gmra.mxu2 %v10487_v29  ;;  %v9943_v61 = vld [vmem:[#allocation12 + $0x254] sm:$0xf0] }
 0x26b   :  { %5133 = vmatpush.bf16.msra.mxu2 %v8582_v48  ;;  %5047 = vmatpush.bf16.msra.mxu3 %v8622_v45  ;;  %v8502_v1 = vor.u32 %v9943_v61, %v8501_v52  ;;  %v8567_v52 = vld [vmem:[#allocation12 + $0x2d8] sm:$0xf0]  ;;  %v9984_v61 = vld [vmem:[#allocation12 + $0x3a4] sm:$0xf] }
 0x26c   :  { %v8674_v57 = vor.u32 %v9984_v61, %v8671_v39 }
 0x26d   :  { %5108 = vmatpush.bf16.msra.mxu0 %v8310_v2  ;;  %v10501_v48 = vpop.f32.mrf.mxu2  ;;  %v9875_v2 = vld [vmem:[#allocation12 + $0x34] sm:$0xf0] }
 0x26e   :  { %5121 = vmatpush.bf16.msra.mxu1 %v8438_v4  ;;  %v10503_v56 = vpop.f32.mrf.mxu3  ;;  %v3950_v4 = vpop.f32.mrf.mxu0  ;;  %v8230_v9 = vor.u32 %v9875_v2, %v8229_v6  ;;  %v8570_v6 = vor.u32 %v9957_v54, %v8567_v52  ;;  %v9921_v2 = vld [vmem:[#allocation12 + $0x1ac] sm:$0xf]  ;;  %v9968_v54 = vld [vmem:[#allocation12 + $0x324] sm:$0xf]  ;;  %v8607_v52 = vld [vmem:[#allocation12 + $0x330] sm:$0xf0] }
 0x26f   :  { %5134 = vmatpush.bf16.msra.mxu2 %v8566_v53  ;;  %v9907_v53 = vld [vmem:[#allocation12 + $0x134] sm:$0xf0]  ;;  %v3963_v10 = vpop.f32.mrf.mxu1  ;;  %5048 = vmatpush.bf16.msra.mxu3 %v8606_v63  ;;  %v8442_v63 = vor.u32 %v9925_v50, %v8439_v51  ;;  %v9953_v4 = vld [vmem:[#allocation12 + $0x2ac] sm:$0xf]  ;;  %v3949_v50 = vadd.f32 %v10497_v60, %v10492_v20  ;;  %v8503_v51 = vld [vmem:[#allocation12 + $0x258] sm:$0xf0]  ;;  %v8610_v39 = vor.u32 %v9968_v54, %v8607_v52 }
 0x270   :  { %v8358_v19 = vor.u32 %v9907_v53, %v8357_v3  ;;  %v8423_v3 = vld [vmem:[#allocation12 + $0x1b8] sm:$0xf0]  ;;  %v8658_v10 = vor.u32 %v9980_v5, %v8655_v7  ;;  %v9937_v60 = vld [vmem:[#allocation12 + $0x22c] sm:$0xf]  ;;  %v9964_v7 = vld [vmem:[#allocation12 + $0x304] sm:$0xf] }
 0x271   :  { %5109 = vmatpush.bf16.msra.mxu0 %v8294_v13  ;;  %v9871_v13 = vld [vmem:[#allocation12 + $0x14] sm:$0xf0]  ;;  %v8551_v53 = vld [vmem:[#allocation12 + $0x2b8] sm:$0xf0]  ;;  %v9762_v54 = vld [vmem:[#allocation11 + $0xac] sm:$0xf0] }
 0x272   :  { %5122 = vmatpush.bf16.msra.mxu1 %v8422_v16  ;;  %v8590_v16 = vor.u32 %v9966_v12, %v8589_v11  ;;  %v8214_v35 = vor.u32 %v9871_v13, %v8213_v8  ;;  %v8426_v11 = vor.u32 %v9921_v2, %v8423_v3  ;;  %v9885_v12 = vld [vmem:[#allocation12 + $0x8c] sm:$0xf]  ;;  %v8359_v20 = vld [vmem:[#allocation12 + $0x138] sm:$0xf0]  ;;  %v9053_v52 = vld [vmem:[#allocation11 + $0x2a0] sm:$0xf] }
 0x273   :  { %5135 = vmatpush.bf16.msra.mxu2 %v8550_v17  ;;  %v8703_v17 = vld [vmem:[#allocation12 + $0x3f0] sm:$0xf0]  ;;  %v9917_v13 = vld [vmem:[#allocation12 + $0x18c] sm:$0xf]  ;;  %v8487_v5 = vld [vmem:[#allocation12 + $0x238] sm:$0xf0] }
 0x274   :  { %v8706_v24 = vor.u32 %v9992_v58, %v8703_v17  ;;  %5049 = vmatpush.bf16.msra.mxu3 %v8590_v16  ;;  %v8279_v58 = vld [vmem:[#allocation12 + $0x98] sm:$0xf0]  ;;  %v9949_v16 = vld [vmem:[#allocation12 + $0x28c] sm:$0xf] }
 0x275   :  { %5110 = vmatpush.bf16.msra.mxu0 %v8278_v37  ;;  %v9929_v37 = vld [vmem:[#allocation12 + $0x1ec] sm:$0xf]  ;;  %v3976_v38 = vpop.f32.mrf.mxu2  ;;  %v8535_v17 = vld [vmem:[#allocation12 + $0x298] sm:$0xf0]  ;;  %v8282_v18 = vor.u32 %v9885_v12, %v8279_v58 }
 0x276   :  { %5123 = vmatpush.bf16.msra.mxu1 %v8406_v27  ;;  %v8455_v27 = vld [vmem:[#allocation12 + $0x1f8] sm:$0xf0]  ;;  %v9905_v3 = vld [vmem:[#allocation12 + $0x12c] sm:$0xf] }
 0x277   :  { %5136 = vmatpush.bf16.msra.mxu2 %v8534_v40  ;;  %v3989_v40 = vpop.f32.mrf.mxu3  ;;  %v8458_v45 = vor.u32 %v9929_v37, %v8455_v27  ;;  %v8538_v37 = vor.u32 %v9949_v16, %v8535_v17  ;;  %v9913_v27 = vld [vmem:[#allocation12 + $0x16c] sm:$0xf]  ;;  %v8362_v12 = vor.u32 %v9905_v3, %v8359_v20  ;;  %v8343_v16 = vld [vmem:[#allocation12 + $0x118] sm:$0xf0]  ;;  %v8781_v3 = vld [vmem:[#allocation11 + $0x80] sm:$0xf] }
 0x278   :  { %5094 = vmatpush.bf16.msrb.mxu3 %v8706_v24  ;;  %v8410_v24 = vor.u32 %v9917_v13, %v8407_v15  ;;  %v8391_v40 = vld [vmem:[#allocation12 + $0x178] sm:$0xf0]  ;;  %v9869_v58 = vld [vmem:[#allocation12 + $0xc] sm:$0xf]  ;;  %v8490_v15 = vor.u32 %v9937_v60, %v8487_v5  ;;  %v9758_v20 = vld [vmem:[#allocation11 + $0x8c] sm:$0xf0] }
 0x279   :  { %5111 = vmatpush.bf16.msra.mxu0 %v8262_v44  ;;  %v8330_v44 = vor.u32 %v9897_v22, %v8327_v23  ;;  %v9881_v22 = vld [vmem:[#allocation12 + $0x6c] sm:$0xf]  ;;  %v8263_v23 = vld [vmem:[#allocation12 + $0x78] sm:$0xf0]  ;;  %v9822_v60 = vld [vmem:[#allocation11 + $0x28c] sm:$0xf0] }
 0x27a   :  { %5124 = vmatpush.bf16.msra.mxu1 %v8390_v62  ;;  %v9893_v62 = vld [vmem:[#allocation12 + $0xcc] sm:$0xf] }
 0x27b   :  { %5137 = vmatpush.bf16.msra.mxu2 %v8518_v46  ;;  %v8311_v46 = vld [vmem:[#allocation12 + $0xd8] sm:$0xf0]  ;;  %v9901_v13 = vld [vmem:[#allocation12 + $0x10c] sm:$0xf] }
 0x27c   :  { %5095 = vmatpush.bf16.msrb.mxu3 %v8690_v41  ;;  %v8266_v41 = vor.u32 %v9881_v22, %v8263_v23  ;;  %v9933_v17 = vld [vmem:[#allocation12 + $0x20c] sm:$0xf]  ;;  %v8957_v23 = vld [vmem:[#allocation11 + $0x1e0] sm:$0xf] }
 0x27d   :  { %5112 = vmatpush.bf16.msra.mxu0 %v8246_v59  ;;  %v8314_v59 = vor.u32 %v9893_v62, %v8311_v46  ;;  %v9909_v62 = vld [vmem:[#allocation12 + $0x14c] sm:$0xf]  ;;  %v8375_v46 = vld [vmem:[#allocation12 + $0x158] sm:$0xf0] }
 0x27e   :  { %5125 = vmatpush.bf16.msra.mxu1 %v8374_v0  ;;  %v9889_v0 = vld [vmem:[#allocation12 + $0xac] sm:$0xf] }
 0x27f   :  { %5138 = vmatpush.bf16.msra.mxu2 %v8502_v1  ;;  %v8295_v1 = vld [vmem:[#allocation12 + $0xb8] sm:$0xf0] }
 0x280   :  { %5096 = vmatpush.bf16.msrb.mxu3 %v8674_v57  ;;  %v8298_v8 = vor.u32 %v9889_v0, %v8295_v1  ;;  %v9873_v0 = vld [vmem:[#allocation12 + $0x2c] sm:$0xf]  ;;  %v8231_v1 = vld [vmem:[#allocation12 + $0x38] sm:$0xf0] }
 0x281   :  { %5113 = vmatpush.bf16.msra.mxu0 %v8230_v9  ;;  %v8554_v9 = vor.u32 %v9953_v4, %v8551_v53  ;;  %v3962_v53 = vadd.f32 %v10499_v42, %v3949_v50  ;;  %v8829_v42 = vld [vmem:[#allocation11 + $0xe0] sm:$0xf] }
 0x282   :  { %5126 = vmatpush.bf16.msra.mxu1 %v8358_v19  ;;  %v9976_v19 = vld [vmem:[#allocation12 + $0x364] sm:$0xf] }
 0x283   :  { %5139 = vmatpush.bf16.msra.mxu2 %v8486_v26  ;;  %v8639_v26 = vld [vmem:[#allocation12 + $0x370] sm:$0xf0] }
 0x284   :  { %5097 = vmatpush.bf16.msrb.mxu3 %v8658_v10  ;;  %v8642_v28 = vor.u32 %v9976_v19, %v8639_v26  ;;  %v8591_v10 = vld [vmem:[#allocation12 + $0x310] sm:$0xf0]  ;;  %v8471_v19 = vld [vmem:[#allocation12 + $0x218] sm:$0xf0]  ;;  %v3975_v26 = vadd.f32 %v10501_v48, %v3962_v53  ;;  %v8782_v53 = vor.u32 %v9758_v20, %v8781_v3  ;;  %v8845_v3 = vld [vmem:[#allocation11 + $0x100] sm:$0xf] }
 0x285   :  { %5114 = vmatpush.bf16.msra.mxu0 %v8214_v35  ;;  %v10508_v34 = vpop.f32.mrf.mxu0  ;;  %v9972_v35 = vld [vmem:[#allocation12 + $0x344] sm:$0xf]  ;;  %v9774_v20 = vld [vmem:[#allocation11 + $0x10c] sm:$0xf0] }
 0x286   :  { %5127 = vmatpush.bf16.msra.mxu1 %v8342_v55  ;;  %v10510_v38 = vpop.f32.mrf.mxu1  ;;  %v8626_v36 = vor.u32 %v9972_v35, %v8623_v30  ;;  %v8394_v55 = vor.u32 %v9913_v27, %v8391_v40  ;;  %v8346_v40 = vor.u32 %v9901_v13, %v8343_v16  ;;  %v3988_v30 = vadd.f32 %v10503_v56, %v3975_v26  ;;  %v8797_v56 = vld [vmem:[#allocation11 + $0xa0] sm:$0xf] }
 0x287   :  { %5140 = vmatpush.bf16.msra.mxu2 %v8470_v43  ;;  %v9877_v43 = vld [vmem:[#allocation12 + $0x4c] sm:$0xf]  ;;  %v9005_v26 = vld [vmem:[#allocation11 + $0x240] sm:$0xf] }
 0x288   :  { %5115 = vmatmul.bf16.vlgmr.msra.gmra.mxu0 %v10479_v25  ;;  %5098 = vmatpush.bf16.msrb.mxu3 %v8642_v28  ;;  %v9770_v28 = vld [vmem:[#allocation11 + $0xec] sm:$0xf0] }
 0x289   :  { %5159 = vmatpush.bf16.msrb.mxu0 %v8330_v44  ;;  %5128 = vmatmul.bf16.vlgmr.msra.gmra.mxu1 %v10483_v21  ;;  %v8247_v44 = vld [vmem:[#allocation12 + $0x58] sm:$0xf0]  ;;  %v8830_v35 = vor.u32 %v9770_v28, %v8829_v42  ;;  %v9814_v42 = vld [vmem:[#allocation11 + $0x24c] sm:$0xf0]  ;;  %v8877_v28 = vld [vmem:[#allocation11 + $0x140] sm:$0xf] }
 0x28a   :  { %5172 = vmatpush.bf16.msrb.mxu1 %v8458_v45  ;;  %5141 = vmatmul.bf16.vlgmr.msra.gmra.mxu2 %v10487_v29  ;;  %v8522_v45 = vor.u32 %v9945_v32, %v8519_v33  ;;  %v8474_v33 = vor.u32 %v9933_v17, %v8471_v19  ;;  %v9750_v19 = vld [vmem:[#allocation11 + $0x4c] sm:$0xf0] }
 0x28b   :  { %5185 = vmatpush.bf16.msrb.mxu2 %v8586_v47  ;;  %v9941_v47 = vld [vmem:[#allocation12 + $0x24c] sm:$0xf] }
 0x28c   :  { %5099 = vmatpush.bf16.msrb.mxu3 %v8626_v36  ;;  %v8506_v2 = vor.u32 %v9941_v47, %v8503_v51 }
 0x28d   :  { %5160 = vmatpush.bf16.msrb.mxu0 %v8314_v59  ;;  %v10514_v61 = vpop.f32.mrf.mxu2  ;;  %v8250_v59 = vor.u32 %v9877_v43, %v8247_v44  ;;  %v9069_v43 = vld [vmem:[#allocation11 + $0x2c0] sm:$0xf]  ;;  %v9830_v44 = vld [vmem:[#allocation11 + $0x2cc] sm:$0xf0] }
 0x28e   :  { %5173 = vmatpush.bf16.msrb.mxu1 %v8442_v63  ;;  %v10516_v57 = vpop.f32.mrf.mxu3  ;;  %v8378_v63 = vor.u32 %v9909_v62, %v8375_v46  ;;  %v4015_v4 = vpop.f32.mrf.mxu1  ;;  %v9798_v62 = vld [vmem:[#allocation11 + $0x1cc] sm:$0xf0]  ;;  %v4001_v46 = vadd.f32 %v10508_v34, %v3988_v30  ;;  %v9070_v50 = vor.u32 %v9830_v44, %v9069_v43  ;;  %v9006_v30 = vor.u32 %v9814_v42, %v9005_v26  ;;  %v8861_v44 = vld [vmem:[#allocation11 + $0x120] sm:$0xf]  ;;  %v9796_v42 = vld [vmem:[#allocation11 + $0x1c4] sm:$0xf] }
 0x28f   :  { %5186 = vmatpush.bf16.msrb.mxu2 %v8570_v6  ;;  %v4002_v6 = vpop.f32.mrf.mxu0  ;;  %v9790_v4 = vld [vmem:[#allocation11 + $0x18c] sm:$0xf0] }
 0x290   :  { %5100 = vmatpush.bf16.msrb.mxu3 %v8610_v39  ;;  %v9826_v39 = vld [vmem:[#allocation11 + $0x2ac] sm:$0xf0]  ;;  %v4014_v34 = vadd.f32 %v10510_v38, %v4001_v46 }
 0x291   :  { %5161 = vmatpush.bf16.msrb.mxu0 %v8298_v8  ;;  %v8594_v8 = vor.u32 %v9964_v7, %v8591_v10  ;;  %v9054_v6 = vor.u32 %v9826_v39, %v9053_v52  ;;  %v8765_v10 = vld [vmem:[#allocation11 + $0x60] sm:$0xf]  ;;  %v9810_v43 = vld [vmem:[#allocation11 + $0x22c] sm:$0xf0] }
 0x292   :  { %5174 = vmatpush.bf16.msrb.mxu1 %v8426_v11  ;;  %v8234_v11 = vor.u32 %v9873_v0, %v8231_v1  ;;  %v8798_v0 = vor.u32 %v9762_v54, %v8797_v56  ;;  %v4027_v1 = vadd.f32 %v10514_v61, %v4014_v34  ;;  %v8717_v56 = vld [vmem:[#allocation11] sm:$0xf]  ;;  %v9806_v34 = vld [vmem:[#allocation11 + $0x20c] sm:$0xf0] }
 0x293   :  { %5187 = vmatpush.bf16.msrb.mxu2 %v8554_v9  ;;  %v8215_v9 = vld [vmem:[#allocation12 + $0x18] sm:$0xf0] }
 0x294   :  { %5101 = vmatpush.bf16.msrb.mxu3 %v8594_v8  ;;  %v8218_v27 = vor.u32 %v9869_v58, %v8215_v9  ;;  %v4040_v38 = vadd.f32 %v10516_v57, %v4027_v1  ;;  %v9754_v8 = vld [vmem:[#allocation11 + $0x6c] sm:$0xf0]  ;;  %v8893_v58 = vld [vmem:[#allocation11 + $0x160] sm:$0xf]  ;;  %v8831_v1 = vld [vmem:[#allocation11 + $0xf0] sm:$0xf0] }
 0x295   :  { %5162 = vmatpush.bf16.msrb.mxu0 %v8282_v18  ;;  %v9085_v18 = vld [vmem:[#allocation11 + $0x2e0] sm:$0xf]  ;;  %v4028_v22 = vpop.f32.mrf.mxu2  ;;  %v9786_v9 = vld [vmem:[#allocation11 + $0x16c] sm:$0xf0] }
 0x296   :  { %5175 = vmatpush.bf16.msrb.mxu1 %v8410_v24  ;;  %v9834_v24 = vld [vmem:[#allocation11 + $0x2ec] sm:$0xf0]  ;;  %v4041_v32 = vpop.f32.mrf.mxu3  ;;  %v8894_v17 = vor.u32 %v9786_v9, %v8893_v58  ;;  %v8749_v57 = vld [vmem:[#allocation11 + $0x40] sm:$0xf]  ;;  %v8815_v58 = vld [vmem:[#allocation11 + $0xd0] sm:$0xf0] }
 0x297   :  { %5188 = vmatpush.bf16.msrb.mxu2 %v8538_v37  ;;  %v9802_v37 = vld [vmem:[#allocation11 + $0x1ec] sm:$0xf0]  ;;  %v9086_v36 = vor.u32 %v9834_v24, %v9085_v18 }
 0x298   :  { %v8958_v48 = vor.u32 %v9802_v37, %v8957_v23  ;;  %v9782_v18 = vld [vmem:[#allocation11 + $0x14c] sm:$0xf0]  ;;  %v8750_v37 = vor.u32 %v9750_v19, %v8749_v57  ;;  %v4096_v57 = vld [vmem:[#allocation3 + $0x8] sm:$0xff] }
 0x299   :  { %5163 = vmatpush.bf16.msrb.mxu0 %v8266_v41  ;;  %v8813_v41 = vld [vmem:[#allocation11 + $0xc0] sm:$0xf] }
 0x29a   :  { %5176 = vmatpush.bf16.msrb.mxu1 %v8394_v55  ;;  %v9766_v55 = vld [vmem:[#allocation11 + $0xcc] sm:$0xf0] }
 0x29b   :  { %5189 = vmatpush.bf16.msrb.mxu2 %v8522_v45  ;;  %v8941_v45 = vld [vmem:[#allocation11 + $0x1c0] sm:$0xf]  ;;  %v8814_v47 = vor.u32 %v9766_v55, %v8813_v41  ;;  %v9746_v41 = vld [vmem:[#allocation11 + $0x2c] sm:$0xf0] }
 0x29c   :  { %v8942_v51 = vor.u32 %v9798_v62, %v8941_v45  ;;  %v8989_v55 = vld [vmem:[#allocation11 + $0x220] sm:$0xf]  ;;  %v9778_v45 = vld [vmem:[#allocation11 + $0x12c] sm:$0xf0] }
 0x29d   :  { %5164 = vmatpush.bf16.msrb.mxu0 %v8250_v59  ;;  %v8925_v59 = vld [vmem:[#allocation11 + $0x1a0] sm:$0xf]  ;;  %v8990_v52 = vor.u32 %v9810_v43, %v8989_v55  ;;  %v8862_v39 = vor.u32 %v9778_v45, %v8861_v44  ;;  %v8645_v55 = vld [vmem:[#allocation12 + $0x368] sm:$0xf]  ;;  %v9979_v43 = vld [vmem:[#allocation12 + $0x374] sm:$0xf0] }
 0x29e   :  { %5177 = vmatpush.bf16.msrb.mxu1 %v8378_v63  ;;  %v9794_v63 = vld [vmem:[#allocation11 + $0x1ac] sm:$0xf0]  ;;  %v9756_v45 = vld [vmem:[#allocation11 + $0x84] sm:$0xf] }
 0x29f   :  { %5190 = vmatpush.bf16.msrb.mxu2 %v8506_v2  ;;  %v8926_v2 = vor.u32 %v9794_v63, %v8925_v59  ;;  %v9742_v59 = vld [vmem:[#allocation11 + $0xc] sm:$0xf0]  ;;  %v8973_v63 = vld [vmem:[#allocation11 + $0x200] sm:$0xf] }
 0x2a1   :  { %5165 = vmatpush.bf16.msrb.mxu0 %v8234_v11  ;;  %v9021_v11 = vld [vmem:[#allocation11 + $0x260] sm:$0xf] }
 0x2a2   :  { %5178 = vmatpush.bf16.msrb.mxu1 %v8362_v12  ;;  %v9818_v12 = vld [vmem:[#allocation11 + $0x26c] sm:$0xf0] }
 0x2a3   :  { %5191 = vmatpush.bf16.msrb.mxu2 %v8490_v15  ;;  %v8766_v15 = vor.u32 %v9754_v8, %v8765_v10  ;;  %v9022_v16 = vor.u32 %v9818_v12, %v9021_v11  ;;  %v4095_v10 = vld [vmem:[#allocation3] sm:$0xff]  ;;  %v8846_v11 = vor.u32 %v9774_v20, %v8845_v3  ;;  %v9764_v12 = vld [vmem:[#allocation11 + $0xc4] sm:$0xf] }
 0x2a4   :  { %v10535_v9 = vpack.c.bf16 %v4095_v10, %v4095_v10  ;;  %v9748_v10 = vld [vmem:[#allocation11 + $0x44] sm:$0xf] }
 0x2a5   :  { %5166 = vmatpush.bf16.msrb.mxu0 %v8218_v27  ;;  %v8709_v27 = vld [vmem:[#allocation12 + $0x3e8] sm:$0xf] }
 0x2a6   :  { %5179 = vmatpush.bf16.msrb.mxu1 %v8346_v40  ;;  %v4065_v5 = vpop.f32.mrf.mxu1  ;;  %v9995_v40 = vld [vmem:[#allocation12 + $0x3f4] sm:$0xf0] }
 0x2a7   :  { %5192 = vmatpush.bf16.msrb.mxu2 %v8474_v33  ;;  %v8710_v46 = vor.u32 %v9995_v40, %v8709_v27  ;;  %v9760_v27 = vld [vmem:[#allocation11 + $0xa4] sm:$0xf]  ;;  %v8799_v40 = vld [vmem:[#allocation11 + $0xb0] sm:$0xf0] }
 0x2a8   :  { %5167 = vmatmul.bf16.vlgmr.msrb.gmra.mxu0 %v10479_v25  ;;  %v9037_v25 = vld [vmem:[#allocation11 + $0x280] sm:$0xf] }
 0x2a9   :  { %5851 = vmatpush.bf16.msra.mxu0 %v8830_v35  ;;  %5180 = vmatmul.bf16.vlgmr.msrb.gmra.mxu1 %v10483_v21  ;;  %v8909_v21 = vld [vmem:[#allocation11 + $0x180] sm:$0xf]  ;;  %v9038_v7 = vor.u32 %v9822_v60, %v9037_v25 }
 0x2aa   :  { %5864 = vmatpush.bf16.msra.mxu1 %v8958_v48  ;;  %5193 = vmatmul.bf16.vlgmr.msrb.gmra.mxu2 %v10487_v29  ;;  %v4052_v29 = vpop.f32.mrf.mxu0  ;;  %v8910_v61 = vor.u32 %v9790_v4, %v8909_v21  ;;  %v8733_v48 = vld [vmem:[#allocation11 + $0x20] sm:$0xf]  ;;  %v8718_v4 = vor.u32 %v9742_v59, %v8717_v56  ;;  %v8646_v56 = vor.u32 %v9979_v43, %v8645_v55 }
 0x2ab   :  { %5877 = vmatpush.bf16.msra.mxu2 %v9086_v36  ;;  %v4053_v13 = vadd.f32 %v4052_v29, %v4040_v38  ;;  %v8878_v36 = vor.u32 %v9782_v18, %v8877_v28  ;;  %v8959_v38 = vld [vmem:[#allocation11 + $0x1f0] sm:$0xf0]  ;;  %v8974_v29 = vor.u32 %v9806_v34, %v8973_v63  ;;  %v10539_v18 = vpack.c.bf16 %v4096_v57, %v4096_v57  ;;  %v8629_v63 = vld [vmem:[#allocation12 + $0x348] sm:$0xf]  ;;  %v9975_v34 = vld [vmem:[#allocation12 + $0x354] sm:$0xf0] }
 0x2ac   :  { %v8943_v28 = vld [vmem:[#allocation11 + $0x1d0] sm:$0xf0] }
 0x2ad   :  { %5852 = vmatpush.bf16.msra.mxu0 %v8814_v47  ;;  %v4066_v24 = vadd.f32 %v4065_v5, %v4053_v13  ;;  %v4078_v22 = vpop.f32.mrf.mxu2  ;;  %v8734_v47 = vor.u32 %v9746_v41, %v8733_v48  ;;  %v4097_v13 = vld [vmem:[#allocation3 + $0x10] sm:$0xff]  ;;  %v8927_v48 = vld [vmem:[#allocation11 + $0x1b0] sm:$0xf0]  ;;  %v8802_v41 = vor.u32 %v9760_v27, %v8799_v40  ;;  %v9744_v27 = vld [vmem:[#allocation11 + $0x24] sm:$0xf] }
 0x2ae   :  { %5865 = vmatpush.bf16.msra.mxu1 %v8942_v51  ;;  %v4091_v23 = vpop.f32.mrf.mxu3  ;;  %v4067_v35 = vpop.f32.mrf.mxu1  ;;  %v9991_v51 = vld [vmem:[#allocation12 + $0x3d4] sm:$0xf0]  ;;  %v10537_v19 = vpack.c.bf16 %v4097_v13, %v4097_v13  ;;  %v8735_v40 = vld [vmem:[#allocation11 + $0x30] sm:$0xf0] }
 0x2af   :  { %5878 = vmatpush.bf16.msra.mxu2 %v9070_v50  ;;  %v4079_v32 = vadd.f32 %v4078_v22, %v4066_v24  ;;  %v8693_v50 = vld [vmem:[#allocation12 + $0x3c8] sm:$0xf]  ;;  %v8818_v24 = vor.u32 %v9764_v12, %v8815_v58  ;;  %v9055_v35 = vld [vmem:[#allocation11 + $0x2b0] sm:$0xf0]  ;;  %v9812_v12 = vld [vmem:[#allocation11 + $0x244] sm:$0xf]  ;;  %v8738_v43 = vor.u32 %v9744_v27, %v8735_v40 }
 0x2b0   :  { %v8694_v21 = vor.u32 %v9991_v51, %v8693_v50  ;;  %v8661_v22 = vld [vmem:[#allocation12 + $0x388] sm:$0xf]  ;;  %v9820_v50 = vld [vmem:[#allocation11 + $0x284] sm:$0xf]  ;;  %v9039_v51 = vld [vmem:[#allocation11 + $0x290] sm:$0xf0] }
 0x2b1   :  { %5853 = vmatpush.bf16.msra.mxu0 %v8798_v0  ;;  %v10528_v62 = vadd.f32 %v4091_v23, %v4079_v32  ;;  %v9768_v0 = vld [vmem:[#allocation11 + $0xe4] sm:$0xf]  ;;  %v9983_v23 = vld [vmem:[#allocation12 + $0x394] sm:$0xf0]  ;;  %v8946_v32 = vor.u32 %v9796_v42, %v8943_v28  ;;  %v9007_v58 = vld [vmem:[#allocation11 + $0x250] sm:$0xf0] }
 0x2b2   :  { %5866 = vmatpush.bf16.msra.mxu1 %v8926_v2  ;;  %v4054_v33 = vpop.f32.mrf.mxu0  ;;  %v9087_v2 = vld [vmem:[#allocation11 + $0x2f0] sm:$0xf0]  ;;  %v8834_v5 = vor.u32 %v9768_v0, %v8831_v1  ;;  %v9042_v1 = vor.u32 %v9820_v50, %v9039_v51  ;;  %v9967_v42 = vld [vmem:[#allocation12 + $0x314] sm:$0xf0]  ;;  %v9993_v28 = vld [vmem:[#allocation12 + $0x3ec] sm:$0xf] }
 0x2b3   :  { %5879 = vmatpush.bf16.msra.mxu2 %v9054_v6  ;;  %v10532_v54 = vpack.c.bf16 %v10528_v62, %v10528_v62  ;;  %v9832_v6 = vld [vmem:[#allocation11 + $0x2e4] sm:$0xf]  ;;  %v8719_v50 = vld [vmem:[#allocation11 + $0x10] sm:$0xf0]  ;;  %v9795_v27 = vld [vmem:[#allocation11 + $0x1b4] sm:$0xf0] }
 0x2b4   :  { %v9090_v8 = vor.u32 %v9832_v6, %v9087_v2  ;;  %v9824_v33 = vld [vmem:[#allocation11 + $0x2a4] sm:$0xf]  ;;  %v8767_v2 = vld [vmem:[#allocation11 + $0x70] sm:$0xf0] }
 0x2b5   :  { %5854 = vmatpush.bf16.msra.mxu0 %v8782_v53  ;;  %5050 = vmatmul.bf16.vlgmr.msra.gmra.mxu3 %v10532_v54  ;;  %v4080_v25 = vpop.f32.mrf.mxu2  ;;  %v9800_v53 = vld [vmem:[#allocation11 + $0x1e4] sm:$0xf]  ;;  %v9058_v44 = vor.u32 %v9824_v33, %v9055_v35 }
 0x2b6   :  { %5867 = vmatpush.bf16.msra.mxu1 %v8910_v61  ;;  %5146 = vmatpush.bf16.msra.mxu3 %v8710_v46  ;;  %v4093_v60 = vpop.f32.mrf.mxu3  ;;  %v9987_v61 = vld [vmem:[#allocation12 + $0x3b4] sm:$0xf0]  ;;  %v8783_v46 = vld [vmem:[#allocation11 + $0x90] sm:$0xf0]  ;;  %v9752_v6 = vld [vmem:[#allocation11 + $0x64] sm:$0xf] }
 0x2b7   :  { %5880 = vmatpush.bf16.msra.mxu2 %v9038_v7  ;;  %v8677_v7 = vld [vmem:[#allocation12 + $0x3a8] sm:$0xf]  ;;  %v8786_v59 = vor.u32 %v9756_v45, %v8783_v46  ;;  %v9816_v25 = vld [vmem:[#allocation11 + $0x264] sm:$0xf]  ;;  %v9023_v60 = vld [vmem:[#allocation11 + $0x270] sm:$0xf0] }
 0x2b8   :  { %v8678_v26 = vor.u32 %v9987_v61, %v8677_v7  ;;  %v9971_v7 = vld [vmem:[#allocation12 + $0x334] sm:$0xf0]  ;;  %v9026_v61 = vor.u32 %v9816_v25, %v9023_v60  ;;  %v9808_v35 = vld [vmem:[#allocation11 + $0x224] sm:$0xf]  ;;  %v8695_v45 = vld [vmem:[#allocation12 + $0x3d8] sm:$0xf0] }
 0x2b9   :  { %5855 = vmatpush.bf16.msra.mxu0 %v8766_v15  ;;  %v8962_v15 = vor.u32 %v9800_v53, %v8959_v38  ;;  %v9784_v53 = vld [vmem:[#allocation11 + $0x164] sm:$0xf]  ;;  %v8895_v38 = vld [vmem:[#allocation11 + $0x170] sm:$0xf0]  ;;  %v9803_v25 = vld [vmem:[#allocation11 + $0x1f4] sm:$0xf0] }
 0x2ba   :  { %5868 = vmatpush.bf16.msra.mxu1 %v8894_v17  ;;  %v9071_v17 = vld [vmem:[#allocation11 + $0x2d0] sm:$0xf0]  ;;  %5147 = vmatpush.bf16.msra.mxu3 %v8694_v21  ;;  %v9740_v46 = vld [vmem:[#allocation11 + $0x4] sm:$0xf] }
 0x2bb   :  { %5881 = vmatpush.bf16.msra.mxu2 %v9022_v16  ;;  %v9828_v16 = vld [vmem:[#allocation11 + $0x2c4] sm:$0xf] }
 0x2bc   :  { %v9804_v51 = vld [vmem:[#allocation11 + $0x204] sm:$0xf] }
 0x2bd   :  { %5856 = vmatpush.bf16.msra.mxu0 %v8750_v37  ;;  %v9074_v37 = vor.u32 %v9828_v16, %v9071_v17  ;;  %v8879_v16 = vld [vmem:[#allocation11 + $0x150] sm:$0xf0] }
 0x2be   :  { %5869 = vmatpush.bf16.msra.mxu1 %v8878_v36  ;;  %5148 = vmatpush.bf16.msra.mxu3 %v8678_v26  ;;  %v9792_v36 = vld [vmem:[#allocation11 + $0x1a4] sm:$0xf]  ;;  %v8597_v26 = vld [vmem:[#allocation12 + $0x308] sm:$0xf] }
 0x2bf   :  { %5882 = vmatpush.bf16.msra.mxu2 %v9006_v30  ;;  %v8662_v30 = vor.u32 %v9983_v23, %v8661_v22  ;;  %v9010_v23 = vor.u32 %v9812_v12, %v9007_v58  ;;  %v8949_v12 = vld [vmem:[#allocation11 + $0x1c8] sm:$0xf]  ;;  %v9799_v58 = vld [vmem:[#allocation11 + $0x1d4] sm:$0xf0] }
 0x2c1   :  { %5857 = vmatpush.bf16.msra.mxu0 %v8734_v47  ;;  %v8930_v47 = vor.u32 %v9792_v36, %v8927_v48  ;;  %v8598_v36 = vor.u32 %v9967_v42, %v8597_v26  ;;  %v9776_v48 = vld [vmem:[#allocation11 + $0x124] sm:$0xf]  ;;  %v9763_v26 = vld [vmem:[#allocation11 + $0xb4] sm:$0xf0]  ;;  %v8950_v42 = vor.u32 %v9799_v58, %v8949_v12  ;;  %v8599_v12 = vld [vmem:[#allocation12 + $0x318] sm:$0xf0] }
 0x2c2   :  { %5870 = vmatpush.bf16.msra.mxu1 %v8862_v39  ;;  %5149 = vmatpush.bf16.msra.mxu3 %v8662_v30  ;;  %v8911_v39 = vld [vmem:[#allocation11 + $0x190] sm:$0xf0]  ;;  %v9213_v58 = vld [vmem:[#allocation11 + $0x3e0] sm:$0xf] }
 0x2c3   :  { %5883 = vmatpush.bf16.msra.mxu2 %v8990_v52  ;;  %v9788_v52 = vld [vmem:[#allocation11 + $0x184] sm:$0xf]  ;;  %v8991_v30 = vld [vmem:[#allocation11 + $0x230] sm:$0xf0] }
 0x2c4   :  { %v8914_v20 = vor.u32 %v9788_v52, %v8911_v39  ;;  %v8837_v39 = vld [vmem:[#allocation11 + $0xe8] sm:$0xf] }
 0x2c5   :  { %5858 = vmatpush.bf16.msra.mxu0 %v8718_v4  ;;  %v5012_v0 = vpop.f32.mrf.mxu0  ;;  %5102 = vmatmul.bf16.vlgmr.msrb.gmra.mxu3 %v10532_v54  ;;  %v8630_v4 = vor.u32 %v9975_v34, %v8629_v63  ;;  %v9093_v63 = vld [vmem:[#allocation11 + $0x2e8] sm:$0xf]  ;;  %v9835_v34 = vld [vmem:[#allocation11 + $0x2f4] sm:$0xf0] }
 0x2c6   :  { %5871 = vmatpush.bf16.msra.mxu1 %v8846_v11  ;;  %v5025_v3 = vpop.f32.mrf.mxu1  ;;  %5150 = vmatpush.bf16.msra.mxu3 %v8646_v56  ;;  %v8898_v11 = vor.u32 %v9784_v53, %v8895_v38  ;;  %v8975_v56 = vld [vmem:[#allocation11 + $0x210] sm:$0xf0]  ;;  %v8679_v53 = vld [vmem:[#allocation12 + $0x3b8] sm:$0xf0]  ;;  %v9094_v38 = vor.u32 %v9835_v34, %v9093_v63  ;;  %v9029_v34 = vld [vmem:[#allocation11 + $0x268] sm:$0xf] }
 0x2c7   :  { %5884 = vmatpush.bf16.msra.mxu2 %v8974_v29  ;;  %v5026_v21 = vadd.f32 %v5025_v3, %v5012_v0  ;;  %v8770_v29 = vor.u32 %v9752_v6, %v8767_v2  ;;  %v9772_v0 = vld [vmem:[#allocation11 + $0x104] sm:$0xf]  ;;  %v8722_v3 = vor.u32 %v9740_v46, %v8719_v50  ;;  %v8978_v60 = vor.u32 %v9804_v51, %v8975_v56  ;;  %v8631_v50 = vld [vmem:[#allocation12 + $0x358] sm:$0xf0]  ;;  %v8773_v56 = vld [vmem:[#allocation11 + $0x68] sm:$0xf] }
 0x2c8   :  { %5859 = vmatmul.bf16.vlgmr.msra.gmra.mxu0 %v10535_v9 }
 0x2c9   :  { %5903 = vmatpush.bf16.msrb.mxu0 %v8834_v5  ;;  %5872 = vmatmul.bf16.vlgmr.msra.gmra.mxu1 %v10539_v18  ;;  %v8613_v5 = vld [vmem:[#allocation12 + $0x328] sm:$0xf] }
 0x2ca   :  { %5916 = vmatpush.bf16.msrb.mxu1 %v8962_v15  ;;  %5885 = vmatmul.bf16.vlgmr.msra.gmra.mxu2 %v10537_v19  ;;  %v8614_v13 = vor.u32 %v9971_v7, %v8613_v5  ;;  %v9780_v15 = vld [vmem:[#allocation11 + $0x144] sm:$0xf]  ;;  %v8821_v5 = vld [vmem:[#allocation11 + $0xc8] sm:$0xf]  ;;  %v9767_v7 = vld [vmem:[#allocation11 + $0xd4] sm:$0xf0] }
 0x2cb   :  { %5929 = vmatpush.bf16.msrb.mxu2 %v9090_v8  ;;  %v8751_v8 = vld [vmem:[#allocation11 + $0x50] sm:$0xf0]  ;;  %5151 = vmatpush.bf16.msra.mxu3 %v8630_v4  ;;  %v8882_v33 = vor.u32 %v9780_v15, %v8879_v16  ;;  %v9985_v4 = vld [vmem:[#allocation12 + $0x3ac] sm:$0xf]  ;;  %v8663_v16 = vld [vmem:[#allocation12 + $0x398] sm:$0xf0] }
 0x2cc   :  { %v8754_v57 = vor.u32 %v9748_v10, %v8751_v8  ;;  %v9077_v10 = vld [vmem:[#allocation11 + $0x2c8] sm:$0xf]  ;;  %v9831_v8 = vld [vmem:[#allocation11 + $0x2d4] sm:$0xf0]  ;;  %v9981_v15 = vld [vmem:[#allocation12 + $0x38c] sm:$0xf] }
 0x2cd   :  { %5904 = vmatpush.bf16.msrb.mxu0 %v8818_v24  ;;  %v5038_v17 = vpop.f32.mrf.mxu2  ;;  %v5014_v22 = vpop.f32.mrf.mxu0 }
 0x2ce   :  { %5917 = vmatpush.bf16.msrb.mxu1 %v8946_v32  ;;  %v10545_v24 = vadd.f32 %v5038_v17, %v5026_v21  ;;  %v5027_v32 = vpop.f32.mrf.mxu1  ;;  %v9078_v17 = vor.u32 %v9831_v8, %v9077_v10  ;;  %v9827_v22 = vld [vmem:[#allocation11 + $0x2b4] sm:$0xf0] }
 0x2cf   :  { %5930 = vmatpush.bf16.msrb.mxu2 %v9074_v37  ;;  %v8711_v37 = vld [vmem:[#allocation12 + $0x3f8] sm:$0xf0]  ;;  %5152 = vmatpush.bf16.msra.mxu3 %v8614_v13  ;;  %v8822_v13 = vor.u32 %v9767_v7, %v8821_v5  ;;  %v9977_v32 = vld [vmem:[#allocation12 + $0x36c] sm:$0xf]  ;;  %v9815_v5 = vld [vmem:[#allocation11 + $0x254] sm:$0xf0] }
 0x2d0   :  { %v8714_v55 = vor.u32 %v9993_v28, %v8711_v37  ;;  %v9061_v28 = vld [vmem:[#allocation11 + $0x2a8] sm:$0xf]  ;;  %v9783_v10 = vld [vmem:[#allocation11 + $0x154] sm:$0xf0] }
 0x2d1   :  { %5905 = vmatpush.bf16.msrb.mxu0 %v8802_v41  ;;  %v8863_v41 = vld [vmem:[#allocation11 + $0x130] sm:$0xf0]  ;;  %v8933_v37 = vld [vmem:[#allocation11 + $0x1a8] sm:$0xf] }
 0x2d2   :  { %5918 = vmatpush.bf16.msrb.mxu1 %v8930_v47  ;;  %v8994_v47 = vor.u32 %v9808_v35, %v8991_v30  ;;  %v8866_v52 = vor.u32 %v9776_v48, %v8863_v41  ;;  %v9062_v35 = vor.u32 %v9827_v22, %v9061_v28  ;;  %v8789_v30 = vld [vmem:[#allocation11 + $0x88] sm:$0xf]  ;;  %v8934_v48 = vor.u32 %v9795_v27, %v8933_v37  ;;  %v9811_v37 = vld [vmem:[#allocation11 + $0x234] sm:$0xf0] }
 0x2d3   :  { %5931 = vmatpush.bf16.msrb.mxu2 %v9058_v44  ;;  %v9989_v44 = vld [vmem:[#allocation12 + $0x3cc] sm:$0xf]  ;;  %5153 = vmatpush.bf16.msra.mxu3 %v8598_v36  ;;  %v9759_v36 = vld [vmem:[#allocation11 + $0x94] sm:$0xf0]  ;;  %v9045_v41 = vld [vmem:[#allocation11 + $0x288] sm:$0xf] }
 0x2d4   :  { %v8698_v2 = vor.u32 %v9989_v44, %v8695_v45  ;;  %v8917_v44 = vld [vmem:[#allocation11 + $0x188] sm:$0xf]  ;;  %v9791_v45 = vld [vmem:[#allocation11 + $0x194] sm:$0xf0]  ;;  %v8790_v46 = vor.u32 %v9759_v36, %v8789_v30  ;;  %v9197_v30 = vld [vmem:[#allocation11 + $0x3c0] sm:$0xf] }
 0x2d5   :  { %5906 = vmatpush.bf16.msrb.mxu0 %v8786_v59  ;;  %v9771_v59 = vld [vmem:[#allocation11 + $0xf4] sm:$0xf0]  ;;  %v5040_v6 = vpop.f32.mrf.mxu2  ;;  %v8918_v63 = vor.u32 %v9791_v45, %v8917_v44  ;;  %v9862_v36 = vld [vmem:[#allocation11 + $0x3cc] sm:$0xf0] }
 0x2d6   :  { %5919 = vmatpush.bf16.msrb.mxu1 %v8914_v20  ;;  %v8965_v20 = vld [vmem:[#allocation11 + $0x1e8] sm:$0xf]  ;;  %v8838_v21 = vor.u32 %v9771_v59, %v8837_v39  ;;  %5154 = vmatmul.bf16.vlgmr.msra.gmra.mxu3 %v10532_v54  ;;  %v9807_v44 = vld [vmem:[#allocation11 + $0x214] sm:$0xf0] }
 0x2d7   :  { %5932 = vmatpush.bf16.msrb.mxu2 %v9042_v1  ;;  %v8847_v1 = vld [vmem:[#allocation11 + $0x110] sm:$0xf0]  ;;  %5198 = vmatpush.bf16.msrb.mxu3 %v8714_v55  ;;  %v9823_v55 = vld [vmem:[#allocation11 + $0x294] sm:$0xf0] }
 0x2d8   :  { %v9046_v51 = vor.u32 %v9823_v55, %v9045_v41  ;;  %v9743_v55 = vld [vmem:[#allocation11 + $0x14] sm:$0xf0] }
 0x2d9   :  { %5907 = vmatpush.bf16.msrb.mxu0 %v8770_v29  ;;  %v8850_v29 = vor.u32 %v9772_v0, %v8847_v1  ;;  %v9819_v0 = vld [vmem:[#allocation11 + $0x274] sm:$0xf0] }
 0x2da   :  { %5920 = vmatpush.bf16.msrb.mxu1 %v8898_v11  ;;  %v8682_v11 = vor.u32 %v9985_v4, %v8679_v53  ;;  %v8757_v4 = vld [vmem:[#allocation11 + $0x48] sm:$0xf]  ;;  %v9751_v53 = vld [vmem:[#allocation11 + $0x54] sm:$0xf0] }
 0x2db   :  { %5933 = vmatpush.bf16.msrb.mxu2 %v9026_v61  ;;  %v8966_v61 = vor.u32 %v9803_v25, %v8965_v20  ;;  %5199 = vmatpush.bf16.msrb.mxu3 %v8698_v2  ;;  %v8901_v2 = vld [vmem:[#allocation11 + $0x168] sm:$0xf]  ;;  %v9969_v25 = vld [vmem:[#allocation12 + $0x32c] sm:$0xf]  ;;  %v8758_v8 = vor.u32 %v9751_v53, %v8757_v4 }
 0x2dc   :  { %v9829_v53 = vld [vmem:[#allocation11 + $0x2cc] sm:$0xf] }
 0x2dd   :  { %5908 = vmatpush.bf16.msrb.mxu0 %v8754_v57  ;;  %v8805_v57 = vld [vmem:[#allocation11 + $0xa8] sm:$0xf] }
 0x2de   :  { %5921 = vmatpush.bf16.msrb.mxu1 %v8882_v33  ;;  %v8806_v40 = vor.u32 %v9763_v26, %v8805_v57  ;;  %v8647_v33 = vld [vmem:[#allocation12 + $0x378] sm:$0xf0]  ;;  %v9747_v57 = vld [vmem:[#allocation11 + $0x34] sm:$0xf0] }
 0x2df   :  { %5934 = vmatpush.bf16.msrb.mxu2 %v9010_v23  ;;  %5200 = vmatpush.bf16.msrb.mxu3 %v8682_v11  ;;  %v8666_v23 = vor.u32 %v9981_v15, %v8663_v16  ;;  %v9965_v11 = vld [vmem:[#allocation12 + $0x30c] sm:$0xf]  ;;  %v9866_v16 = vld [vmem:[#allocation11 + $0x3ec] sm:$0xf0] }
 0x2e0   :  { %v8602_v27 = vor.u32 %v9965_v11, %v8599_v12  ;;  %v9761_v11 = vld [vmem:[#allocation11 + $0xac] sm:$0xf]  ;;  %v8807_v12 = vld [vmem:[#allocation11 + $0xb8] sm:$0xf0] }
 0x2e1   :  { %5909 = vmatpush.bf16.msrb.mxu0 %v8738_v43  ;;  %v8650_v43 = vor.u32 %v9977_v32, %v8647_v33  ;;  %v9779_v32 = vld [vmem:[#allocation11 + $0x134] sm:$0xf0]  ;;  %v9214_v33 = vor.u32 %v9866_v16, %v9213_v58 }
 0x2e2   :  { %5922 = vmatpush.bf16.msrb.mxu1 %v8866_v52  ;;  %v9755_v52 = vld [vmem:[#allocation11 + $0x74] sm:$0xf0] }
 0x2e3   :  { %5935 = vmatpush.bf16.msrb.mxu2 %v8994_v47  ;;  %5201 = vmatpush.bf16.msrb.mxu3 %v8666_v23  ;;  %v9973_v47 = vld [vmem:[#allocation12 + $0x34c] sm:$0xf]  ;;  %v8774_v20 = vor.u32 %v9755_v52, %v8773_v56  ;;  %v8997_v23 = vld [vmem:[#allocation11 + $0x228] sm:$0xf]  ;;  %v9775_v52 = vld [vmem:[#allocation11 + $0x114] sm:$0xf0] }
 0x2e4   :  { %v8634_v6 = vor.u32 %v9973_v47, %v8631_v50  ;;  %v8998_v41 = vor.u32 %v9811_v37, %v8997_v23  ;;  %v8839_v47 = vld [vmem:[#allocation11 + $0xf8] sm:$0xf0]  ;;  %v9833_v50 = vld [vmem:[#allocation11 + $0x2ec] sm:$0xf]  ;;  %v8853_v56 = vld [vmem:[#allocation11 + $0x108] sm:$0xf] }
 0x2e5   :  { %5910 = vmatpush.bf16.msrb.mxu0 %v8722_v3  ;;  %v5064_v39 = vpop.f32.mrf.mxu0  ;;  %v9787_v3 = vld [vmem:[#allocation11 + $0x174] sm:$0xf0]  ;;  %v9757_v37 = vld [vmem:[#allocation11 + $0x8c] sm:$0xf] }
 0x2e6   :  { %5923 = vmatpush.bf16.msrb.mxu1 %v8850_v29  ;;  %v5077_v59 = vpop.f32.mrf.mxu1  ;;  %v9013_v29 = vld [vmem:[#allocation11 + $0x248] sm:$0xf] }
 0x2e7   :  { %5936 = vmatpush.bf16.msrb.mxu2 %v8978_v60  ;;  %v5078_v1 = vadd.f32 %v5077_v59, %v5064_v39  ;;  %5202 = vmatpush.bf16.msrb.mxu3 %v8650_v43  ;;  %v8615_v60 = vld [vmem:[#allocation12 + $0x338] sm:$0xf0]  ;;  %v9014_v15 = vor.u32 %v9815_v5, %v9013_v29  ;;  %v8981_v43 = vld [vmem:[#allocation11 + $0x208] sm:$0xf]  ;;  %v9198_v39 = vor.u32 %v9862_v36, %v9197_v30  ;;  %v9797_v5 = vld [vmem:[#allocation11 + $0x1cc] sm:$0xf] }
 0x2e8   :  { %5911 = vmatmul.bf16.vlgmr.msrb.gmra.mxu0 %v10535_v9  ;;  %v8618_v7 = vor.u32 %v9969_v25, %v8615_v60  ;;  %v8854_v25 = vor.u32 %v9775_v52, %v8853_v56  ;;  %v9765_v60 = vld [vmem:[#allocation11 + $0xcc] sm:$0xf]  ;;  %v8919_v36 = vld [vmem:[#allocation11 + $0x198] sm:$0xf0] }
 0x2e9   :  { %5955 = vmatpush.bf16.msra.mxu0 %v8838_v21  ;;  %5924 = vmatmul.bf16.vlgmr.msrb.gmra.mxu1 %v10539_v18  ;;  %v9030_v21 = vor.u32 %v9819_v0, %v9029_v34  ;;  %v8967_v34 = vld [vmem:[#allocation11 + $0x1f8] sm:$0xf0]  ;;  %v9789_v30 = vld [vmem:[#allocation11 + $0x18c] sm:$0xf] }
 0x2ea   :  { %5968 = vmatpush.bf16.msra.mxu1 %v8966_v61  ;;  %5937 = vmatmul.bf16.vlgmr.msrb.gmra.mxu2 %v10537_v19  ;;  %v8885_v61 = vld [vmem:[#allocation11 + $0x148] sm:$0xf] }
 0x2eb   :  { %5981 = vmatpush.bf16.msra.mxu2 %v9094_v38  ;;  %v8902_v38 = vor.u32 %v9787_v3, %v8901_v2  ;;  %5203 = vmatpush.bf16.msrb.mxu3 %v8634_v6  ;;  %v8886_v22 = vor.u32 %v9783_v10, %v8885_v61  ;;  %v9181_v2 = vld [vmem:[#allocation11 + $0x3a0] sm:$0xf]  ;;  %v9858_v3 = vld [vmem:[#allocation11 + $0x3ac] sm:$0xf0] }
 0x2ec   :  { %v9182_v29 = vor.u32 %v9858_v3, %v9181_v2  ;;  %v9165_v10 = vld [vmem:[#allocation11 + $0x380] sm:$0xf]  ;;  %v9749_v2 = vld [vmem:[#allocation11 + $0x4c] sm:$0xf]  ;;  %v8759_v3 = vld [vmem:[#allocation11 + $0x58] sm:$0xf0] }
 0x2ed   :  { %5956 = vmatpush.bf16.msra.mxu0 %v8822_v13  ;;  %v5090_v13 = vpop.f32.mrf.mxu2 }
 0x2ee   :  { %5969 = vmatpush.bf16.msra.mxu1 %v8950_v42  ;;  %v10551_v26 = vadd.f32 %v5090_v13, %v5078_v1  ;;  %v5066_v42 = vpop.f32.mrf.mxu0  ;;  %v5079_v28 = vpop.f32.mrf.mxu1  ;;  %v8982_v1 = vor.u32 %v9807_v44, %v8981_v43  ;;  %v9825_v13 = vld [vmem:[#allocation11 + $0x2ac] sm:$0xf] }
 0x2ef   :  { %5982 = vmatpush.bf16.msra.mxu2 %v9078_v17  ;;  %v8741_v17 = vld [vmem:[#allocation11 + $0x28] sm:$0xf]  ;;  %5204 = vmatpush.bf16.msrb.mxu3 %v8618_v7  ;;  %v8951_v7 = vld [vmem:[#allocation11 + $0x1d8] sm:$0xf0]  ;;  %v8810_v42 = vor.u32 %v9761_v11, %v8807_v12  ;;  %v9149_v28 = vld [vmem:[#allocation11 + $0x360] sm:$0xf] }
 0x2f0   :  { %v8954_v58 = vor.u32 %v9797_v5, %v8951_v7  ;;  %v9753_v44 = vld [vmem:[#allocation11 + $0x6c] sm:$0xf]  ;;  %v9838_v5 = vld [vmem:[#allocation11 + $0x30c] sm:$0xf0]  ;;  %v9864_v7 = vld [vmem:[#allocation11 + $0x3e4] sm:$0xf] }
 0x2f1   :  { %5957 = vmatpush.bf16.msra.mxu0 %v8806_v40  ;;  %v8869_v40 = vld [vmem:[#allocation11 + $0x128] sm:$0xf]  ;;  %v8743_v11 = vld [vmem:[#allocation11 + $0x38] sm:$0xf0] }
 0x2f2   :  { %5970 = vmatpush.bf16.msra.mxu1 %v8934_v48  ;;  %v8725_v48 = vld [vmem:[#allocation11 + $0x8] sm:$0xf]  ;;  %v8870_v45 = vor.u32 %v9779_v32, %v8869_v40  ;;  %v9821_v32 = vld [vmem:[#allocation11 + $0x28c] sm:$0xf] }
 0x2f3   :  { %5983 = vmatpush.bf16.msra.mxu2 %v9062_v35  ;;  %v8742_v35 = vor.u32 %v9747_v57, %v8741_v17  ;;  %5205 = vmatpush.bf16.msrb.mxu3 %v8602_v27  ;;  %v8726_v59 = vor.u32 %v9743_v55, %v8725_v48  ;;  %v9793_v17 = vld [vmem:[#allocation11 + $0x1ac] sm:$0xf]  ;;  %v8935_v57 = vld [vmem:[#allocation11 + $0x1b8] sm:$0xf0]  ;;  %v9846_v55 = vld [vmem:[#allocation11 + $0x34c] sm:$0xf0] }
 0x2f4   :  { %v8791_v27 = vld [vmem:[#allocation11 + $0x98] sm:$0xf0]  ;;  %v8938_v40 = vor.u32 %v9793_v17, %v8935_v57 }
 0x2f5   :  { %5958 = vmatpush.bf16.msra.mxu0 %v8790_v46  ;;  %v9769_v46 = vld [vmem:[#allocation11 + $0xec] sm:$0xf]  ;;  %v5092_v0 = vpop.f32.mrf.mxu2  ;;  %v8794_v48 = vor.u32 %v9757_v37, %v8791_v27  ;;  %v9860_v27 = vld [vmem:[#allocation11 + $0x3c4] sm:$0xf] }
 0x2f6   :  { %5971 = vmatpush.bf16.msra.mxu1 %v8918_v63  ;;  %v9801_v63 = vld [vmem:[#allocation11 + $0x1ec] sm:$0xf]  ;;  %v8842_v6 = vor.u32 %v9769_v46, %v8839_v47  ;;  %5206 = vmatmul.bf16.vlgmr.msrb.gmra.mxu3 %v10532_v54  ;;  %v8922_v47 = vor.u32 %v9789_v30, %v8919_v36  ;;  %v9117_v0 = vld [vmem:[#allocation11 + $0x320] sm:$0xf] }
 0x2f7   :  { %5984 = vmatpush.bf16.msra.mxu2 %v9046_v51  ;;  %v9095_v51 = vld [vmem:[#allocation11 + $0x2f8] sm:$0xf0]  ;;  %5890 = vmatpush.bf16.msra.mxu3 %v9214_v33  ;;  %v8970_v4 = vor.u32 %v9801_v63, %v8967_v34 }
 0x2f8   :  { %v9047_v33 = vld [vmem:[#allocation11 + $0x298] sm:$0xf0] }
 0x2f9   :  { %5959 = vmatpush.bf16.msra.mxu0 %v8774_v20  ;;  %v9098_v20 = vor.u32 %v9833_v50, %v9095_v51  ;;  %v9050_v43 = vor.u32 %v9821_v32, %v9047_v33  ;;  %v9817_v50 = vld [vmem:[#allocation11 + $0x26c] sm:$0xf]  ;;  %v9031_v51 = vld [vmem:[#allocation11 + $0x278] sm:$0xf0]  ;;  %v9199_v32 = vld [vmem:[#allocation11 + $0x3d0] sm:$0xf0] }
 0x2fa   :  { %5972 = vmatpush.bf16.msra.mxu1 %v8902_v38  ;;  %v9079_v38 = vld [vmem:[#allocation11 + $0x2d8] sm:$0xf0]  ;;  %v9741_v33 = vld [vmem:[#allocation11 + $0xc] sm:$0xf] }
 0x2fb   :  { %5985 = vmatpush.bf16.msra.mxu2 %v9030_v21  ;;  %v8823_v21 = vld [vmem:[#allocation11 + $0xd8] sm:$0xf0]  ;;  %5891 = vmatpush.bf16.msra.mxu3 %v9198_v39  ;;  %v9082_v54 = vor.u32 %v9829_v53, %v9079_v38  ;;  %v9785_v39 = vld [vmem:[#allocation11 + $0x16c] sm:$0xf]  ;;  %v8762_v38 = vor.u32 %v9749_v2, %v8759_v3  ;;  %v9135_v2 = vld [vmem:[#allocation11 + $0x350] sm:$0xf0] }
 0x2fc   :  { %v8826_v61 = vor.u32 %v9765_v60, %v8823_v21  ;;  %v9015_v60 = vld [vmem:[#allocation11 + $0x258] sm:$0xf0] }
 0x2fd   :  { %5960 = vmatpush.bf16.msra.mxu0 %v8758_v8  ;;  %v9854_v8 = vld [vmem:[#allocation11 + $0x38c] sm:$0xf0]  ;;  %v8887_v53 = vld [vmem:[#allocation11 + $0x158] sm:$0xf0] }
 0x2fe   :  { %5973 = vmatpush.bf16.msra.mxu1 %v8886_v22  ;;  %v9166_v16 = vor.u32 %v9854_v8, %v9165_v10  ;;  %v9850_v22 = vld [vmem:[#allocation11 + $0x36c] sm:$0xf0]  ;;  %v9215_v8 = vld [vmem:[#allocation11 + $0x3f0] sm:$0xf0] }
 0x2ff   :  { %5986 = vmatpush.bf16.msra.mxu2 %v9014_v15  ;;  %v9063_v15 = vld [vmem:[#allocation11 + $0x2b8] sm:$0xf0]  ;;  %5892 = vmatpush.bf16.msra.mxu3 %v9182_v29  ;;  %v9101_v29 = vld [vmem:[#allocation11 + $0x300] sm:$0xf] }
 0x300   :  { %v9066_v23 = vor.u32 %v9825_v13, %v9063_v15  ;;  %v9809_v15 = vld [vmem:[#allocation11 + $0x22c] sm:$0xf]  ;;  %v9102_v57 = vor.u32 %v9838_v5, %v9101_v29  ;;  %v9867_v29 = vld [vmem:[#allocation11 + $0x3f4] sm:$0xf0] }
 0x301   :  { %5961 = vmatpush.bf16.msra.mxu0 %v8742_v35  ;;  %v9150_v35 = vor.u32 %v9850_v22, %v9149_v28  ;;  %v8871_v28 = vld [vmem:[#allocation11 + $0x138] sm:$0xf0]  ;;  %v10559_v22 = vld [vmem:[#allocation3 + $0x18] sm:$0xff] }
 0x302   :  { %5974 = vmatpush.bf16.msra.mxu1 %v8870_v45  ;;  %v8775_v45 = vld [vmem:[#allocation11 + $0x78] sm:$0xf0]  ;;  %v10563_v30 = vpack.c.bf16 %v10559_v22, %v10559_v22 }
 0x303   :  { %5987 = vmatpush.bf16.msra.mxu2 %v8998_v41  ;;  %5893 = vmatpush.bf16.msra.mxu3 %v9166_v16  ;;  %v9133_v41 = vld [vmem:[#allocation11 + $0x340] sm:$0xf]  ;;  %v8778_v34 = vor.u32 %v9753_v44, %v8775_v45  ;;  %v8999_v16 = vld [vmem:[#allocation11 + $0x238] sm:$0xf0]  ;;  %v9202_v44 = vor.u32 %v9860_v27, %v9199_v32  ;;  %v9847_v32 = vld [vmem:[#allocation11 + $0x354] sm:$0xf0] }
 0x304   :  { %v9134_v52 = vor.u32 %v9846_v55, %v9133_v41  ;;  %v8983_v41 = vld [vmem:[#allocation11 + $0x218] sm:$0xf0]  ;;  %v9773_v55 = vld [vmem:[#allocation11 + $0x10c] sm:$0xf] }
 0x305   :  { %5962 = vmatpush.bf16.msra.mxu0 %v8726_v59  ;;  %v5116_v46 = vpop.f32.mrf.mxu0  ;;  %v8903_v59 = vld [vmem:[#allocation11 + $0x178] sm:$0xf0] }
 0x306   :  { %5975 = vmatpush.bf16.msra.mxu1 %v8854_v25  ;;  %v5129_v56 = vpop.f32.mrf.mxu1  ;;  %v9813_v25 = vld [vmem:[#allocation11 + $0x24c] sm:$0xf] }
 0x307   :  { %5988 = vmatpush.bf16.msra.mxu2 %v8982_v1  ;;  %5894 = vmatpush.bf16.msra.mxu3 %v9150_v35  ;;  %v5130_v63 = vadd.f32 %v5129_v56, %v5116_v46  ;;  %v9842_v1 = vld [vmem:[#allocation11 + $0x32c] sm:$0xf0]  ;;  %v9018_v10 = vor.u32 %v9813_v25, %v9015_v60  ;;  %v8727_v35 = vld [vmem:[#allocation11 + $0x18] sm:$0xf0] }
 0x308   :  { %5963 = vmatmul.bf16.vlgmr.msra.gmra.mxu0 %v10535_v9  ;;  %v9118_v21 = vor.u32 %v9842_v1, %v9117_v0  ;;  %v8730_v45 = vor.u32 %v9741_v33, %v8727_v35  ;;  %v9151_v0 = vld [vmem:[#allocation11 + $0x370] sm:$0xf0] }
 0x309   :  { %6007 = vmatpush.bf16.msrb.mxu0 %v8842_v6  ;;  %5976 = vmatmul.bf16.vlgmr.msra.gmra.mxu1 %v10539_v18  ;;  %v9034_v6 = vor.u32 %v9817_v50, %v9031_v51  ;;  %v9856_v50 = vld [vmem:[#allocation11 + $0x3a4] sm:$0xf]  ;;  %v9183_v51 = vld [vmem:[#allocation11 + $0x3b0] sm:$0xf0] }
 0x30a   :  { %6020 = vmatpush.bf16.msrb.mxu1 %v8970_v4  ;;  %5989 = vmatmul.bf16.vlgmr.msra.gmra.mxu2 %v10537_v19  ;;  %v9781_v4 = vld [vmem:[#allocation11 + $0x14c] sm:$0xf] }
 0x30b   :  { %6033 = vmatpush.bf16.msrb.mxu2 %v9098_v20  ;;  %v8906_v20 = vor.u32 %v9785_v39, %v8903_v59  ;;  %5895 = vmatpush.bf16.msra.mxu3 %v9134_v52  ;;  %v8890_v13 = vor.u32 %v9781_v4, %v8887_v53  ;;  %v9186_v52 = vor.u32 %v9856_v50, %v9183_v51  ;;  %v9852_v39 = vld [vmem:[#allocation11 + $0x384] sm:$0xf]  ;;  %v9167_v59 = vld [vmem:[#allocation11 + $0x390] sm:$0xf0]  ;;  %v9839_v50 = vld [vmem:[#allocation11 + $0x314] sm:$0xf0] }
 0x30c   :  { %v9119_v4 = vld [vmem:[#allocation11 + $0x330] sm:$0xf0] }
 0x30d   :  { %6008 = vmatpush.bf16.msrb.mxu0 %v8826_v61  ;;  %v5142_v61 = vpop.f32.mrf.mxu2  ;;  %v9103_v53 = vld [vmem:[#allocation11 + $0x310] sm:$0xf0] }
 0x30e   :  { %6021 = vmatpush.bf16.msrb.mxu1 %v8954_v58  ;;  %v10557_v12 = vadd.f32 %v5142_v61, %v5130_v63  ;;  %v5118_v58 = vpop.f32.mrf.mxu0  ;;  %v5131_v17 = vpop.f32.mrf.mxu1  ;;  %v9170_v63 = vor.u32 %v9852_v39, %v9167_v59 }
 0x30f   :  { %6034 = vmatpush.bf16.msrb.mxu2 %v9082_v54  ;;  %v9745_v54 = vld [vmem:[#allocation11 + $0x2c] sm:$0xf]  ;;  %5896 = vmatpush.bf16.msra.mxu3 %v9118_v21  ;;  %v9840_v21 = vld [vmem:[#allocation11 + $0x324] sm:$0xf] }
 0x310   :  { %v8746_v37 = vor.u32 %v9745_v54, %v8743_v11  ;;  %v9205_v54 = vld [vmem:[#allocation11 + $0x3c8] sm:$0xf]  ;;  %v9863_v11 = vld [vmem:[#allocation11 + $0x3d4] sm:$0xf0] }
 0x311   :  { %6009 = vmatpush.bf16.msrb.mxu0 %v8810_v42  ;;  %v9777_v42 = vld [vmem:[#allocation11 + $0x12c] sm:$0xf]  ;;  %v9206_v58 = vor.u32 %v9863_v11, %v9205_v54 }
 0x312   :  { %6022 = vmatpush.bf16.msrb.mxu1 %v8938_v40  ;;  %v9002_v40 = vor.u32 %v9809_v15, %v8999_v16  ;;  %v8874_v36 = vor.u32 %v9777_v42, %v8871_v28  ;;  %v9859_v15 = vld [vmem:[#allocation11 + $0x3b4] sm:$0xf0] }
 0x313   :  { %6035 = vmatpush.bf16.msrb.mxu2 %v9066_v23  ;;  %v9218_v23 = vor.u32 %v9864_v7, %v9215_v8  ;;  %5897 = vmatpush.bf16.msra.mxu3 %v9102_v57  ;;  %v9173_v57 = vld [vmem:[#allocation11 + $0x388] sm:$0xf]  ;;  %v9855_v42 = vld [vmem:[#allocation11 + $0x394] sm:$0xf0] }
 0x314   :  { %v9174_v28 = vor.u32 %v9855_v42, %v9173_v57  ;;  %v9837_v42 = vld [vmem:[#allocation11 + $0x30c] sm:$0xf] }
 0x315   :  { %6010 = vmatpush.bf16.msrb.mxu0 %v8794_v48  ;;  %v9805_v48 = vld [vmem:[#allocation11 + $0x20c] sm:$0xf]  ;;  %v5144_v46 = vpop.f32.mrf.mxu2 }
 0x316   :  { %6023 = vmatpush.bf16.msrb.mxu1 %v8922_v47  ;;  %v8986_v47 = vor.u32 %v9805_v48, %v8983_v41  ;;  %5898 = vmatmul.bf16.vlgmr.msra.gmra.mxu3 %v10563_v30 }
 0x317   :  { %6036 = vmatpush.bf16.msrb.mxu2 %v9050_v43  ;;  %v8855_v43 = vld [vmem:[#allocation11 + $0x118] sm:$0xf0]  ;;  %5942 = vmatpush.bf16.msrb.mxu3 %v9218_v23  ;;  %v9157_v23 = vld [vmem:[#allocation11 + $0x368] sm:$0xf] }
 0x318   :  { %v8858_v56 = vor.u32 %v9773_v55, %v8855_v43  ;;  %v9125_v55 = vld [vmem:[#allocation11 + $0x328] sm:$0xf]  ;;  %v9843_v43 = vld [vmem:[#allocation11 + $0x334] sm:$0xf0] }
 0x319   :  { %6011 = vmatpush.bf16.msrb.mxu0 %v8778_v34  ;;  %v9848_v34 = vld [vmem:[#allocation11 + $0x364] sm:$0xf]  ;;  %v9126_v46 = vor.u32 %v9843_v43, %v9125_v55 }
 0x31a   :  { %6024 = vmatpush.bf16.msrb.mxu1 %v8906_v20  ;;  %v9154_v1 = vor.u32 %v9848_v34, %v9151_v0  ;;  %v9861_v0 = vld [vmem:[#allocation11 + $0x3cc] sm:$0xf] }
 0x31b   :  { %6037 = vmatpush.bf16.msrb.mxu2 %v9034_v6  ;;  %5943 = vmatpush.bf16.msrb.mxu3 %v9202_v44  ;;  %v9844_v6 = vld [vmem:[#allocation11 + $0x344] sm:$0xf] }
 0x31c   :  { %v9138_v25 = vor.u32 %v9844_v6, %v9135_v2 }
 0x31d   :  { %6012 = vmatpush.bf16.msrb.mxu0 %v8762_v38  ;;  %v9221_v38 = vld [vmem:[#allocation11 + $0x3e8] sm:$0xf] }
 0x31e   :  { %6025 = vmatpush.bf16.msrb.mxu1 %v8890_v13  ;;  %v9222_v8 = vor.u32 %v9867_v29, %v9221_v38  ;;  %v9189_v13 = vld [vmem:[#allocation11 + $0x3a8] sm:$0xf]  ;;  %v9849_v29 = vld [vmem:[#allocation11 + $0x36c] sm:$0xf] }
 0x31f   :  { %6038 = vmatpush.bf16.msrb.mxu2 %v9018_v10  ;;  %5944 = vmatpush.bf16.msrb.mxu3 %v9186_v52  ;;  %v9190_v17 = vor.u32 %v9859_v15, %v9189_v13  ;;  %v9223_v52 = vld [vmem:[#allocation11 + $0x3f8] sm:$0xf0] }
 0x320   :  { %v9127_v13 = vld [vmem:[#allocation11 + $0x338] sm:$0xf0] }
 0x321   :  { %6013 = vmatpush.bf16.msrb.mxu0 %v8746_v37  ;;  %v9851_v37 = vld [vmem:[#allocation11 + $0x374] sm:$0xf0] }
 0x322   :  { %6026 = vmatpush.bf16.msrb.mxu1 %v8874_v36  ;;  %v9158_v27 = vor.u32 %v9851_v37, %v9157_v23 }
 0x323   :  { %6039 = vmatpush.bf16.msrb.mxu2 %v9002_v40  ;;  %5945 = vmatpush.bf16.msrb.mxu3 %v9170_v63  ;;  %v9141_v40 = vld [vmem:[#allocation11 + $0x348] sm:$0xf] }
 0x324   :  { %v9142_v48 = vor.u32 %v9847_v32, %v9141_v40 }
 0x325   :  { %6014 = vmatpush.bf16.msrb.mxu0 %v8730_v45  ;;  %v5168_v3 = vpop.f32.mrf.mxu0 }
 0x326   :  { %6027 = vmatpush.bf16.msrb.mxu1 %v8858_v56  ;;  %v5181_v20 = vpop.f32.mrf.mxu1  ;;  %v9865_v56 = vld [vmem:[#allocation11 + $0x3ec] sm:$0xf] }
 0x327   :  { %6040 = vmatpush.bf16.msrb.mxu2 %v8986_v47  ;;  %5946 = vmatpush.bf16.msrb.mxu3 %v9154_v1  ;;  %v5182_v60 = vadd.f32 %v5181_v20, %v5168_v3  ;;  %v9109_v47 = vld [vmem:[#allocation11 + $0x308] sm:$0xf]  ;;  %v9226_v34 = vor.u32 %v9865_v56, %v9223_v52  ;;  %v9207_v1 = vld [vmem:[#allocation11 + $0x3d8] sm:$0xf0]  ;;  %v9857_v20 = vld [vmem:[#allocation11 + $0x3ac] sm:$0xf] }
 0x328   :  { %6015 = vmatmul.bf16.vlgmr.msrb.gmra.mxu0 %v10535_v9  ;;  %v9122_v9 = vor.u32 %v9840_v21, %v9119_v4  ;;  %v9210_v2 = vor.u32 %v9861_v0, %v9207_v1 }
 0x329   :  { %6028 = vmatmul.bf16.vlgmr.msrb.gmra.mxu1 %v10539_v18 }
 0x32a   :  { %6041 = vmatmul.bf16.vlgmr.msrb.gmra.mxu2 %v10537_v19  ;;  %v9836_v19 = vld [vmem:[#allocation11 + $0x304] sm:$0xf] }
 0x32b   :  { %5947 = vmatpush.bf16.msrb.mxu3 %v9138_v25  ;;  %v9106_v10 = vor.u32 %v9836_v19, %v9103_v53  ;;  %v9191_v25 = vld [vmem:[#allocation11 + $0x3b8] sm:$0xf0] }
 0x32c   :  { %v9194_v4 = vor.u32 %v9857_v20, %v9191_v25  ;;  %v9175_v19 = vld [vmem:[#allocation11 + $0x398] sm:$0xf0] }
 0x32d   :  { %v5194_v18 = vpop.f32.mrf.mxu2  ;;  %v5170_v7 = vpop.f32.mrf.mxu0 }
 0x32e   :  { %v10569_v5 = vadd.f32 %v5194_v18, %v5182_v60  ;;  %v5183_v61 = vpop.f32.mrf.mxu1  ;;  %v9159_v18 = vld [vmem:[#allocation11 + $0x378] sm:$0xf0] }
 0x32f   :  { %5948 = vmatpush.bf16.msrb.mxu3 %v9122_v9  ;;  %v9853_v9 = vld [vmem:[#allocation11 + $0x38c] sm:$0xf]  ;;  %v9162_v7 = vor.u32 %v9849_v29, %v9159_v18 }
 0x330   :  { %v9178_v53 = vor.u32 %v9853_v9, %v9175_v19  ;;  %v9845_v61 = vld [vmem:[#allocation11 + $0x34c] sm:$0xf] }
 0x333   :  { %5949 = vmatpush.bf16.msrb.mxu3 %v9106_v10  ;;  %v9143_v10 = vld [vmem:[#allocation11 + $0x358] sm:$0xf0] }
 0x334   :  { %v9146_v54 = vor.u32 %v9845_v61, %v9143_v10 }
 0x335   :  { %v5196_v16 = vpop.f32.mrf.mxu2 }
 0x336   :  { %5950 = vmatmul.bf16.vlgmr.msrb.gmra.mxu3 %v10563_v30 }
 0x337   :  { %5994 = vmatpush.bf16.msra.mxu3 %v9222_v8 }
 0x338   :  { %v5051_v33 = vpop.f32.mrf.mxu3 }
 0x339   :  { %v5052_v35 = vadd.f32 %v5051_v33, %v10545_v24  ;;  %v9110_v24 = vor.u32 %v9839_v50, %v9109_v47 }
 0x33b   :  { %5995 = vmatpush.bf16.msra.mxu3 %v9206_v58  ;;  %v9841_v58 = vld [vmem:[#allocation11 + $0x32c] sm:$0xf] }
 0x33c   :  { %v9130_v57 = vor.u32 %v9841_v58, %v9127_v13 }
 0x33f   :  { %5996 = vmatpush.bf16.msra.mxu3 %v9190_v17 }
 0x340   :  { %v5053_v51 = vpop.f32.mrf.mxu3 }
 0x343   :  { %5997 = vmatpush.bf16.msra.mxu3 %v9174_v28  ;;  %v9111_v28 = vld [vmem:[#allocation11 + $0x318] sm:$0xf0] }
 0x345   :  { %v5860_v36 = vpop.f32.mrf.mxu0 }
 0x346   :  { %v5861_v41 = vadd.f32 %v5860_v36, %v5052_v35  ;;  %v5873_v44 = vpop.f32.mrf.mxu1 }
 0x347   :  { %5998 = vmatpush.bf16.msra.mxu3 %v9158_v27  ;;  %v9114_v27 = vor.u32 %v9837_v42, %v9111_v28 }
 0x348   :  { %v5874_v45 = vadd.f32 %v5873_v44, %v5861_v41  ;;  %v5103_v3 = vpop.f32.mrf.mxu3 }
 0x349   :  { %v5104_v60 = vadd.f32 %v5103_v3, %v10551_v26  ;;  %v6059_v3 = vld [vmem:[#allocation14] sm:$0xf] }
 0x34a   :  { %v6061_v20 = vperm.slane %v6059_v3, 0 }
 0x34b   :  { %5999 = vmatpush.bf16.msra.mxu3 %v9142_v48 }
 0x34d   :  { %v5886_v39 = vpop.f32.mrf.mxu2  ;;  %v5862_v63 = vpop.f32.mrf.mxu0 }
 0x34e   :  { %v10573_v59 = vadd.f32 %v5886_v39, %v5874_v45  ;;  %v5875_v6 = vpop.f32.mrf.mxu1 }
 0x34f   :  { %6000 = vmatpush.bf16.msra.mxu3 %v9126_v46 }
 0x350   :  { %v5105_v38 = vpop.f32.mrf.mxu3 }
 0x353   :  { %6001 = vmatpush.bf16.msra.mxu3 %v9110_v24 }
 0x355   :  { %v5888_v21 = vpop.f32.mrf.mxu2 }
 0x356   :  { %6002 = vmatmul.bf16.vlgmr.msra.gmra.mxu3 %v10563_v30  ;;  %v6077_v21 = vld [vmem:[#allocation15] sm:$0xf] }
 0x357   :  { %6046 = vmatpush.bf16.msrb.mxu3 %v9226_v34  ;;  %v6080_v29 = vperm.slane %v6077_v21, 1  ;;  %v6081_v58 = vperm.slane %v6077_v21, 2 }
 0x359   :  { %v5155_v11 = vpop.f32.mrf.mxu3 }
 0x35a   :  { %v5156_v15 = vadd.f32 %v5155_v11, %v10557_v12 }
 0x35b   :  { %6047 = vmatpush.bf16.msrb.mxu3 %v9210_v2 }
 0x35f   :  { %6048 = vmatpush.bf16.msrb.mxu3 %v9194_v4 }
 0x361   :  { %v5157_v32 = vpop.f32.mrf.mxu3 }
 0x363   :  { %6049 = vmatpush.bf16.msrb.mxu3 %v9178_v53  ;;  %v6079_v53 = vperm.slane %v6077_v21, 0 }
 0x365   :  { %v5912_v8 = vpop.f32.mrf.mxu0 }
 0x366   :  { %v5913_v26 = vadd.f32 %v5912_v8, %v5104_v60  ;;  %v5925_v16 = vpop.f32.mrf.mxu1  ;;  %v6062_v60 = vperm.slane %v6059_v3, 1  ;;  %v6063_v8 = vperm.slane %v6059_v3, 2 }
 0x367   :  { %6050 = vmatpush.bf16.msrb.mxu3 %v9162_v7 }
 0x368   :  { %v5926_v17 = vadd.f32 %v5925_v16, %v5913_v26 }
 0x36b   :  { %6051 = vmatpush.bf16.msrb.mxu3 %v9146_v54 }
 0x36d   :  { %v5938_v23 = vpop.f32.mrf.mxu2  ;;  %v5914_v40 = vpop.f32.mrf.mxu0 }
 0x36e   :  { %v5939_v37 = vadd.f32 %v5938_v23, %v5926_v17  ;;  %v5927_v33 = vpop.f32.mrf.mxu1 }
 0x36f   :  { %6052 = vmatpush.bf16.msrb.mxu3 %v9130_v57  ;;  %v6064_v57 = vperm.slane %v6059_v3, 3 }
 0x373   :  { %6053 = vmatpush.bf16.msrb.mxu3 %v9114_v27 }
 0x375   :  { %v5940_v35 = vpop.f32.mrf.mxu2 }
 0x376   :  { %6054 = vmatmul.bf16.vlgmr.msrb.gmra.mxu3 %v10563_v30  ;;  %v6097_v35 = vstv %s10604_s8  ;;  %s10255_s8 = smov [#allocation17]  }
 0x377   :  { %s6139_s23 = sshll.u32 %s10255_s8, 4  ;;  %s6140_s23 = int_to_ptr.vmem [resolvable:$true] %s6139_s23 }
 0x379   :  { %v5207_v12 = vpop.f32.mrf.mxu3 }
 0x37a   :  { %v5208_v41 = vadd.f32 %v5207_v12, %v10569_v5 }
 0x381   :  { %v5209_v47 = vpop.f32.mrf.mxu3 }
 0x385   :  { %v5964_v36 = vpop.f32.mrf.mxu0 }
 0x386   :  { %v5965_v48 = vadd.f32 %v5964_v36, %v5156_v15  ;;  %v5977_v55 = vpop.f32.mrf.mxu1 }
 0x388   :  { %v5978_v43 = vadd.f32 %v5977_v55, %v5965_v48 }
 0x38d   :  { %v5990_v44 = vpop.f32.mrf.mxu2  ;;  %v5966_v46 = vpop.f32.mrf.mxu0 }
 0x38e   :  { %v5991_v45 = vadd.f32 %v5990_v44, %v5978_v43  ;;  %v5979_v50 = vpop.f32.mrf.mxu1 }
 0x395   :  { %v5992_v51 = vpop.f32.mrf.mxu2 }
 0x399   :  { %v5899_v39 = vpop.f32.mrf.mxu3 }
 0x39a   :  { %v5900_v24 = vadd.f32 %v5899_v39, %v10573_v59  ;;  %v10015_v39 = vld [vmem:[#allocation3 + $0x8] sm:$0xff] }
 0x39c   :  { %v6069_v25 = vadd.f32 %v6061_v20, %v5900_v24  ;;  %v6119_v24 = vsub.f32 %v10015_v39, %v10430_v49 }
 0x39e   :  { %v6073_v19 = vmax.f32 %v6069_v25, 0.0 }
 0x3a0   :  { %v6087_v18 = vmul.f32 %v6079_v53, %v6073_v19 }
 0x3a1   :  { %v5901_v6 = vpop.f32.mrf.mxu3 }
 0x3a5   :  { %v6016_v56 = vpop.f32.mrf.mxu0 }
 0x3a6   :  { %v6017_v52 = vadd.f32 %v6016_v56, %v5208_v41  ;;  %v6029_v30 = vpop.f32.mrf.mxu1  ;;  %v10014_v56 = vld [vmem:[#allocation3] sm:$0xff] }
 0x3a8   :  { %v6030_v63 = vadd.f32 %v6029_v30, %v6017_v52  ;;  %v6118_v52 = vsub.f32 %v10014_v56, %v10403_v31 }
 0x3ad   :  { %v6042_v34 = vpop.f32.mrf.mxu2  ;;  %v6018_v1 = vpop.f32.mrf.mxu0 }
 0x3ae   :  { %v6043_v0 = vadd.f32 %v6042_v34, %v6030_v63  ;;  %v6031_v5 = vpop.f32.mrf.mxu1  ;;  %v10016_v63 = vld [vmem:[#allocation3 + $0x10] sm:$0xff] }
 0x3af   :  { %v6120_v34 = vsub.f32 %v10016_v63, %v10475_v14 }
 0x3b5   :  { %v6044_v2 = vpop.f32.mrf.mxu2 }
 0x3b9   :  { %v5951_v4 = vpop.f32.mrf.mxu3 }
 0x3ba   :  { %v5952_v9 = vadd.f32 %v5951_v4, %v5939_v37  ;;  %v6082_v37 = vperm.slane %v6077_v21, 3 }
 0x3bc   :  { %v6070_v38 = vadd.f32 %v6062_v60, %v5952_v9 }
 0x3be   :  { %v6074_v59 = vmax.f32 %v6070_v38, 0.0 }
 0x3c0   :  { %v6088_v7 = vmul.f32 %v6080_v29, %v6074_v59 }
 0x3c1   :  { %v5953_v61 = vpop.f32.mrf.mxu3 }
 0x3c2   :  { %v6091_v10 = vadd.f32 %v6088_v7, %v6087_v18 }
 0x3d9   :  { %v6003_v54 = vpop.f32.mrf.mxu3 }
 0x3da   :  { %v6004_v26 = vadd.f32 %v6003_v54, %v5991_v45 }
 0x3dc   :  { %v6071_v11 = vadd.f32 %v6063_v8, %v6004_v26 }
 0x3de   :  { %v6075_v13 = vmax.f32 %v6071_v11, 0.0 }
 0x3e0   :  { %v6089_v15 = vmul.f32 %v6081_v58, %v6075_v13 }
 0x3e1   :  { %v6005_v16 = vpop.f32.mrf.mxu3 }
 0x3e2   :  { %v6092_v17 = vadd.f32 %v6091_v10, %v6089_v15 }
 0x3f9   :  { %v6055_v42 = vpop.f32.mrf.mxu3 }
 0x3fa   :  { %v6056_v28 = vadd.f32 %v6055_v42, %v6043_v0  ;;  %v6121_v0 = vsub.f32 %v10559_v22, %v10528_v62 }
 0x3fc   :  { %v6072_v23 = vadd.f32 %v6064_v57, %v6056_v28 }
 0x3fe   :  { %v6076_v27 = vmax.f32 %v6072_v23, 0.0 }
 0x400   :  { %v6090_v40 = vmul.f32 %v6082_v37, %v6076_v27 }
 0x401   :  { %v6057_v32 = vpop.f32.mrf.mxu3 }
 0x402   :  { %v6093_v33 = vadd.f32 %v6092_v17, %v6090_v40 }
 0x404   :  { %6094 = vadd.xlane.f32.xlu0 %v6093_v33 }
 0x477   :  { %v6095_v36 = vpop.xlane.xlu0 %6094 }
 0x478   :  { %v6098_v48 = vadd.f32 %v6097_v35, %v6095_v36 }
 0x47a   :  { %v9227_v12 = vmul.f32 -1.442695, %v6098_v48 }
 0x47c   :  { %10007 = vpow2.f32 %v9227_v12 }
 0x482   :  { %v10008_v41 = vpop.eup %10007 }
 0x483   :  { %v6102_v55 = vadd.f32 1.0, %v10008_v41 }
 0x485   :  { %10009 = vrcp.f32 %v6102_v55  ;;  %v6114_v46 = vand.u32 2147483648, %v6102_v55  ;;  %v6112_v50 = vand.u32 2147483647, %v6102_v55  ;;  %vm6108_vm1 = vweird.f32 %v6102_v55 }
 0x487   :  { %v6115_v30 = vor.u32 1.1754944e-38, %v6114_v46  ;;  %vm6113_vm3 = vcmp.eq.f32.partialorder %v6112_v50, 8.507059e+37 }
 0x48b   :  { %v10010_v43 = vpop.eup %10009 }
 0x48c   :  { %v6104_v44 = vmul.f32 %v10010_v43, %v6102_v55  ;;  %vm6109_vm0 = vweird.f32 %v10010_v43 }
 0x48d   :  { %vm6110_vm2 = vmor %vm6108_vm1, %vm6109_vm0 }
 0x48e   :  { %v6105_v45 = vsub.f32 1.0, %v6104_v44 }
 0x490   :  { %v6106_v47 = vmul.f32 %v10010_v43, %v6105_v45 }
 0x492   :  { %v6107_v51 = vadd.f32 %v10010_v43, %v6106_v47 }
 0x494   :  { %v6111_v1 = vsel %vm6110_vm2, %v10010_v43, %v6107_v51 }
 0x495   :  { %v6116_v6 = vsel %vm6113_vm3, %v6115_v30, %v6111_v1 }
 0x496   :  { %v6122_v5 = vmul.f32 %v6118_v52, %v6116_v6  ;;  %v6123_v2 = vmul.f32 %v6119_v24, %v6116_v6  ;;  %v6124_v3 = vmul.f32 %v6120_v34, %v6116_v6  ;;  %v6125_v20 = vmul.f32 %v6121_v0, %v6116_v6 }
 0x498   :  { %v6126_v25 = vadd.f32 %v6122_v5, %v10403_v31  ;;  %v6127_v60 = vadd.f32 %v6123_v2, %v10430_v49  ;;  %v6128_v21 = vadd.f32 %v6124_v3, %v10475_v14  ;;  %v6129_v22 = vadd.f32 %v6125_v20, %v10528_v62 }
 0x49a   :  { %6130 = vst [vmem:[#allocation17] sm:$0xff] %v6126_v25 }
 0x49b   :  { %6131 = vst [vmem:[#allocation17 + $0x8] sm:$0xff] %v6127_v60 }
 0x49c   :  { %6132 = vst [vmem:[#allocation17 + $0x10] sm:$0xff] %v6128_v21 }
 0x49d   :  { %6133 = vst [vmem:[#allocation17 + $0x18] sm:$0xff] %v6129_v22 }
 0x49e   :  { %6144 = dma.vmem_to_hbm [thread:$0]  %s6140_s23, 512, %s6142_s26, [#allocation5]  }
 0x49f   :  { %10243 = dma.done.wait [#allocation5], 512  }
 0x4a0   :  { %10244 = vsyncadd [#allocation5], 4294966784 }
 0x4a1   :  { %6149 = vsyncpa [#allocation4], 1 }
 0x4a2   :  { %6150 = vsyncpa [#allocation7], 1 }
 0x4a3   :  { %6151 = vsyncpa [#allocation10], 1 }
 0x4a4   :  { %6152 = vsyncpa [#allocation13], 1 }
 0x4a5   :  { %6153 = vsyncpa [#allocation16], 1 }
 0x4a6   :  { %6154 = vsyncpa [#allocation5], 1 }

</bundles_post_ra>
